<compile_context>
chip_gen: v5e
topology: v5e:2x2
jax: 0.10.0
libtpu: 0.0.40
codegen_flags: <defaults>
</compile_context>

<pallas_src>
import functools

import jax
import jax.numpy as jnp
from jax import lax
from jax.experimental import pallas as pl
from jax.experimental.pallas import tpu as pltpu

EPS = 1e-5
LANE = 128      # lane width: channel-padding granule (128 also fine on v6e/v7x)
SUBLANE = 8


def _round_up(x, m):
    return ((x + m - 1) // m) * m


def _row_tile(h, w):
    """Largest even divisor of h with th*w <= 1024 (bounds the live matmul tile)."""
    if h * w <= 1024:
        return h
    th = max(2, (1024 // w) & ~1)
    while th > 2 and h % th:
        th -= 2
    return th


def _vmem_limit_bytes():
    # v5e/v6e: 128 MiB physical VMEM -> ~96 MiB; v7x: 64 MiB -> ~48 MiB.
    try:
        cap = int(pltpu.get_tpu_info().vmem_capacity_bytes)
        return int(min(max(cap * 3 // 4, 32 * 1024 * 1024), 96 * 1024 * 1024))
    except Exception:
        return 48 * 1024 * 1024   # safe on every generation


# ----------------------------- Pallas kernels -----------------------------

def _conv_bn_relu_pool_kernel(x_ref, w_ref, b_ref, o_ref, slab_ref, *,
                              K, TH, H, W, CIN, COUT):
    """Fused Conv2d(K, pad=K//2) + folded eval-BatchNorm + ReLU + MaxPool2d(2,2).

    x_ref   : (1, H+2p, W+2p, CIN)   padded bf16 NHWC input (one image)
    w_ref   : (K*K*CIN, COUT)        bf16 weight slab (BN scale folded in)
    b_ref   : (1, COUT)              f32 folded bias
    o_ref   : (1, H//2, W//2, COUT)  bf16 pooled output
    slab_ref: (TH, W, K*K*CIN)       bf16 VMEM scratch for the im2col slab
    """
    W2 = W // 2
    TH2 = TH // 2
    for band in range(H // TH):                      # bounded live footprint per band
        r0 = band * TH
        # im2col slab assembled once per band in VMEM (contiguous slice stores).
        for kh in range(K):
            for kw in range(K):
                t = kh * K + kw
                slab_ref[:, :, t * CIN:(t + 1) * CIN] = (
                    x_ref[0, r0 + kh:r0 + kh + TH, kw:kw + W, :])
        slab = slab_ref[...].reshape(TH * W, K * K * CIN)
        # One MXU matmul; contraction K*K*CIN keeps the systolic array fed.
        y = jnp.dot(slab, w_ref[...], preferred_element_type=jnp.float32)
        y = jnp.maximum(y + b_ref[...], 0.0)         # folded-BN bias + ReLU
        # Fused 2x2 stride-2 max pool: lane-merge formulation (one relayout,
        # lane-aligned slices, leading-axis max; no sparse-sublane 5-D shape).
        yr = y.reshape(TH2, 2, W2, 2 * COUT)
        hmax = jnp.maximum(yr[..., :COUT], yr[..., COUT:])   # horizontal pair
        pooled = jnp.maximum(hmax[:, 0], hmax[:, 1])         # vertical pair
        o_ref[0, band * TH2:(band + 1) * TH2] = pooled.astype(o_ref.dtype)


def _classifier_kernel(x_ref, w1_ref, b1_ref, w2_ref, b2_ref, o_ref):
    # Linear -> BatchNorm1d(eval, scale folded into w1) -> ReLU -> (Dropout=id) -> Linear
    h = jnp.dot(x_ref[...], w1_ref[...], preferred_element_type=jnp.float32)
    h = jnp.maximum(h + b1_ref[...], 0.0)
    o_ref[...] = (jnp.dot(h.astype(w2_ref.dtype), w2_ref[...],
                          preferred_element_type=jnp.float32)
                  + b2_ref[...]).astype(o_ref.dtype)


# ----------------------------- wrappers -----------------------------

def pallas_conv_bn_relu_pool(x_nhwc, w_slab, bias, K, cin_p, th):
    N, H, W, Cin = x_nhwc.shape
    assert H % 2 == 0 and W % 2 == 0, "fused MaxPool2d(2,2) assumes even H, W"
    p = K // 2
    Cout = w_slab.shape[1]
    xp = jnp.pad(x_nhwc.astype(jnp.bfloat16),
                 ((0, 0), (p, p), (p, p), (0, cin_p - Cin)))
    Hp, Wp = H + 2 * p, W + 2 * p
    H2, W2 = H // 2, W // 2
    kernel = functools.partial(_conv_bn_relu_pool_kernel, K=K, TH=th, H=H, W=W,
                               CIN=cin_p, COUT=Cout)
    return pl.pallas_call(
        kernel,
        out_shape=jax.ShapeDtypeStruct((N, H2, W2, Cout), jnp.bfloat16),
        grid=(N,),                                    # pipelined over images;
        in_specs=[                                    # >=2 parallel steps -> both v7x TCs busy
            pl.BlockSpec((1, Hp, Wp, cin_p), lambda n: (n, 0, 0, 0)),
            pl.BlockSpec((K * K * cin_p, Cout), lambda n: (0, 0)),   # VMEM-resident
            pl.BlockSpec((1, Cout), lambda n: (0, 0)),
        ],
        out_specs=pl.BlockSpec((1, H2, W2, Cout), lambda n: (n, 0, 0, 0)),
        scratch_shapes=[pltpu.VMEM((th, W, K * K * cin_p), jnp.bfloat16)],
        compiler_params=pltpu.CompilerParams(
            dimension_semantics=("parallel",),
            vmem_limit_bytes=_vmem_limit_bytes()),
    )(xp, w_slab, bias)


def pallas_classifier(feat, w1, b1, w2, b2):
    N, F = feat.shape
    Dh = w1.shape[1]
    Cls = w2.shape[1]
    # pad the batch so blocks are tile-aligned (no whole-batch fallback block)
    if N <= 256:
        n_pad = _round_up(N, SUBLANE)
        tn = n_pad
    else:
        n_pad = _round_up(N, 128)
        tn = 128
    featp = jnp.pad(feat, ((0, n_pad - N), (0, 0)))
    out = pl.pallas_call(
        _classifier_kernel,
        out_shape=jax.ShapeDtypeStruct((n_pad, Cls), jnp.float32),
        grid=(n_pad // tn,),
        in_specs=[
            pl.BlockSpec((tn, F), lambda i: (i, 0)),
            pl.BlockSpec((F, Dh), lambda i: (0, 0)),   # weights stay VMEM resident
            pl.BlockSpec((1, Dh), lambda i: (0, 0)),
            pl.BlockSpec((Dh, Cls), lambda i: (0, 0)),
            pl.BlockSpec((1, Cls), lambda i: (0, 0)),
        ],
        out_specs=pl.BlockSpec((tn, Cls), lambda i: (i, 0)),
        compiler_params=pltpu.CompilerParams(
            dimension_semantics=("parallel",),
            vmem_limit_bytes=_vmem_limit_bytes()),
    )(featp, w1, b1, w2, b2)
    return out[:N]


# ----------------------------- param preparation -----------------------------

def prepare_params(params, in_hw):
    """One-time parameter prep (outside the forward pass):
      * fold eval-mode BatchNorm into conv / fc1 weights and biases
      * reshape conv weights into (K*K*Cin_p, Cout_p) im2col slabs; pad every
        channel dim to a multiple of 128 (lane-dense layouts); cast to bf16
      * permute fc1 columns from torch NCHW-flatten to padded-NHWC-flatten
        order, pad Dh / num_classes to 128, pre-transpose; biases stay f32
    """
    prepped = {"conv_layers": [], "classifier": {}}
    H = W = in_hw
    cin_store = None
    for li, lp in enumerate(params["conv_layers"]):
        Cout, Cin, K, _ = lp["w"].shape
        assert K % 2 == 1, "padding=K//2 'same' conv assumes odd kernel"
        scale = lp["gamma"] / jnp.sqrt(lp["var"] + EPS)
        cin_p = _round_up(Cin, SUBLANE) if li == 0 else cin_store
        cout_p = _round_up(Cout, LANE)
        w_t = jnp.transpose(lp["w"], (2, 3, 1, 0)) * scale[None, None, None, :]
        w_t = jnp.pad(w_t, ((0, 0), (0, 0), (0, cin_p - Cin), (0, cout_p - Cout)))
        w_slab = w_t.reshape(K * K * cin_p, cout_p).astype(jnp.bfloat16)
        bias = jnp.pad(lp["beta"] + (lp["b"] - lp["mean"]) * scale,
                       (0, cout_p - Cout)).reshape(1, cout_p).astype(jnp.float32)
        prepped["conv_layers"].append(dict(w_slab=w_slab, bias=bias, K=K,
                                           cin_p=cin_p, th=_row_tile(H, W)))
        cin_store = cout_p
        H, W = H // 2, W // 2

    cl = params["classifier"]
    Dh, F = cl["w1"].shape
    C_last = params["conv_layers"][-1]["w"].shape[0]
    assert C_last * H * W == F, "flattened_size mismatch with input resolution"
    c_pad = cin_store
    num_classes = cl["w2"].shape[0]
    dh_p = _round_up(Dh, LANE)
    cls_p = _round_up(num_classes, LANE)
    scale = cl["gamma"] / jnp.sqrt(cl["var"] + EPS)
    # reorder fc1 columns: torch NCHW flatten -> padded NHWC flatten; fold BN
    w1 = cl["w1"].reshape(Dh, C_last, H, W).transpose(0, 2, 3, 1)
    w1 = jnp.pad(w1, ((0, 0), (0, 0), (0, 0), (0, c_pad - C_last)))
    w1 = (w1.reshape(Dh, H * W * c_pad) * scale[:, None]).T          # (F_pad, Dh)
    w1 = jnp.pad(w1, ((0, 0), (0, dh_p - Dh))).astype(jnp.bfloat16)
    b1 = jnp.pad(cl["beta"] + (cl["b1"] - cl["mean"]) * scale,
                 (0, dh_p - Dh)).reshape(1, dh_p).astype(jnp.float32)
    w2 = jnp.pad(cl["w2"].T, ((0, dh_p - Dh), (0, cls_p - num_classes))
                 ).astype(jnp.bfloat16)
    b2 = jnp.pad(cl["b2"], (0, cls_p - num_classes)).reshape(1, cls_p
                 ).astype(jnp.float32)
    prepped["classifier"] = dict(w1=w1, b1=b1, w2=w2, b2=b2,
                                 num_classes=num_classes)
    return prepped


def cnet_forward(x_nchw, prepped):
    x = jnp.transpose(x_nchw, (0, 2, 3, 1))          # NCHW -> NHWC once at input
    for lp in prepped["conv_layers"]:
        x = pallas_conv_bn_relu_pool(x, lp["w_slab"], lp["bias"], lp["K"],
                                     lp["cin_p"], lp["th"])
    feat = x.reshape(x.shape[0], -1)                  # padded-NHWC flatten
    cl = prepped["classifier"]
    logits = pallas_classifier(feat, cl["w1"], cl["b1"], cl["w2"], cl["b2"])
    return logits[:, :cl["num_classes"]]


# --------------------- pure-JAX reference (for checking) ---------------------

def reference_forward(x, params):
    y = x  # NCHW, f32
    for lp in params["conv_layers"]:
        k = lp["w"].shape[2]
        p = k // 2
        y = lax.conv_general_dilated(
            y, lp["w"], window_strides=(1, 1), padding=[(p, p), (p, p)],
            dimension_numbers=("NCHW", "OIHW", "NCHW"))
        y = y + lp["b"][None, :, None, None]
        y = ((y - lp["mean"][None, :, None, None])
             / jnp.sqrt(lp["var"][None, :, None, None] + EPS)
             * lp["gamma"][None, :, None, None]
             + lp["beta"][None, :, None, None])
        y = jnp.maximum(y, 0.0)
        y = lax.reduce_window(y, -jnp.inf, lax.max, (1, 1, 2, 2),
                              (1, 1, 2, 2), "VALID")
    y = y.reshape(y.shape[0], -1)
    cl = params["classifier"]
    h = y @ cl["w1"].T + cl["b1"]
    h = (h - cl["mean"]) / jnp.sqrt(cl["var"] + EPS) * cl["gamma"] + cl["beta"]
    h = jnp.maximum(h, 0.0)
    return h @ cl["w2"].T + cl["b2"]


# ----------------------------- init / main -----------------------------

def init_params(key, conv_layer_config, in_channels, dense_unit, num_classes,
                flattened_size):
    params = {"conv_layers": [], "classifier": {}}
    cin = in_channels
    for (filters, k) in conv_layer_config:
        key, k1, k2, k3, k4, k5, k6 = jax.random.split(key, 7)
        params["conv_layers"].append(dict(
            w=0.1 * jax.random.normal(k1, (filters, cin, k, k), jnp.float32),
            b=0.1 * jax.random.normal(k2, (filters,), jnp.float32),
            gamma=1.0 + 0.1 * jax.random.normal(k3, (filters,), jnp.float32),
            beta=0.1 * jax.random.normal(k4, (filters,), jnp.float32),
            mean=0.1 * jax.random.normal(k5, (filters,), jnp.float32),
            var=0.5 + jax.random.uniform(k6, (filters,), jnp.float32),
        ))
        cin = filters
    key, k1, k2, k3, k4, k5, k6, k7, k8 = jax.random.split(key, 9)
    params["classifier"] = dict(
        w1=0.05 * jax.random.normal(k1, (dense_unit, flattened_size), jnp.float32),
        b1=0.1 * jax.random.normal(k2, (dense_unit,), jnp.float32),
        gamma=1.0 + 0.1 * jax.random.normal(k3, (dense_unit,), jnp.float32),
        beta=0.1 * jax.random.normal(k4, (dense_unit,), jnp.float32),
        mean=0.1 * jax.random.normal(k5, (dense_unit,), jnp.float32),
        var=0.5 + jax.random.uniform(k6, (dense_unit,), jnp.float32),
        w2=0.1 * jax.random.normal(k7, (num_classes, dense_unit), jnp.float32),
        b2=0.1 * jax.random.normal(k8, (num_classes,), jnp.float32),
    )
    return params


if __name__ == "__main__":
    # small synthetic config (module hardcodes 3 input channels)
    conv_layer_config = [(8, 3), (16, 3)]
    dense_unit, num_classes = 32, 10
    N, Cin, HW = 2, 3, 16
    n_pool = len(conv_layer_config)
    flattened = conv_layer_config[-1][0] * (HW // (2 ** n_pool)) ** 2  # 256

    key = jax.random.PRNGKey(0)
    key, xk = jax.random.split(key)
    x = jax.random.normal(xk, (N, Cin, HW, HW), jnp.float32)
    params = init_params(key, conv_layer_config, Cin, dense_unit, num_classes,
                         flattened)
    prepped = prepare_params(params, HW)              # one-time folding/permutation

    out = jax.block_until_ready(cnet_forward(x, prepped))
    ref = jax.block_until_ready(reference_forward(x, params))

    assert out.shape == (N, num_classes)
    assert bool(jnp.all(jnp.isfinite(out)))
    max_err = float(jnp.max(jnp.abs(out - ref)))
    ref_scale = float(jnp.max(jnp.abs(ref)))
    # bf16 MXU operands (f32 accumulation) vs f32 XLA reference: ~1% relative
    assert max_err <= 5e-2 * max(ref_scale, 1.0), (max_err, ref_scale)
    print("KERNEL_OK")
</pallas_src>

<mosaic_0001>
module attributes {stable_mosaic.version = 11 : i64} {
  func.func @_conv_bn_relu_pool_kernel(%arg0: i32, %arg1: memref<1x18x18x8xbf16, #tpu.memory_space<vmem>>, %arg2: memref<72x128xbf16, #tpu.memory_space<vmem>>, %arg3: memref<1x128xf32, #tpu.memory_space<vmem>>, %arg4: memref<1x8x8x128xbf16, #tpu.memory_space<vmem>>, %arg5: memref<16x16x72xbf16, #tpu.memory_space<vmem>>) attributes {dimension_semantics = [#tpu.dimension_semantics<parallel>], iteration_bounds = array<i64: 2>, scalar_prefetch = 0 : i64, scratch_operands = 1 : i64, tpu.core_type = #tpu.core_type<tc>, window_params = [{transform_indices = @transform_0, window_bounds = array<i64: 1, 18, 18, 8>}, {pipeline_mode = #tpu.pipeline_mode<synchronous>, transform_indices = @transform_1, window_bounds = array<i64: 72, 128>}, {pipeline_mode = #tpu.pipeline_mode<synchronous>, transform_indices = @transform_2, window_bounds = array<i64: 1, 128>}, {transform_indices = @transform_3, window_bounds = array<i64: 1, 8, 8, 128>}]} {
    %c0 = arith.constant 0 : index
    %c0_0 = arith.constant 0 : index
    %c0_1 = arith.constant 0 : index
    %c0_2 = arith.constant 0 : index
    %0 = vector.load %arg1[%c0, %c0_0, %c0_1, %c0_2] : memref<1x18x18x8xbf16, #tpu.memory_space<vmem>>, vector<1x16x16x8xbf16>
    %1 = vector.shape_cast %0 : vector<1x16x16x8xbf16> to vector<16x16x8xbf16>
    %c0_3 = arith.constant 0 : index
    %c0_4 = arith.constant 0 : index
    %c0_5 = arith.constant 0 : index
    %2 = vector.load %arg5[%c0_3, %c0_4, %c0_5] : memref<16x16x72xbf16, #tpu.memory_space<vmem>>, vector<16x16x8xbf16>
    tpu.vector_store %arg5[%c0_3, %c0_4, %c0_5], %1 {strides = array<i32>} : memref<16x16x72xbf16, #tpu.memory_space<vmem>>, vector<16x16x8xbf16>,
    %c0_6 = arith.constant 0 : index
    %c0_7 = arith.constant 0 : index
    %c1 = arith.constant 1 : index
    %c0_8 = arith.constant 0 : index
    %3 = vector.load %arg1[%c0_6, %c0_7, %c1, %c0_8] : memref<1x18x18x8xbf16, #tpu.memory_space<vmem>>, vector<1x16x16x8xbf16>
    %4 = vector.shape_cast %3 : vector<1x16x16x8xbf16> to vector<16x16x8xbf16>
    %c0_9 = arith.constant 0 : index
    %c0_10 = arith.constant 0 : index
    %c8 = arith.constant 8 : index
    %5 = vector.load %arg5[%c0_9, %c0_10, %c8] : memref<16x16x72xbf16, #tpu.memory_space<vmem>>, vector<16x16x8xbf16>
    tpu.vector_store %arg5[%c0_9, %c0_10, %c8], %4 {strides = array<i32>} : memref<16x16x72xbf16, #tpu.memory_space<vmem>>, vector<16x16x8xbf16>,
    %c0_11 = arith.constant 0 : index
    %c0_12 = arith.constant 0 : index
    %c2 = arith.constant 2 : index
    %c0_13 = arith.constant 0 : index
    %6 = vector.load %arg1[%c0_11, %c0_12, %c2, %c0_13] : memref<1x18x18x8xbf16, #tpu.memory_space<vmem>>, vector<1x16x16x8xbf16>
    %7 = vector.shape_cast %6 : vector<1x16x16x8xbf16> to vector<16x16x8xbf16>
    %c0_14 = arith.constant 0 : index
    %c0_15 = arith.constant 0 : index
    %c16 = arith.constant 16 : index
    %8 = vector.load %arg5[%c0_14, %c0_15, %c16] : memref<16x16x72xbf16, #tpu.memory_space<vmem>>, vector<16x16x8xbf16>
    tpu.vector_store %arg5[%c0_14, %c0_15, %c16], %7 {strides = array<i32>} : memref<16x16x72xbf16, #tpu.memory_space<vmem>>, vector<16x16x8xbf16>,
    %c0_16 = arith.constant 0 : index
    %c1_17 = arith.constant 1 : index
    %c0_18 = arith.constant 0 : index
    %c0_19 = arith.constant 0 : index
    %9 = vector.load %arg1[%c0_16, %c1_17, %c0_18, %c0_19] : memref<1x18x18x8xbf16, #tpu.memory_space<vmem>>, vector<1x16x16x8xbf16>
    %10 = vector.shape_cast %9 : vector<1x16x16x8xbf16> to vector<16x16x8xbf16>
    %c0_20 = arith.constant 0 : index
    %c0_21 = arith.constant 0 : index
    %c24 = arith.constant 24 : index
    %11 = vector.load %arg5[%c0_20, %c0_21, %c24] : memref<16x16x72xbf16, #tpu.memory_space<vmem>>, vector<16x16x8xbf16>
    tpu.vector_store %arg5[%c0_20, %c0_21, %c24], %10 {strides = array<i32>} : memref<16x16x72xbf16, #tpu.memory_space<vmem>>, vector<16x16x8xbf16>,
    %c0_22 = arith.constant 0 : index
    %c1_23 = arith.constant 1 : index
    %c1_24 = arith.constant 1 : index
    %c0_25 = arith.constant 0 : index
    %12 = vector.load %arg1[%c0_22, %c1_23, %c1_24, %c0_25] : memref<1x18x18x8xbf16, #tpu.memory_space<vmem>>, vector<1x16x16x8xbf16>
    %13 = vector.shape_cast %12 : vector<1x16x16x8xbf16> to vector<16x16x8xbf16>
    %c0_26 = arith.constant 0 : index
    %c0_27 = arith.constant 0 : index
    %c32 = arith.constant 32 : index
    %14 = vector.load %arg5[%c0_26, %c0_27, %c32] : memref<16x16x72xbf16, #tpu.memory_space<vmem>>, vector<16x16x8xbf16>
    tpu.vector_store %arg5[%c0_26, %c0_27, %c32], %13 {strides = array<i32>} : memref<16x16x72xbf16, #tpu.memory_space<vmem>>, vector<16x16x8xbf16>,
    %c0_28 = arith.constant 0 : index
    %c1_29 = arith.constant 1 : index
    %c2_30 = arith.constant 2 : index
    %c0_31 = arith.constant 0 : index
    %15 = vector.load %arg1[%c0_28, %c1_29, %c2_30, %c0_31] : memref<1x18x18x8xbf16, #tpu.memory_space<vmem>>, vector<1x16x16x8xbf16>
    %16 = vector.shape_cast %15 : vector<1x16x16x8xbf16> to vector<16x16x8xbf16>
    %c0_32 = arith.constant 0 : index
    %c0_33 = arith.constant 0 : index
    %c40 = arith.constant 40 : index
    %17 = vector.load %arg5[%c0_32, %c0_33, %c40] : memref<16x16x72xbf16, #tpu.memory_space<vmem>>, vector<16x16x8xbf16>
    tpu.vector_store %arg5[%c0_32, %c0_33, %c40], %16 {strides = array<i32>} : memref<16x16x72xbf16, #tpu.memory_space<vmem>>, vector<16x16x8xbf16>,
    %c0_34 = arith.constant 0 : index
    %c2_35 = arith.constant 2 : index
    %c0_36 = arith.constant 0 : index
    %c0_37 = arith.constant 0 : index
    %18 = vector.load %arg1[%c0_34, %c2_35, %c0_36, %c0_37] : memref<1x18x18x8xbf16, #tpu.memory_space<vmem>>, vector<1x16x16x8xbf16>
    %19 = vector.shape_cast %18 : vector<1x16x16x8xbf16> to vector<16x16x8xbf16>
    %c0_38 = arith.constant 0 : index
    %c0_39 = arith.constant 0 : index
    %c48 = arith.constant 48 : index
    %20 = vector.load %arg5[%c0_38, %c0_39, %c48] : memref<16x16x72xbf16, #tpu.memory_space<vmem>>, vector<16x16x8xbf16>
    tpu.vector_store %arg5[%c0_38, %c0_39, %c48], %19 {strides = array<i32>} : memref<16x16x72xbf16, #tpu.memory_space<vmem>>, vector<16x16x8xbf16>,
    %c0_40 = arith.constant 0 : index
    %c2_41 = arith.constant 2 : index
    %c1_42 = arith.constant 1 : index
    %c0_43 = arith.constant 0 : index
    %21 = vector.load %arg1[%c0_40, %c2_41, %c1_42, %c0_43] : memref<1x18x18x8xbf16, #tpu.memory_space<vmem>>, vector<1x16x16x8xbf16>
    %22 = vector.shape_cast %21 : vector<1x16x16x8xbf16> to vector<16x16x8xbf16>
    %c0_44 = arith.constant 0 : index
    %c0_45 = arith.constant 0 : index
    %c56 = arith.constant 56 : index
    %23 = vector.load %arg5[%c0_44, %c0_45, %c56] : memref<16x16x72xbf16, #tpu.memory_space<vmem>>, vector<16x16x8xbf16>
    tpu.vector_store %arg5[%c0_44, %c0_45, %c56], %22 {strides = array<i32>} : memref<16x16x72xbf16, #tpu.memory_space<vmem>>, vector<16x16x8xbf16>,
    %c0_46 = arith.constant 0 : index
    %c2_47 = arith.constant 2 : index
    %c2_48 = arith.constant 2 : index
    %c0_49 = arith.constant 0 : index
    %24 = vector.load %arg1[%c0_46, %c2_47, %c2_48, %c0_49] : memref<1x18x18x8xbf16, #tpu.memory_space<vmem>>, vector<1x16x16x8xbf16>
    %25 = vector.shape_cast %24 : vector<1x16x16x8xbf16> to vector<16x16x8xbf16>
    %c0_50 = arith.constant 0 : index
    %c0_51 = arith.constant 0 : index
    %c64 = arith.constant 64 : index
    %26 = vector.load %arg5[%c0_50, %c0_51, %c64] : memref<16x16x72xbf16, #tpu.memory_space<vmem>>, vector<16x16x8xbf16>
    tpu.vector_store %arg5[%c0_50, %c0_51, %c64], %25 {strides = array<i32>} : memref<16x16x72xbf16, #tpu.memory_space<vmem>>, vector<16x16x8xbf16>,
    %c0_52 = arith.constant 0 : index
    %c0_53 = arith.constant 0 : index
    %c0_54 = arith.constant 0 : index
    %27 = vector.load %arg5[%c0_52, %c0_53, %c0_54] : memref<16x16x72xbf16, #tpu.memory_space<vmem>>, vector<16x16x72xbf16>
    %28 = vector.shape_cast %27 : vector<16x16x72xbf16> to vector<256x72xbf16>
    %c0_55 = arith.constant 0 : index
    %c0_56 = arith.constant 0 : index
    %29 = vector.load %arg2[%c0_55, %c0_56] : memref<72x128xbf16, #tpu.memory_space<vmem>>, vector<72x128xbf16>
    %cst = arith.constant dense<0.000000e+00> : vector<256x128xf32>
    %30 = tpu.matmul %28, %29, %cst {dimension_numbers = #tpu.dot_dimension_numbers<[1], [0], [0], [1], [0, 0, 1, 1], [], []>} : vector<256x72xbf16>, vector<72x128xbf16>, vector<256x128xf32> -> vector<256x128xf32>
    %c0_57 = arith.constant 0 : index
    %c0_58 = arith.constant 0 : index
    %31 = vector.load %arg3[%c0_57, %c0_58] : memref<1x128xf32, #tpu.memory_space<vmem>>, vector<1x128xf32>
    %32 = vector.broadcast %31 : vector<1x128xf32> to vector<256x128xf32>
    %33 = arith.addf %30, %32 : vector<256x128xf32>
    %cst_59 = arith.constant 0.000000e+00 : f32
    %34 = vector.broadcast %cst_59 : f32 to vector<256x128xf32>
    %35 = arith.maximumf %33, %34 : vector<256x128xf32>
    %36 = vector.shape_cast %35 : vector<256x128xf32> to vector<8x2x8x256xf32>
    %37 = vector.extract_strided_slice %36 {offsets = [0, 0, 0, 0], sizes = [8, 2, 8, 128], strides = [1, 1, 1, 1]} : vector<8x2x8x256xf32> to vector<8x2x8x128xf32>
    %38 = vector.extract_strided_slice %36 {offsets = [0, 0, 0, 128], sizes = [8, 2, 8, 128], strides = [1, 1, 1, 1]} : vector<8x2x8x256xf32> to vector<8x2x8x128xf32>
    %39 = arith.maximumf %37, %38 : vector<8x2x8x128xf32>
    %40 = vector.extract_strided_slice %39 {offsets = [0, 0, 0, 0], sizes = [8, 1, 8, 128], strides = [1, 1, 1, 1]} : vector<8x2x8x128xf32> to vector<8x1x8x128xf32>
    %41 = vector.shape_cast %40 : vector<8x1x8x128xf32> to vector<8x8x128xf32>
    %42 = vector.extract_strided_slice %39 {offsets = [0, 1, 0, 0], sizes = [8, 1, 8, 128], strides = [1, 1, 1, 1]} : vector<8x2x8x128xf32> to vector<8x1x8x128xf32>
    %43 = vector.shape_cast %42 : vector<8x1x8x128xf32> to vector<8x8x128xf32>
    %44 = arith.maximumf %41, %43 : vector<8x8x128xf32>
    %45 = arith.truncf %44 : vector<8x8x128xf32> to vector<8x8x128xbf16>
    %c0_60 = arith.constant 0 : index
    %c0_61 = arith.constant 0 : index
    %c0_62 = arith.constant 0 : index
    %c0_63 = arith.constant 0 : index
    %46 = vector.load %arg4[%c0_60, %c0_61, %c0_62, %c0_63] : memref<1x8x8x128xbf16, #tpu.memory_space<vmem>>, vector<1x8x8x128xbf16>
    %47 = vector.shape_cast %46 : vector<1x8x8x128xbf16> to vector<8x8x128xbf16>
    %48 = vector.shape_cast %45 : vector<8x8x128xbf16> to vector<1x8x8x128xbf16>
    tpu.vector_store %arg4[%c0_60, %c0_61, %c0_62, %c0_63], %48 {strides = array<i32>} : memref<1x8x8x128xbf16, #tpu.memory_space<vmem>>, vector<1x8x8x128xbf16>,
    return
  }
  func.func @transform_0(%arg0: i32) -> (i32, i32, i32, i32) {
    %c0_i32 = arith.constant 0 : i32
    %c0_i32_0 = arith.constant 0 : i32
    %c0_i32_1 = arith.constant 0 : i32
    %c0_i32_2 = arith.constant 0 : i32
    return %arg0, %c0_i32, %c0_i32_0, %c0_i32_1 : i32, i32, i32, i32
  }
  func.func @transform_1(%arg0: i32) -> (i32, i32) {
    %c0_i32 = arith.constant 0 : i32
    %c0_i32_0 = arith.constant 0 : i32
    %c0_i32_1 = arith.constant 0 : i32
    return %c0_i32, %c0_i32_0 : i32, i32
  }
  func.func @transform_2(%arg0: i32) -> (i32, i32) {
    %c0_i32 = arith.constant 0 : i32
    %c0_i32_0 = arith.constant 0 : i32
    %c0_i32_1 = arith.constant 0 : i32
    return %c0_i32, %c0_i32_0 : i32, i32
  }
  func.func @transform_3(%arg0: i32) -> (i32, i32, i32, i32) {
    %c0_i32 = arith.constant 0 : i32
    %c0_i32_0 = arith.constant 0 : i32
    %c0_i32_1 = arith.constant 0 : i32
    %c0_i32_2 = arith.constant 0 : i32
    return %arg0, %c0_i32, %c0_i32_0, %c0_i32_1 : i32, i32, i32, i32
  }
}

</mosaic_0001>

<bundles_post_ra>
// kernel: tpu_custom_call.1
= control target key start
LH: loop header
LB: loop body
LE: loop exit
PB: predicated region body
PF: predicated region fallthrough
CT: control target
= control target key end

     0   :  { %8 = vsyncpa [#allocation4], 0  ;;  %s6286_s0 = inlined_call_operand.vmem [shape: bf16[2,18,18,8], index: 0, kind: input, shape index: {}]   ;;  %s6287_s1 = inlined_call_operand.vmem [shape: bf16[72,128], index: 1, kind: input, shape index: {}]   ;;  %s6288_s2 = inlined_call_operand.vmem [shape: f32[1,128], index: 2, kind: input, shape index: {}]   ;;  %s6289_s3 = inlined_call_operand.hbm [shape: bf16[2,8,8,128], index: 3, kind: output, shape index: {}]  }
   0x1   :  { %10 = vsyncpa [#allocation4 + $0x1], 0  ;;  %s4685_s12 = smov 0   ;;  %s4687_s13 = smov 0  }
   0x2   :  { %s4689_s14 = smov 0   ;;  %s4691_s15 = smov 0  }
   0x3 LB: > { %s4706_s16 = sadd.s32 4294967295, %s4653_s15   ;;  %s4070_s17 = sadd.s32 4294967294, %s4653_s15   ;;  %s4653_s15 = sphi %s4691_s15, %s6299_s15   ;;  %s4649_s14 = sphi %s4689_s14, %s6298_s14   ;;  %s4645_s13 = sphi %s4687_s13, %s6297_s13   ;;  %s4641_s12 = sphi %s4685_s12, %s6296_s12  }
   0x4   : > { %s4710_s18 = sadd.s32 1, %s4653_s15   ;;  %s91_s19 = sadd.s32 1, %s4649_s14 }
   0x5   : > { %s88_s20 = ssub.s32 %s4653_s15, %s4710_s18  ;;  %p101_p0 = scmp.ne.s32.totalorder %s4649_s14, %s4645_s13 }
   0x6   : > { %p89_p1 = scmp.eq.s32.totalorder %s88_s20, 0  ;;  %p102_p2 = scmp.eq.s32.totalorder %s4706_s16, 1 }
   0x7   : > { %p107_p3 = scmp.ne.s32.totalorder %s4645_s13, %s4641_s12  ;;  %p108_p4 = scmp.eq.s32.totalorder %s4070_s17, 1 }
   0x8   : > { %s4721_s21 = scalar_select %p89_p1, %s4649_s14, %s91_s19  }
   0x9   : > { %p4723_p5 = por %p102_p2, %p101_p0  ;;  %p4727_p6 = por %p108_p4, %p107_p3 }
   0xa   : > { %p4073_p7 = scmp.ge.s32.totalorder %s4653_s15, 1  ;;  %p140_p8 = scmp.lt.s32.totalorder %s4653_s15, 3 }
   0xc   : > { %p141_p9 = pnand %p4073_p7, %p140_p8 }
   0xd   : > { %p164_p10 = scmp.lt.s32.totalorder (!%p141_p9), %s4706_s16, 1  ;;  %s4655_s29 = smov (!%p141_p9), 8  }
   0xe   : > { %144 = sbr.rel (%p141_p9) target bundleno = 1004 (0x3ec), region = 32  ;;  %s4656_s30 = smov (!%p141_p9), 16  }
   0xf   : > { %s4657_s4 = smov (!%p141_p9), 24   ;;  %s4658_s5 = smov (!%p141_p9), 32  }
  0x10   : > { %s4659_s6 = smov (!%p141_p9), 40   ;;  %s4660_s7 = smov (!%p141_p9), 48  }
  0x11   : > { %s4661_s8 = smov (!%p141_p9), 56   ;;  %s4662_s9 = smov (!%p141_p9), 64  }
  0x12   : > { %s4611_s27 = scalar_lea.hbm (!%p141_p9), %s6289_s3, 64 }
  0x13   : > { %s165_s24 = scalar_select %p164_p10, %s4706_s16, 1  ;;  %vm283_vm0 = vsmask.f32 3328  ;;  %vm284_vm1 = vsmask.f32 7440  ;;  %vm895_vm3 = vcmask 1042432  }
  0x14   : > { %vm4749_vm2 = vmor %vm283_vm0, %vm284_vm1  ;;  %vm896_vm4 = vcmask 1046532   ;;  %vm202_vm5 = vcmask 60416   ;;  %vm766_vm7 = vcmask 126016   ;;  %vm1106_vm8 = vcmask 191616  }
  0x15   : > { %s4540_s25 = smul.u32 216, %s165_s24  ;;  %vm4924_vm6 = vmor %vm895_vm3, %vm896_vm4  ;;  %vm1300_vm9 = vcmask 257216   ;;  %vm1861_vm10 = vcmask 322816   ;;  %vm2198_vm11 = vcmask 388416   ;;  %vm2392_vm12 = vcmask 454016  }
  0x16   : > { %vm3524_vm13 = vcmask 1043456   ;;  %vm2953_vm14 = vcmask 519616   ;;  %vm3290_vm15 = vcmask 585216   ;;  %vm3475_vm0 = vcmask 588800  }
  0x17   : > { %s4738_s28 = scalar_lea.vmem %s6286_s0, %s4540_s25 }
  0x18   : > { %v238_v0 = vld [vmem:[%s4738_s28 + $0xc] sm:$0xf]  ;;  %v239_v1 = vld [vmem:[%s4738_s28 + $0x10] sm:$0xf]  ;;  %v235_v2 = vld [vmem:[%s4738_s28] sm:$0xf] }
  0x19   : > { %v311_v3 = vshrl.u32 %v238_v0, 16  ;;  %v314_v4 = vshll.u32 %v238_v0, 16  ;;  %v320_v5 = vshll.u32 %v239_v1, 16  ;;  %v324_v6 = vshrl.u32 %v239_v1, 16  ;;  %v236_v7 = vld [vmem:[%s4738_s28 + $0x4] sm:$0xf] }
  0x1a   : > { %v287_v8 = vshrl.u32 %v235_v2, 16  ;;  %v290_v9 = vshll.u32 %v235_v2, 16  ;;  %v296_v10 = vshll.u32 %v236_v7, 16  ;;  %v300_v11 = vshrl.u32 %v236_v7, 16  ;;  %v240_v12 = vld [vmem:[%s4738_s28 + $0x14] sm:$0x1] }
  0x1b   : > { %v313_v13 = vrot.slane %v311_v3, 4  ;;  %v316_v14 = vrot.slane %v314_v4, 5  ;;  %v322_v15 = vrot.slane %v320_v5, 5  ;;  %v326_v16 = vrot.slane %v324_v6, 4  ;;  %v237_v17 = vld [vmem:[%s4738_s28 + $0x8] sm:$0x1] }
  0x1c   : > { %v289_v18 = vrot.slane %v287_v8, 4  ;;  %v292_v19 = vrot.slane %v290_v9, 5  ;;  %v302_v20 = vrot.slane %v300_v11, 4  ;;  %v245_v21 = vld [vmem:[%s4738_s28 + $0x28] sm:$0xf]  ;;  %v330_v24 = vshll.u32 %v240_v12, 16 }
  0x1d   : > { %v317_v22 = vor.u32 %v316_v14, %v313_v13  ;;  %v327_v23 = vor.u32 %v326_v16, %v322_v15  ;;  %v298_v27 = vrot.slane %v296_v10, 5  ;;  %v368_v28 = vshll.u32 %v245_v21, 16  ;;  %v244_v30 = vld [vmem:[%s4738_s28 + $0x24] sm:$0xf]  ;;  %v241_v35 = vld [vmem:[%s4738_s28 + $0x18] sm:$0xf] }
  0x1e   : > { %v293_v26 = vor.u32 %v292_v19, %v289_v18  ;;  %v372_v29 = vshrl.u32 %v245_v21, 16  ;;  %v306_v32 = vshll.u32 %v237_v17, 16  ;;  %v332_v38 = vrot.slane %v330_v24, 5  ;;  %v242_v40 = vld [vmem:[%s4738_s28 + $0x1c] sm:$0xf] }
  0x1f   : > { %v318_v31 = vrot.slane %v317_v22, 4  ;;  %v303_v34 = vor.u32 %v302_v20, %v298_v27  ;;  %v328_v37 = vrot.slane %v327_v23, 4  ;;  %v359_v39 = vshrl.u32 %v244_v30, 16  ;;  %v246_v42 = vld [vmem:[%s4738_s28 + $0x2c] sm:$0x1] }
  0x20   : > { %v294_v33 = vrot.slane %v293_v26, 4  ;;  %v4762_v43 = vrot.slane %v368_v28, 5  ;;  %v374_v44 = vrot.slane %v372_v29, 4  ;;  %v362_v45 = vshll.u32 %v244_v30, 16  ;;  %v250_v50 = vld [vmem:[%s4738_s28 + $0x3c] sm:$0xf] }
  0x21   : > { %v323_v36 = vsel %vm4749_vm2, %v318_v31, %v322_v15  ;;  %v308_v46 = vrot.slane %v306_v32, 5  ;;  %v361_v47 = vrot.slane %v359_v39, 4  ;;  %v335_v48 = vshrl.u32 %v241_v35, 16  ;;  %v248_v58 = vld [vmem:[%s4738_s28 + $0x34] sm:$0xf] }
  0x22   : > { %674 = vrot.lane.b32.xlu1 %v323_v36, %s4655_s29  ;;  %v299_v41 = vsel %vm4749_vm2, %v294_v33, %v298_v27  ;;  %v338_v49 = vshll.u32 %v241_v35, 16  ;;  %v304_v51 = vrot.slane %v303_v34, 4  ;;  %v364_v52 = vrot.slane %v362_v45, 5  ;;  %v243_v6 = vld [vmem:[%s4738_s28 + $0x20] sm:$0x1] }
  0x23   : > { %670 = vrot.lane.b32.xlu0 %v299_v41, %s4655_s29  ;;  %v344_v53 = vshll.u32 %v242_v40, 16  ;;  %v348_v54 = vshrl.u32 %v242_v40, 16  ;;  %v378_v55 = vshll.u32 %v246_v42, 16  ;;  %v337_v56 = vrot.slane %v335_v48, 4  ;;  %v251_v15 = vld [vmem:[%s4738_s28 + $0x40] sm:$0xf] }
  0x24   : > { %v340_v57 = vrot.slane %v338_v49, 5  ;;  %v375_v59 = vor.u32 %v374_v44, %v4762_v43  ;;  %v407_v61 = vshrl.u32 %v250_v50, 16  ;;  %v410_v62 = vshll.u32 %v250_v50, 16  ;;  %v249_v16 = vld [vmem:[%s4738_s28 + $0x38] sm:$0x1] }
  0x25   : > { %v350_v60 = vrot.slane %v348_v54, 4  ;;  %v333_v63 = vsel %vm4749_vm2, %v328_v37, %v332_v38  ;;  %v365_v0 = vor.u32 %v364_v52, %v361_v47  ;;  %v346_v2 = vrot.slane %v344_v53, 5  ;;  %v254_v20 = vld [vmem:[%s4738_s28 + $0x4c] sm:$0xf]  ;;  %v247_v21 = vld [vmem:[%s4738_s28 + $0x30] sm:$0xf] }
  0x26   : > { %v341_v1 = vor.u32 %v340_v57, %v337_v56  ;;  %v309_v3 = vsel %vm4749_vm2, %v304_v51, %v308_v46  ;;  %v392_v4 = vshll.u32 %v248_v58, 16  ;;  %v396_v5 = vshrl.u32 %v248_v58, 16  ;;  %v253_v24 = vld [vmem:[%s4738_s28 + $0x48] sm:$0xf]  ;;  %v259_v47 = vld [vmem:[%s4738_s28 + $0x60] sm:$0xf] }
  0x27   : > { %v380_v7 = vrot.slane %v378_v55, 5  ;;  %v376_v9 = vrot.slane %v375_v59, 4  ;;  %v409_v10 = vrot.slane %v407_v61, 4  ;;  %v412_v11 = vrot.slane %v410_v62, 5  ;;  %v255_v49 = vld [vmem:[%s4738_s28 + $0x50] sm:$0x1] }
  0x28   : > { %v342_v8 = vrot.slane %v341_v1, 4  ;;  %v351_v12 = vor.u32 %v350_v60, %v346_v2  ;;  %v366_v13 = vrot.slane %v365_v0, 4  ;;  %v354_v17 = vshll.u32 %v243_v6, 16  ;;  %v257_v53 = vld [vmem:[%s4738_s28 + $0x58] sm:$0xf] }
  0x29   : > { %v4780_v18 = vrot.slane %v392_v4, 5  ;;  %v398_v19 = vrot.slane %v396_v5, 4  ;;  %v381_v26 = vsel %vm4749_vm2, %v376_v9, %v380_v7  ;;  %v413_v27 = vor.u32 %v412_v11, %v409_v10  ;;  %v252_v58 = vld [vmem:[%s4738_s28 + $0x44] sm:$0x1]  ;;  %v263_v11 = vld [vmem:[%s4738_s28 + $0x70] sm:$0xf] }
  0x2a   : > { %676 = vrot.lane.b32.xlu1 %v333_v63, %s4655_s29  ;;  %v347_v14 = vsel %vm4749_vm2, %v342_v8, %v346_v2  ;;  %v352_v22 = vrot.slane %v351_v12, 4  ;;  %v356_v23 = vrot.slane %v354_v17, 5  ;;  %v416_v28 = vshll.u32 %v251_v15, 16  ;;  %v256_v2 = vld [vmem:[%s4738_s28 + $0x54] sm:$0xf] }
  0x2b   : > { %672 = vrot.lane.b32.xlu0 %v309_v3, %s4655_s29  ;;  %678 = vrot.lane.b32.xlu2 %v347_v14, %s4655_s29  ;;  %v402_v29 = vshll.u32 %v249_v16, 16  ;;  %v371_v30 = vsel %vm4749_vm2, %v366_v13, %v4762_v43  ;;  %v440_v31 = vshll.u32 %v254_v20, 16  ;;  %v444_v32 = vshrl.u32 %v254_v20, 16  ;;  %v260_v6 = vld [vmem:[%s4738_s28 + $0x64] sm:$0xf] }
  0x2c   : > { %v383_v33 = vshrl.u32 %v247_v21, 16  ;;  %v399_v34 = vor.u32 %v398_v19, %v4780_v18  ;;  %v431_v35 = vshrl.u32 %v253_v24, 16  ;;  %v434_v36 = vshll.u32 %v253_v24, 16  ;;  %v262_v20 = vld [vmem:[%s4738_s28 + $0x6c] sm:$0xf] }
  0x2d   : > { %v386_v37 = vshll.u32 %v247_v21, 16  ;;  %v420_v38 = vshrl.u32 %v251_v15, 16  ;;  %v357_v39 = vsel %vm4749_vm2, %v352_v22, %v356_v23  ;;  %v418_v41 = vrot.slane %v416_v28, 5  ;;  %v258_v15 = vld [vmem:[%s4738_s28 + $0x5c] sm:$0x1] }
  0x2e   : > { %v385_v40 = vrot.slane %v383_v33, 4  ;;  %v414_v43 = vrot.slane %v413_v27, 4  ;;  %v404_v44 = vrot.slane %v402_v29, 5  ;;  %v4795_v45 = vrot.slane %v440_v31, 5 }
  0x2f   : > { %v388_v42 = vrot.slane %v386_v37, 5  ;;  %v446_v46 = vrot.slane %v444_v32, 4  ;;  %v400_v48 = vrot.slane %v399_v34, 4  ;;  %v433_v50 = vrot.slane %v431_v35, 4 }
  0x30   : > { %v436_v51 = vrot.slane %v434_v36, 5  ;;  %v422_v54 = vrot.slane %v420_v38, 4  ;;  %v479_v56 = vshrl.u32 %v259_v47, 16  ;;  %v482_v57 = vshll.u32 %v259_v47, 16  ;;  %v266_v47 = vld [vmem:[%s4738_s28 + $0x7c] sm:$0xf] }
  0x31   : > { %v389_v52 = vor.u32 %v388_v42, %v385_v40  ;;  %v419_v59 = vsel %vm4749_vm2, %v414_v43, %v418_v41  ;;  %v447_v60 = vor.u32 %v446_v46, %v4795_v45  ;;  %v450_v61 = vshll.u32 %v255_v49, 16  ;;  %v268_v42 = vld [vmem:[%s4738_s28 + $0x84] sm:$0xf]  ;;  %v261_v49 = vld [vmem:[%s4738_s28 + $0x68] sm:$0x1] }
  0x32   : > { %684 = vrot.lane.b32.xlu1 %v381_v26, %s4655_s29  ;;  %v405_v62 = vsel %vm4749_vm2, %v400_v48, %v404_v44  ;;  %v437_v63 = vor.u32 %v436_v51, %v433_v50  ;;  %v464_v0 = vshll.u32 %v257_v53, 16  ;;  %v468_v1 = vshrl.u32 %v257_v53, 16 }
  0x33   : > { %682 = vrot.lane.b32.xlu0 %v371_v30, %s4655_s29  ;;  %680 = vrot.lane.b32.xlu2 %v357_v39, %s4655_s29  ;;  %v390_v55 = vrot.slane %v389_v52, 4  ;;  %v423_v4 = vor.u32 %v422_v54, %v418_v41  ;;  %v426_v5 = vshll.u32 %v252_v58, 16  ;;  %v481_v7 = vrot.slane %v479_v56, 4  ;;  %v264_v41 = vld [vmem:[%s4738_s28 + $0x74] sm:$0x1] }
  0x34   : > { %v484_v8 = vrot.slane %v482_v57, 5  ;;  %v448_v9 = vrot.slane %v447_v60, 4  ;;  %v452_v10 = vrot.slane %v450_v61, 5  ;;  %v455_v12 = vshrl.u32 %v256_v2, 16  ;;  %v265_v54 = vld [vmem:[%s4738_s28 + $0x78] sm:$0xf] }
  0x35   : > { %v395_v3 = vsel %vm4749_vm2, %v390_v55, %v4780_v18  ;;  %v458_v13 = vshll.u32 %v256_v2, 16  ;;  %v438_v14 = vrot.slane %v437_v63, 4  ;;  %v4817_v16 = vrot.slane %v464_v0, 5 }
  0x36   : > { %v470_v17 = vrot.slane %v468_v1, 4  ;;  %v424_v18 = vrot.slane %v423_v4, 4  ;;  %v428_v19 = vrot.slane %v426_v5, 5  ;;  %v457_v21 = vrot.slane %v455_v12, 4  ;;  %v269_v4 = vld [vmem:[%s4738_s28 + $0x88] sm:$0xf] }
  0x37   : > { %v460_v22 = vrot.slane %v458_v13, 5  ;;  %v485_v23 = vor.u32 %v484_v8, %v481_v7  ;;  %v488_v24 = vshll.u32 %v260_v6, 16  ;;  %v512_v26 = vshll.u32 %v263_v11, 16 }
  0x38   : > { %v516_v27 = vshrl.u32 %v263_v11, 16  ;;  %v453_v28 = vsel %vm4749_vm2, %v448_v9, %v452_v10  ;;  %v474_v29 = vshll.u32 %v258_v15, 16  ;;  %v443_v30 = vsel %vm4749_vm2, %v438_v14, %v4795_v45  ;;  %v272_v9 = vld [vmem:[%s4738_s28 + $0x94] sm:$0xf]  ;;  %v267_v11 = vld [vmem:[%s4738_s28 + $0x80] sm:$0x1] }
  0x39   : > { %v471_v31 = vor.u32 %v470_v17, %v4817_v16  ;;  %v503_v32 = vshrl.u32 %v262_v20, 16  ;;  %v506_v33 = vshll.u32 %v262_v20, 16  ;;  %v492_v34 = vshrl.u32 %v260_v6, 16  ;;  %v271_v14 = vld [vmem:[%s4738_s28 + $0x90] sm:$0xf] }
  0x3a   : > { %690 = vrot.lane.b32.xlu1 %v419_v59, %s4655_s29  ;;  %v429_v35 = vsel %vm4749_vm2, %v424_v18, %v428_v19  ;;  %v461_v36 = vor.u32 %v460_v22, %v457_v21  ;;  %v486_v37 = vrot.slane %v485_v23, 4  ;;  %v490_v38 = vrot.slane %v488_v24, 5 }
  0x3b   : > { %688 = vrot.lane.b32.xlu0 %v405_v62, %s4655_s29  ;;  %686 = vrot.lane.b32.xlu2 %v395_v3, %s4655_s29  ;;  %v4829_v39 = vrot.slane %v512_v26, 5  ;;  %v518_v40 = vrot.slane %v516_v27, 4  ;;  %v472_v43 = vrot.slane %v471_v31, 4  ;;  %v476_v44 = vrot.slane %v474_v29, 5 }
  0x3c   : > { %v505_v45 = vrot.slane %v503_v32, 4  ;;  %v508_v46 = vrot.slane %v506_v33, 5  ;;  %v462_v48 = vrot.slane %v461_v36, 4  ;;  %v494_v50 = vrot.slane %v492_v34, 4 }
  0x3d   : > { %v491_v51 = vsel %vm4749_vm2, %v486_v37, %v490_v38  ;;  %v519_v52 = vor.u32 %v518_v40, %v4829_v39  ;;  %v522_v53 = vshll.u32 %v264_v41, 16  ;;  %v551_v55 = vshrl.u32 %v268_v42, 16  ;;  %v273_v37 = vld [vmem:[%s4738_s28 + $0x98] sm:$0x1]  ;;  %v277_v40 = vld [vmem:[%s4738_s28 + $0xa8] sm:$0xf] }
  0x3e   : > { %v554_v56 = vshll.u32 %v268_v42, 16  ;;  %v536_v57 = vshll.u32 %v266_v47, 16  ;;  %v540_v58 = vshrl.u32 %v266_v47, 16  ;;  %v477_v59 = vsel %vm4749_vm2, %v472_v43, %v476_v44  ;;  %v275_v42 = vld [vmem:[%s4738_s28 + $0xa0] sm:$0xf] }
  0x3f   : > { %v509_v60 = vor.u32 %v508_v46, %v505_v45  ;;  %v498_v61 = vshll.u32 %v261_v49, 16  ;;  %v467_v62 = vsel %vm4749_vm2, %v462_v48, %v4817_v16  ;;  %v495_v63 = vor.u32 %v494_v50, %v490_v38  ;;  %v270_v43 = vld [vmem:[%s4738_s28 + $0x8c] sm:$0x1]  ;;  %v274_v47 = vld [vmem:[%s4738_s28 + $0x9c] sm:$0xf] }
  0x40   : > { %v527_v0 = vshrl.u32 %v265_v54, 16  ;;  %v530_v1 = vshll.u32 %v265_v54, 16  ;;  %v520_v2 = vrot.slane %v519_v52, 4  ;;  %v524_v3 = vrot.slane %v522_v53, 5 }
  0x41   : > { %v553_v5 = vrot.slane %v551_v55, 4  ;;  %v556_v6 = vrot.slane %v554_v56, 5  ;;  %v4849_v7 = vrot.slane %v536_v57, 5  ;;  %v542_v8 = vrot.slane %v540_v58, 4 }
  0x42   : > { %696 = vrot.lane.b32.xlu1 %v453_v28, %s4655_s29  ;;  %v510_v10 = vrot.slane %v509_v60, 4  ;;  %v496_v12 = vrot.slane %v495_v63, 4  ;;  %v500_v13 = vrot.slane %v498_v61, 5  ;;  %v529_v15 = vrot.slane %v527_v0, 4 }
  0x43   : > { %694 = vrot.lane.b32.xlu0 %v443_v30, %s4655_s29  ;;  %692 = vrot.lane.b32.xlu2 %v429_v35, %s4655_s29  ;;  %v532_v16 = vrot.slane %v530_v1, 5  ;;  %v560_v17 = vshll.u32 %v269_v4, 16  ;;  %v584_v18 = vshll.u32 %v272_v9, 16  ;;  %v588_v19 = vshrl.u32 %v272_v9, 16  ;;  %v276_v1 = vld [vmem:[%s4738_s28 + $0xa4] sm:$0x1] }
  0x44   : > { %v525_v20 = vsel %vm4749_vm2, %v520_v2, %v524_v3  ;;  %v557_v21 = vor.u32 %v556_v6, %v553_v5  ;;  %v543_v22 = vor.u32 %v542_v8, %v4849_v7  ;;  %v546_v23 = vshll.u32 %v267_v11, 16  ;;  %v281_v5 = vld [vmem:[%s4738_s28 + $0xb8] sm:$0xf]  ;;  %v280_v8 = vld [vmem:[%s4738_s28 + $0xb4] sm:$0xf] }
  0x45   : > { %v515_v24 = vsel %vm4749_vm2, %v510_v10, %v4829_v39  ;;  %v575_v26 = vshrl.u32 %v271_v14, 16  ;;  %v578_v27 = vshll.u32 %v271_v14, 16  ;;  %v564_v28 = vshrl.u32 %v269_v4, 16 }
  0x46   : > { %v501_v29 = vsel %vm4749_vm2, %v496_v12, %v500_v13  ;;  %v533_v30 = vor.u32 %v532_v16, %v529_v15  ;;  %v4864_v31 = vrot.slane %v584_v18, 5  ;;  %v590_v32 = vrot.slane %v588_v19, 4 }
  0x47   : > { %v558_v33 = vrot.slane %v557_v21, 4  ;;  %v562_v34 = vrot.slane %v560_v17, 5  ;;  %v544_v35 = vrot.slane %v543_v22, 4  ;;  %v548_v36 = vrot.slane %v546_v23, 5 }
  0x48   : > { %v577_v38 = vrot.slane %v575_v26, 4  ;;  %v580_v39 = vrot.slane %v578_v27, 5  ;;  %v534_v41 = vrot.slane %v533_v30, 4  ;;  %v566_v44 = vrot.slane %v564_v28, 4 }
  0x49   : > { %v591_v45 = vor.u32 %v590_v32, %v4864_v31  ;;  %v594_v46 = vshll.u32 %v273_v37, 16  ;;  %v563_v48 = vsel %vm4749_vm2, %v558_v33, %v562_v34  ;;  %v549_v49 = vsel %vm4749_vm2, %v544_v35, %v548_v36  ;;  %v279_v36 = vld [vmem:[%s4738_s28 + $0xb0] sm:$0x1] }
  0x4a   : > { %702 = vrot.lane.b32.xlu1 %v491_v51, %s4655_s29  ;;  %v623_v50 = vshrl.u32 %v277_v40, 16  ;;  %v626_v51 = vshll.u32 %v277_v40, 16  ;;  %v581_v52 = vor.u32 %v580_v39, %v577_v38  ;;  %v608_v53 = vshll.u32 %v275_v42, 16 }
  0x4b   : > { %700 = vrot.lane.b32.xlu0 %v477_v59, %s4655_s29  ;;  %698 = vrot.lane.b32.xlu2 %v467_v62, %s4655_s29  ;;  %v612_v54 = vshrl.u32 %v275_v42, 16  ;;  %v570_v55 = vshll.u32 %v270_v43, 16  ;;  %v539_v56 = vsel %vm4749_vm2, %v534_v41, %v4849_v7  ;;  %v567_v57 = vor.u32 %v566_v44, %v562_v34  ;;  %v278_v62 = vld [vmem:[%s4738_s28 + $0xac] sm:$0xf] }
  0x4c   : > { %v599_v58 = vshrl.u32 %v274_v47, 16  ;;  %v602_v59 = vshll.u32 %v274_v47, 16  ;;  %v592_v60 = vrot.slane %v591_v45, 4  ;;  %v596_v61 = vrot.slane %v594_v46, 5 }
  0x4d   : > { %v625_v63 = vrot.slane %v623_v50, 4  ;;  %v628_v0 = vrot.slane %v626_v51, 5  ;;  %v582_v2 = vrot.slane %v581_v52, 4  ;;  %v610_v3 = vrot.slane %v608_v53, 5  ;;  %v802_v51 = vld [vmem:[%s4738_s28 + $0xc] sm:$0xe] }
  0x4e   : > { %v614_v4 = vrot.slane %v612_v54, 4  ;;  %v568_v6 = vrot.slane %v567_v57, 4  ;;  %v572_v7 = vrot.slane %v570_v55, 5  ;;  %v601_v9 = vrot.slane %v599_v58, 4  ;;  %v803_v53 = vld [vmem:[%s4738_s28 + $0x10] sm:$0xf] }
  0x4f   : > { %v604_v10 = vrot.slane %v602_v59, 5  ;;  %v597_v11 = vsel %vm4749_vm2, %v592_v60, %v596_v61  ;;  %v632_v12 = vshll.u32 %v278_v62, 16  ;;  %v629_v13 = vor.u32 %v628_v0, %v625_v63  ;;  %v801_v54 = vld [vmem:[%s4738_s28 + $0x8] sm:$0x1]  ;;  %v799_v61 = vld [vmem:[%s4738_s28] sm:$0xe] }
  0x50   : > { %v618_v14 = vshll.u32 %v276_v1, 16  ;;  %v656_v15 = vshll.u32 %v281_v5, 16  ;;  %v660_v16 = vshrl.u32 %v281_v5, 16  ;;  %v587_v17 = vsel %vm4749_vm2, %v582_v2, %v4864_v31  ;;  %v282_v31 = vld [vmem:[%s4738_s28 + $0xbc] sm:$0x1] }
  0x51   : > { %v615_v18 = vor.u32 %v614_v4, %v610_v3  ;;  %v647_v19 = vshrl.u32 %v280_v8, 16  ;;  %v636_v21 = vshrl.u32 %v278_v62, 16  ;;  %v573_v22 = vsel %vm4749_vm2, %v568_v6, %v572_v7  ;;  %v806_v63 = vld [vmem:[%s4738_s28 + $0x1c] sm:$0xf]  ;;  %v174_v0 = vld [vmem:[%s4738_s28 + $0x18] sm:$0xf] }
  0x52   : > { %708 = vrot.lane.b32.xlu1 %v525_v20, %s4655_s29  ;;  %v650_v20 = vshll.u32 %v280_v8, 16  ;;  %v605_v23 = vor.u32 %v604_v10, %v601_v9  ;;  %v634_v26 = vrot.slane %v632_v12, 5  ;;  %v658_v27 = vrot.slane %v656_v15, 5  ;;  %207 = vst.msk [vmem:[#allocation2 + $0x10] sm:$0xf] %vm202_vm5, %v174_v0 }
  0x53   : > { %706 = vrot.lane.b32.xlu0 %v515_v24, %s4655_s29  ;;  %704 = vrot.lane.b32.xlu2 %v501_v29, %s4655_s29  ;;  %v630_v24 = vrot.slane %v629_v13, 4  ;;  %v662_v28 = vrot.slane %v660_v16, 4  ;;  %v616_v29 = vrot.slane %v615_v18, 4  ;;  %v620_v30 = vrot.slane %v618_v14, 5  ;;  %v172_v2 = vld [vmem:[%s4738_s28 + $0xc] sm:$0xf] }
  0x54   : > { %v649_v32 = vrot.slane %v647_v19, 4  ;;  %v652_v33 = vrot.slane %v650_v20, 5  ;;  %v606_v34 = vrot.slane %v605_v23, 4  ;;  %v638_v35 = vrot.slane %v636_v21, 4  ;;  %205 = vst.msk [vmem:[#allocation2 + $0x8] sm:$0xf] %vm202_vm5, %v172_v2 }
  0x55   : > { %v635_v37 = vsel %vm4749_vm2, %v630_v24, %v634_v26  ;;  %v663_v38 = vor.u32 %v662_v28, %v658_v27  ;;  %v666_v39 = vshll.u32 %v282_v31, 16  ;;  %v621_v40 = vsel %vm4749_vm2, %v616_v29, %v620_v30  ;;  %v807_v6 = vld [vmem:[%s4738_s28 + $0x20] sm:$0x1]  ;;  %v805_v9 = vld [vmem:[%s4738_s28 + $0x18] sm:$0xe] }
  0x56   : > { %v653_v41 = vor.u32 %v652_v33, %v649_v32  ;;  %v611_v42 = vsel %vm4749_vm2, %v606_v34, %v610_v3  ;;  %v639_v43 = vor.u32 %v638_v35, %v634_v26  ;;  %v642_v44 = vshll.u32 %v279_v36, 16  ;;  %v170_v3 = vld [vmem:[%s4738_s28] sm:$0xf]  ;;  %v804_v12 = vld [vmem:[%s4738_s28 + $0x14] sm:$0x1] }
  0x57   : > { %v664_v45 = vrot.slane %v663_v38, 4  ;;  %v668_v46 = vrot.slane %v666_v39, 5  ;;  %v4077_v58 = vrot.slane %v802_v51, 9  ;;  %v907_v59 = vrot.slane %v803_v53, 5  ;;  %203 = vst.msk [vmem:[#allocation2] sm:$0xf] %vm202_vm5, %v170_v3 }
  0x58   : > { %v654_v47 = vrot.slane %v653_v41, 4  ;;  %v644_v50 = vrot.slane %v642_v44, 5  ;;  %v903_v60 = vrot.slane %v801_v54, 5  ;;  %v4076_v4 = vrot.slane %v799_v61, 9  ;;  %v809_v15 = vld [vmem:[%s4738_s28 + $0x28] sm:$0xf] }
  0x59   : > { %v669_v52 = vsel %vm4749_vm2, %v664_v45, %v668_v46  ;;  %v908_v5 = vsel %vm4924_vm6, %v4077_v58, %v907_v59  ;;  %v914_v7 = vrot.slane %v806_v63, 5  ;;  %v4078_v14 = vrot.slane %v805_v9, 9  ;;  %v175_v16 = vld [vmem:[%s4738_s28 + $0x1c] sm:$0xf]  ;;  %v171_v18 = vld [vmem:[%s4738_s28 + $0x4] sm:$0xf] }
  0x5a   : > { %714 = vrot.lane.b32.xlu1 %v563_v48, %s4655_s29  ;;  %v800_v48 = vld [vmem:[%s4738_s28 + $0x4] sm:$0xf]  ;;  %208 = vst.msk [vmem:[#allocation2 + $0x14] sm:$0xf] %vm202_vm5, %v175_v16  ;;  %v909_v19 = vrot.slane %v907_v59, 4  ;;  %v910_v20 = vrot.slane %v804_v12, 5 }
  0x5b   : > { %712 = vrot.lane.b32.xlu0 %v549_v49, %s4655_s29  ;;  %710 = vrot.lane.b32.xlu2 %v539_v56, %s4655_s29  ;;  %v640_v49 = vrot.slane %v639_v43, 4  ;;  %v900_v55 = vrot.slane %v800_v48, 5  ;;  %v659_v56 = vsel %vm4749_vm2, %v654_v47, %v658_v27  ;;  %v916_v13 = vrot.slane %v914_v7, 4  ;;  %204 = vst.msk [vmem:[#allocation2 + $0x4] sm:$0xf] %vm202_vm5, %v171_v18 }
  0x5c   : > { %v812_v23 = vld [vmem:[%s4738_s28 + $0x34] sm:$0xf]  ;;  %v921_v24 = vrot.slane %v809_v15, 5  ;;  %v915_v26 = vsel %vm4924_vm6, %v4078_v14, %v914_v7  ;;  %v810_v27 = vld [vmem:[%s4738_s28 + $0x2c] sm:$0x1]  ;;  %v911_v28 = vsel %vm4924_vm6, %v909_v19, %v910_v20 }
  0x5d   : > { %v645_v57 = vsel %vm4749_vm2, %v640_v49, %v644_v50  ;;  %v902_v62 = vrot.slane %v900_v55, 4  ;;  %v901_v10 = vsel %vm4924_vm6, %v4076_v4, %v900_v55  ;;  %v928_v30 = vrot.slane %v812_v23, 5  ;;  %v808_v31 = vld [vmem:[%s4738_s28 + $0x24] sm:$0xe]  ;;  %v815_v34 = vld [vmem:[%s4738_s28 + $0x40] sm:$0xf] }
  0x5e   : > { %v923_v32 = vrot.slane %v921_v24, 4  ;;  %v924_v33 = vrot.slane %v810_v27, 5  ;;  %v178_v35 = vld [vmem:[%s4738_s28 + $0x30] sm:$0xf]  ;;  %v177_v36 = vld [vmem:[%s4738_s28 + $0x28] sm:$0xf] }
  0x5f   : > { %v904_v8 = vsel %vm4924_vm6, %v902_v62, %v903_v60  ;;  %211 = vst.msk [vmem:[#allocation2 + $0x20] sm:$0xf] %vm202_vm5, %v178_v35  ;;  %v4079_v38 = vrot.slane %v808_v31, 9  ;;  %v935_v41 = vrot.slane %v815_v34, 5  ;;  %v816_v43 = vld [vmem:[%s4738_s28 + $0x44] sm:$0x1] }
  0x60   : > { %210 = vst.msk [vmem:[#allocation2 + $0x1c] sm:$0xf] %vm202_vm5, %v177_v36  ;;  %v814_v44 = vld [vmem:[%s4738_s28 + $0x3c] sm:$0xe]  ;;  %v813_v46 = vld [vmem:[%s4738_s28 + $0x38] sm:$0x1] }
  0x61   : > { %v922_v45 = vsel %vm4924_vm6, %v4079_v38, %v921_v24  ;;  %v937_v47 = vrot.slane %v935_v41, 4  ;;  %v938_v48 = vrot.slane %v816_v43, 5  ;;  %v4081_v49 = vrot.slane %v814_v44, 9  ;;  %v181_v50 = vld [vmem:[%s4738_s28 + $0x40] sm:$0xf] }
  0x62   : > { %720 = vrot.lane.b32.xlu1 %v597_v11, %s4655_s29  ;;  %v917_v11 = vrot.slane %v807_v6, 5  ;;  %214 = vst.msk [vmem:[#allocation2 + $0x2c] sm:$0xf] %vm202_vm5, %v181_v50  ;;  %v180_v51 = vld [vmem:[%s4738_s28 + $0x3c] sm:$0xf]  ;;  %v930_v54 = vrot.slane %v928_v30, 4 }
  0x63   : > { %718 = vrot.lane.b32.xlu0 %v587_v17, %s4655_s29  ;;  %716 = vrot.lane.b32.xlu2 %v573_v22, %s4655_s29  ;;  %v173_v17 = vld [vmem:[%s4738_s28 + $0x10] sm:$0xf]  ;;  %v818_v53 = vld [vmem:[%s4738_s28 + $0x4c] sm:$0xf]  ;;  %v931_v55 = vrot.slane %v813_v46, 5  ;;  %v936_v58 = vsel %vm4924_vm6, %v4081_v49, %v935_v41 }
  0x64   : > { %206 = vst.msk [vmem:[#allocation2 + $0xc] sm:$0xf] %vm202_vm5, %v173_v17  ;;  %v918_v21 = vsel %vm4924_vm6, %v916_v13, %v917_v11  ;;  %v811_v22 = vld [vmem:[%s4738_s28 + $0x30] sm:$0xe]  ;;  %v820_v59 = vld [vmem:[%s4738_s28 + $0x54] sm:$0xe] }
  0x65   : > { %v4080_v29 = vrot.slane %v811_v22, 9  ;;  %213 = vst.msk [vmem:[#allocation2 + $0x28] sm:$0xf] %vm202_vm5, %v180_v51  ;;  %v821_v60 = vld [vmem:[%s4738_s28 + $0x58] sm:$0xf]  ;;  %v942_v61 = vrot.slane %v818_v53, 5  ;;  %v932_v63 = vsel %vm4924_vm6, %v930_v54, %v931_v55 }
  0x66   : > { %v819_v62 = vld [vmem:[%s4738_s28 + $0x50] sm:$0x1]  ;;  %v817_v0 = vld [vmem:[%s4738_s28 + $0x48] sm:$0xe]  ;;  %v4083_v2 = vrot.slane %v820_v59, 9  ;;  %v949_v3 = vrot.slane %v821_v60, 5 }
  0x67   : > { %v184_v4 = vld [vmem:[%s4738_s28 + $0x54] sm:$0xf]  ;;  %v944_v6 = vrot.slane %v942_v61, 4  ;;  %v945_v7 = vrot.slane %v819_v62, 5  ;;  %v183_v11 = vld [vmem:[%s4738_s28 + $0x4c] sm:$0xf] }
  0x68   : > { %217 = vst.msk [vmem:[#allocation2 + $0x38] sm:$0xf] %vm202_vm5, %v184_v4  ;;  %v182_v13 = vld [vmem:[%s4738_s28 + $0x48] sm:$0xf]  ;;  %v950_v14 = vsel %vm4924_vm6, %v4083_v2, %v949_v3  ;;  %v823_v18 = vld [vmem:[%s4738_s28 + $0x60] sm:$0xe] }
  0x69   : > { %v946_v16 = vsel %vm4924_vm6, %v944_v6, %v945_v7  ;;  %v825_v17 = vld [vmem:[%s4738_s28 + $0x68] sm:$0x1]  ;;  %216 = vst.msk [vmem:[#allocation2 + $0x34] sm:$0xf] %vm202_vm5, %v183_v11  ;;  %v822_v20 = vld [vmem:[%s4738_s28 + $0x5c] sm:$0x1] }
  0x6a   : > { %726 = vrot.lane.b32.xlu1 %v635_v37, %s4655_s29  ;;  %v176_v37 = vld [vmem:[%s4738_s28 + $0x24] sm:$0xf]  ;;  %215 = vst.msk [vmem:[#allocation2 + $0x30] sm:$0xf] %vm202_vm5, %v182_v13  ;;  %v959_v22 = vrot.slane %v825_v17, 5 }
  0x6b   : > { %724 = vrot.lane.b32.xlu0 %v621_v40, %s4655_s29  ;;  %722 = vrot.lane.b32.xlu2 %v611_v42, %s4655_s29  ;;  %209 = vst.msk [vmem:[#allocation2 + $0x18] sm:$0xf] %vm202_vm5, %v176_v37  ;;  %v929_v40 = vsel %vm4924_vm6, %v4080_v29, %v928_v30  ;;  %v925_v42 = vsel %vm4924_vm6, %v923_v32, %v924_v33  ;;  %v187_v23 = vld [vmem:[%s4738_s28 + $0x64] sm:$0xf]  ;;  %v827_v27 = vld [vmem:[%s4738_s28 + $0x70] sm:$0xf] }
  0x6c   : > { %220 = vst.msk [vmem:[#allocation2 + $0x44] sm:$0xf] %vm202_vm5, %v187_v23  ;;  %v951_v29 = vrot.slane %v949_v3, 4  ;;  %v952_v30 = vrot.slane %v822_v20, 5  ;;  %v186_v31 = vld [vmem:[%s4738_s28 + $0x60] sm:$0xf] }
  0x6d   : > { %v185_v33 = vld [vmem:[%s4738_s28 + $0x58] sm:$0xf]  ;;  %v830_v37 = vld [vmem:[%s4738_s28 + $0x7c] sm:$0xf]  ;;  %v963_v38 = vrot.slane %v827_v27, 5 }
  0x6e   : > { %v829_v35 = vld [vmem:[%s4738_s28 + $0x78] sm:$0xe]  ;;  %219 = vst.msk [vmem:[#allocation2 + $0x40] sm:$0xf] %vm202_vm5, %v186_v31  ;;  %v826_v41 = vld [vmem:[%s4738_s28 + $0x6c] sm:$0xe] }
  0x6f   : > { %218 = vst.msk [vmem:[#allocation2 + $0x3c] sm:$0xf] %vm202_vm5, %v185_v33  ;;  %v970_v43 = vrot.slane %v830_v37, 5  ;;  %v190_v44 = vld [vmem:[%s4738_s28 + $0x78] sm:$0xf]  ;;  %v965_v46 = vrot.slane %v963_v38, 4 }
  0x70   : > { %223 = vst.msk [vmem:[#allocation2 + $0x50] sm:$0xf] %vm202_vm5, %v190_v44  ;;  %v4085_v50 = vrot.slane %v826_v41, 9  ;;  %v189_v51 = vld [vmem:[%s4738_s28 + $0x70] sm:$0xf] }
  0x71   : > { %v188_v53 = vld [vmem:[%s4738_s28 + $0x6c] sm:$0xf]  ;;  %222 = vst.msk [vmem:[#allocation2 + $0x4c] sm:$0xf] %vm202_vm5, %v189_v51  ;;  %v831_v60 = vld [vmem:[%s4738_s28 + $0x80] sm:$0x1] }
  0x72   : > { %732 = vrot.lane.b32.xlu1 %v669_v52, %s4655_s29  ;;  %v179_v52 = vld [vmem:[%s4738_s28 + $0x34] sm:$0xf]  ;;  %v964_v59 = vsel %vm4924_vm6, %v4085_v50, %v963_v38  ;;  %221 = vst.msk [vmem:[#allocation2 + $0x48] sm:$0xf] %vm202_vm5, %v188_v53  ;;  %v973_v6 = vrot.slane %v831_v60, 5 }
  0x73   : > { %730 = vrot.lane.b32.xlu0 %v659_v56, %s4655_s29  ;;  %728 = vrot.lane.b32.xlu2 %v645_v57, %s4655_s29  ;;  %212 = vst.msk [vmem:[#allocation2 + $0x24] sm:$0xf] %vm202_vm5, %v179_v52  ;;  %v939_v57 = vsel %vm4924_vm6, %v937_v47, %v938_v48  ;;  %v833_v48 = vld [vmem:[%s4738_s28 + $0x88] sm:$0xf]  ;;  %v836_v3 = vld [vmem:[%s4738_s28 + $0x94] sm:$0xf] }
  0x74   : > { %v977_v55 = vrot.slane %v833_v48, 5  ;;  %v192_v7 = vld [vmem:[%s4738_s28 + $0x84] sm:$0xf]  ;;  %v838_v11 = vld [vmem:[%s4738_s28 + $0x9c] sm:$0xe] }
  0x75   : > { %v839_v13 = vld [vmem:[%s4738_s28 + $0xa0] sm:$0xf]  ;;  %225 = vst.msk [vmem:[#allocation2 + $0x58] sm:$0xf] %vm202_vm5, %v192_v7  ;;  %v835_v17 = vld [vmem:[%s4738_s28 + $0x90] sm:$0xe] }
  0x76   : > { %v196_v20 = vld [vmem:[%s4738_s28 + $0x9c] sm:$0xf]  ;;  %v4088_v27 = vrot.slane %v835_v17, 9  ;;  %v840_v37 = vld [vmem:[%s4738_s28 + $0xa4] sm:$0x1] }
  0x77   : > { %229 = vst.msk [vmem:[#allocation2 + $0x68] sm:$0xf] %vm202_vm5, %v196_v20  ;;  %v846_v53 = vld [vmem:[%s4738_s28 + $0xbc] sm:$0x1] }
  0x78   : > { %v4095_v7 = vld [vmem:[%s4738_s28 + $0x1c] sm:$0xf] }
  0x79   : > { %v4100_v20 = vld [vmem:[%s4738_s28 + $0x3c] sm:$0xf] }
  0x7a   : > { %1014 = vrot.lane.b32.xlu1 %v908_v5, %s4656_s30 }
  0x7b   : > { %1012 = vrot.lane.b32.xlu0 %v904_v8, %s4656_s30  ;;  %1010 = vrot.lane.b32.xlu2 %v901_v10, %s4656_s30  ;;  %v824_v8 = vld [vmem:[%s4738_s28 + $0x64] sm:$0xf]  ;;  %v4082_v10 = vrot.slane %v817_v0, 9 }
  0x7c   : > { %v956_v15 = vrot.slane %v824_v8, 5 }
  0x7d   : > { %v943_v19 = vsel %vm4924_vm6, %v4082_v10, %v942_v61  ;;  %v979_v61 = vrot.slane %v977_v55, 4 }
  0x82   : > { %1020 = vrot.lane.b32.xlu1 %v918_v21, %s4656_s30  ;;  %v958_v21 = vrot.slane %v956_v15, 4 }
  0x83   : > { %1018 = vrot.lane.b32.xlu0 %v915_v26, %s4656_s30  ;;  %1016 = vrot.lane.b32.xlu2 %v911_v28, %s4656_s30  ;;  %v4084_v26 = vrot.slane %v823_v18, 9  ;;  %v4089_v18 = vrot.slane %v838_v11, 9 }
  0x84   : > { %v960_v34 = vsel %vm4924_vm6, %v958_v21, %v959_v22 }
  0x85   : > { %v679_v39 = vpop.permute.xlu2 %678  ;;  %v957_v36 = vsel %vm4924_vm6, %v4084_v26, %v956_v15  ;;  %v837_v15 = vld [vmem:[%s4738_s28 + $0x98] sm:$0x1] }
  0x86   : > { %771 = vst.msk [vmem:[#allocation2 + $0x10] sm:$0xf] %vm766_vm7, %v679_v39  ;;  %v828_v39 = vld [vmem:[%s4738_s28 + $0x74] sm:$0x1]  ;;  %v987_v23 = vrot.slane %v837_v15, 5 }
  0x87   : > { %v966_v47 = vrot.slane %v828_v39, 5  ;;  %v4096_v15 = vld [vmem:[%s4738_s28 + $0x24] sm:$0xf] }
  0x8a   : > { %1026 = vrot.lane.b32.xlu1 %v929_v40, %s4656_s30  ;;  %v953_v40 = vsel %vm4924_vm6, %v951_v29, %v952_v30  ;;  %v194_v30 = vld [vmem:[%s4738_s28 + $0x90] sm:$0xf] }
  0x8b   : > { %1024 = vrot.lane.b32.xlu0 %v925_v42, %s4656_s30  ;;  %1022 = vrot.lane.b32.xlu2 %v922_v45, %s4656_s30  ;;  %v4086_v42 = vrot.slane %v829_v35, 9  ;;  %v841_v35 = vld [vmem:[%s4738_s28 + $0xa8] sm:$0xe]  ;;  %227 = vst.msk [vmem:[#allocation2 + $0x60] sm:$0xf] %vm202_vm5, %v194_v30 }
  0x8d   : > { %v681_v56 = vpop.permute.xlu2 %680  ;;  %v971_v54 = vsel %vm4924_vm6, %v4086_v42, %v970_v43  ;;  %v4090_v42 = vrot.slane %v841_v35, 9 }
  0x8e   : > { %772 = vst.msk [vmem:[#allocation2 + $0x14] sm:$0xf] %vm766_vm7, %v681_v56  ;;  %v967_v56 = vsel %vm4924_vm6, %v965_v46, %v966_v47  ;;  %v994_v46 = vrot.slane %v840_v37, 5  ;;  %v198_v47 = vld [vmem:[%s4738_s28 + $0xa8] sm:$0xf] }
  0x8f   : > { %231 = vst.msk [vmem:[#allocation2 + $0x70] sm:$0xf] %vm202_vm5, %v198_v47 }
  0x92   : > { %1032 = vrot.lane.b32.xlu1 %v939_v57, %s4656_s30  ;;  %v834_v57 = vld [vmem:[%s4738_s28 + $0x8c] sm:$0x1] }
  0x93   : > { %1030 = vrot.lane.b32.xlu0 %v936_v58, %s4656_s30  ;;  %1028 = vrot.lane.b32.xlu2 %v932_v63, %s4656_s30  ;;  %v832_v58 = vld [vmem:[%s4738_s28 + $0x84] sm:$0xe]  ;;  %v980_v62 = vrot.slane %v834_v57, 5  ;;  %v193_v63 = vld [vmem:[%s4738_s28 + $0x88] sm:$0xf] }
  0x94   : > { %v675_v5 = vpop.permute.xlu1 %674  ;;  %v4087_v2 = vrot.slane %v832_v58, 9  ;;  %226 = vst.msk [vmem:[#allocation2 + $0x5c] sm:$0xf] %vm202_vm5, %v193_v63  ;;  %v1008_v58 = vrot.slane %v846_v53, 5  ;;  %v200_v63 = vld [vmem:[%s4738_s28 + $0xb4] sm:$0xf] }
  0x95   : > { %769 = vst.msk [vmem:[#allocation2 + $0x8] sm:$0xf] %vm766_vm7, %v675_v5  ;;  %v671_v9 = vpop.permute.xlu0 %670  ;;  %v687_v12 = vpop.permute.xlu2 %686  ;;  %v972_v5 = vrot.slane %v970_v43, 4  ;;  %v981_v10 = vsel %vm4924_vm6, %v979_v61, %v980_v62  ;;  %v845_v43 = vld [vmem:[%s4738_s28 + $0xb8] sm:$0xf] }
  0x96   : > { %767 = vst.msk [vmem:[#allocation2] sm:$0xf] %vm766_vm7, %v671_v9  ;;  %v191_v9 = vld [vmem:[%s4738_s28 + $0x7c] sm:$0xf]  ;;  %v201_v61 = vld [vmem:[%s4738_s28 + $0xb8] sm:$0xf] }
  0x97   : > { %775 = vst.msk [vmem:[#allocation2 + $0x20] sm:$0xf] %vm766_vm7, %v687_v12  ;;  %v978_v12 = vsel %vm4924_vm6, %v4087_v2, %v977_v55  ;;  %v844_v55 = vld [vmem:[%s4738_s28 + $0xb4] sm:$0xe]  ;;  %v4125_v53 = vld [vmem:[%s4738_s28 + $0x10] sm:$0xf] }
  0x98   : > { %224 = vst.msk [vmem:[#allocation2 + $0x54] sm:$0xf] %vm202_vm5, %v191_v9  ;;  %v4091_v60 = vrot.slane %v844_v55, 9  ;;  %v4093_v9 = vld [vmem:[%s4738_s28 + $0x10] sm:$0xf] }
  0x99   : > { %234 = vst.msk [vmem:[#allocation2 + $0x7c] sm:$0xf] %vm202_vm5, %v201_v61  ;;  %v4118_v61 = vld [vmem:[%s4738_s28 + $0xa8] sm:$0xf] }
  0x9a   : > { %1038 = vrot.lane.b32.xlu1 %v950_v14, %s4656_s30  ;;  %v984_v14 = vrot.slane %v836_v3, 5  ;;  %233 = vst.msk [vmem:[#allocation2 + $0x78] sm:$0xf] %vm202_vm5, %v200_v63 }
  0x9b   : > { %1036 = vrot.lane.b32.xlu0 %v946_v16, %s4656_s30  ;;  %1034 = vrot.lane.b32.xlu2 %v943_v19, %s4656_s30  ;;  %v974_v16 = vsel %vm4924_vm6, %v972_v5, %v973_v6  ;;  %v991_v19 = vrot.slane %v839_v13, 5  ;;  %v4098_v13 = vld [vmem:[%s4738_s28 + $0x30] sm:$0xf] }
  0x9c   : > { %v677_v24 = vpop.permute.xlu1 %676  ;;  %v986_v22 = vrot.slane %v984_v14, 4 }
  0x9d   : > { %770 = vst.msk [vmem:[#allocation2 + $0xc] sm:$0xf] %vm766_vm7, %v677_v24  ;;  %v673_v28 = vpop.permute.xlu0 %672  ;;  %v693_v32 = vpop.permute.xlu2 %692  ;;  %v842_v24 = vld [vmem:[%s4738_s28 + $0xac] sm:$0xf]  ;;  %v992_v31 = vsel %vm4924_vm6, %v4089_v18, %v991_v19 }
  0x9e   : > { %768 = vst.msk [vmem:[#allocation2 + $0x4] sm:$0xf] %vm766_vm7, %v673_v28  ;;  %v195_v28 = vld [vmem:[%s4738_s28 + $0x94] sm:$0xf]  ;;  %v988_v33 = vsel %vm4924_vm6, %v986_v22, %v987_v23 }
  0x9f   : > { %778 = vst.msk [vmem:[#allocation2 + $0x2c] sm:$0xf] %vm766_vm7, %v693_v32  ;;  %v998_v32 = vrot.slane %v842_v24, 5 }
  0xa0   : > { %228 = vst.msk [vmem:[#allocation2 + $0x64] sm:$0xf] %vm202_vm5, %v195_v28  ;;  %v4102_v28 = vld [vmem:[%s4738_s28 + $0x48] sm:$0xf] }
  0xa1   : > { %v1000_v38 = vrot.slane %v998_v32, 4  ;;  %v999_v51 = vsel %vm4924_vm6, %v4090_v42, %v998_v32  ;;  %v4107_v32 = vld [vmem:[%s4738_s28 + $0x64] sm:$0xf] }
  0xa2   : > { %1044 = vrot.lane.b32.xlu1 %v960_v34, %s4656_s30  ;;  %v843_v34 = vld [vmem:[%s4738_s28 + $0xb0] sm:$0x1] }
  0xa3   : > { %1042 = vrot.lane.b32.xlu0 %v957_v36, %s4656_s30  ;;  %1040 = vrot.lane.b32.xlu2 %v953_v40, %s4656_s30  ;;  %v985_v36 = vsel %vm4924_vm6, %v4088_v27, %v984_v14  ;;  %v1001_v39 = vrot.slane %v843_v34, 5  ;;  %v199_v40 = vld [vmem:[%s4738_s28 + $0xac] sm:$0xf]  ;;  %v4097_v14 = vld [vmem:[%s4738_s28 + $0x28] sm:$0xf] }
  0xa4   : > { %v685_v45 = vpop.permute.xlu1 %684  ;;  %232 = vst.msk [vmem:[#allocation2 + $0x74] sm:$0xf] %vm202_vm5, %v199_v40  ;;  %v4103_v27 = vld [vmem:[%s4738_s28 + $0x4c] sm:$0xf]  ;;  %v4105_v34 = vld [vmem:[%s4738_s28 + $0x58] sm:$0xf] }
  0xa5   : > { %774 = vst.msk [vmem:[#allocation2 + $0x1c] sm:$0xf] %vm766_vm7, %v685_v45  ;;  %v683_v49 = vpop.permute.xlu0 %682  ;;  %v699_v52 = vpop.permute.xlu2 %698  ;;  %v993_v45 = vrot.slane %v991_v19, 4  ;;  %v1002_v50 = vsel %vm4924_vm6, %v1000_v38, %v1001_v39  ;;  %v4101_v19 = vld [vmem:[%s4738_s28 + $0x40] sm:$0xf] }
  0xa6   : > { %773 = vst.msk [vmem:[#allocation2 + $0x18] sm:$0xf] %vm766_vm7, %v683_v49  ;;  %v197_v49 = vld [vmem:[%s4738_s28 + $0xa0] sm:$0xf]  ;;  %v4110_v38 = vld [vmem:[%s4738_s28 + $0x78] sm:$0xf] }
  0xa7   : > { %781 = vst.msk [vmem:[#allocation2 + $0x38] sm:$0xf] %vm766_vm7, %v699_v52  ;;  %v1005_v52 = vrot.slane %v845_v43, 5  ;;  %v4109_v39 = vld [vmem:[%s4738_s28 + $0x70] sm:$0xf] }
  0xa8   : > { %230 = vst.msk [vmem:[#allocation2 + $0x6c] sm:$0xf] %vm202_vm5, %v197_v49  ;;  %v4108_v40 = vld [vmem:[%s4738_s28 + $0x6c] sm:$0xf] }
  0xa9   : > { %v1007_v57 = vrot.slane %v1005_v52, 4  ;;  %v1006_v3 = vsel %vm4924_vm6, %v4091_v60, %v1005_v52  ;;  %v4114_v52 = vld [vmem:[%s4738_s28 + $0x90] sm:$0xf]  ;;  %v4119_v60 = vld [vmem:[%s4738_s28 + $0xac] sm:$0xf] }
  0xaa   : > { %1050 = vrot.lane.b32.xlu1 %v971_v54, %s4656_s30  ;;  %v995_v54 = vsel %vm4924_vm6, %v993_v45, %v994_v46  ;;  %v4112_v45 = vld [vmem:[%s4738_s28 + $0x84] sm:$0xf]  ;;  %v4111_v46 = vld [vmem:[%s4738_s28 + $0x7c] sm:$0xf] }
  0xab   : > { %1048 = vrot.lane.b32.xlu0 %v967_v56, %s4656_s30  ;;  %1046 = vrot.lane.b32.xlu2 %v964_v59, %s4656_s30  ;;  %v1009_v2 = vsel %vm4924_vm6, %v1007_v57, %v1008_v58  ;;  %v1391_v58 = vshll.u32 %v4125_v53, 16 }
  0xac   : > { %v691_v0 = vpop.permute.xlu1 %690 }
  0xad   : > { %777 = vst.msk [vmem:[#allocation2 + $0x28] sm:$0xf] %vm766_vm7, %v691_v0  ;;  %v689_v4 = vpop.permute.xlu0 %688  ;;  %v705_v8 = vpop.permute.xlu2 %704  ;;  %v4092_v0 = vld [vmem:[%s4738_s28 + $0xc] sm:$0xf] }
  0xae   : > { %776 = vst.msk [vmem:[#allocation2 + $0x24] sm:$0xf] %vm766_vm7, %v689_v4 }
  0xaf   : > { %784 = vst.msk [vmem:[#allocation2 + $0x44] sm:$0xf] %vm766_vm7, %v705_v8  ;;  %v4094_v8 = vld [vmem:[%s4738_s28 + $0x18] sm:$0xf] }
  0xb2   : > { %1056 = vrot.lane.b32.xlu1 %v981_v10, %s4656_s30 }
  0xb3   : > { %1054 = vrot.lane.b32.xlu0 %v978_v12, %s4656_s30  ;;  %1052 = vrot.lane.b32.xlu2 %v974_v16, %s4656_s30 }
  0xb4   : > { %v697_v21 = vpop.permute.xlu1 %696 }
  0xb5   : > { %780 = vst.msk [vmem:[#allocation2 + $0x34] sm:$0xf] %vm766_vm7, %v697_v21  ;;  %v695_v26 = vpop.permute.xlu0 %694  ;;  %v711_v29 = vpop.permute.xlu2 %710  ;;  %v4099_v21 = vld [vmem:[%s4738_s28 + $0x34] sm:$0xf] }
  0xb6   : > { %779 = vst.msk [vmem:[#allocation2 + $0x30] sm:$0xf] %vm766_vm7, %v695_v26  ;;  %v4104_v26 = vld [vmem:[%s4738_s28 + $0x54] sm:$0xf] }
  0xb7   : > { %787 = vst.msk [vmem:[#allocation2 + $0x50] sm:$0xf] %vm766_vm7, %v711_v29 }
  0xba   : > { %1062 = vrot.lane.b32.xlu1 %v992_v31, %s4656_s30 }
  0xbb   : > { %1060 = vrot.lane.b32.xlu0 %v988_v33, %s4656_s30  ;;  %1058 = vrot.lane.b32.xlu2 %v985_v36, %s4656_s30  ;;  %v4106_v33 = vld [vmem:[%s4738_s28 + $0x60] sm:$0xf] }
  0xbc   : > { %v703_v41 = vpop.permute.xlu1 %702 }
  0xbd   : > { %783 = vst.msk [vmem:[#allocation2 + $0x40] sm:$0xf] %vm766_vm7, %v703_v41  ;;  %v701_v44 = vpop.permute.xlu0 %700  ;;  %v717_v48 = vpop.permute.xlu2 %716 }
  0xbe   : > { %782 = vst.msk [vmem:[#allocation2 + $0x3c] sm:$0xf] %vm766_vm7, %v701_v44  ;;  %v4113_v44 = vld [vmem:[%s4738_s28 + $0x88] sm:$0xf] }
  0xbf   : > { %790 = vst.msk [vmem:[#allocation2 + $0x5c] sm:$0xf] %vm766_vm7, %v717_v48 }
  0xc2   : > { %1068 = vrot.lane.b32.xlu1 %v1002_v50, %s4656_s30  ;;  %v4116_v50 = vld [vmem:[%s4738_s28 + $0x9c] sm:$0xf] }
  0xc3   : > { %1066 = vrot.lane.b32.xlu0 %v999_v51, %s4656_s30  ;;  %1064 = vrot.lane.b32.xlu2 %v995_v54, %s4656_s30  ;;  %v4115_v51 = vld [vmem:[%s4738_s28 + $0x94] sm:$0xf] }
  0xc4   : > { %v709_v56 = vpop.permute.xlu1 %708 }
  0xc5   : > { %786 = vst.msk [vmem:[#allocation2 + $0x4c] sm:$0xf] %vm766_vm7, %v709_v56  ;;  %v707_v59 = vpop.permute.xlu0 %706  ;;  %v723_v62 = vpop.permute.xlu2 %722  ;;  %v4124_v56 = vld [vmem:[%s4738_s28 + $0xc] sm:$0xf] }
  0xc6   : > { %785 = vst.msk [vmem:[#allocation2 + $0x48] sm:$0xf] %vm766_vm7, %v707_v59  ;;  %v1395_v59 = vshrl.u32 %v4125_v53, 16  ;;  %v1385_v63 = vshll.u32 %v4124_v56, 16  ;;  %v4123_v53 = vld [vmem:[%s4738_s28 + $0xc4] sm:$0xf] }
  0xc7   : > { %793 = vst.msk [vmem:[#allocation2 + $0x68] sm:$0xf] %vm766_vm7, %v723_v62  ;;  %v1382_v62 = vshrl.u32 %v4124_v56, 16 }
  0xca   : > { %1204 = vrot.lane.b32.xlu1 %v4092_v0, %s4657_s4  ;;  %v4117_v0 = vld [vmem:[%s4738_s28 + $0xa0] sm:$0xf] }
  0xcb   : > { %1072 = vrot.lane.b32.xlu0 %v1009_v2, %s4656_s30  ;;  %1070 = vrot.lane.b32.xlu2 %v1006_v3, %s4656_s30  ;;  %v5236_v2 = vrot.slane %v1391_v58, 5  ;;  %v1397_v3 = vrot.slane %v1395_v59, 4 }
  0xcc   : > { %v715_v4 = vpop.permute.xlu1 %714 }
  0xcd   : > { %789 = vst.msk [vmem:[#allocation2 + $0x58] sm:$0xf] %vm766_vm7, %v715_v4  ;;  %v713_v5 = vpop.permute.xlu0 %712  ;;  %v729_v6 = vpop.permute.xlu2 %728  ;;  %v4126_v4 = vld [vmem:[%s4738_s28 + $0x14] sm:$0x1] }
  0xce   : > { %788 = vst.msk [vmem:[#allocation2 + $0x54] sm:$0xf] %vm766_vm7, %v713_v5 }
  0xcf   : > { %796 = vst.msk [vmem:[#allocation2 + $0x74] sm:$0xf] %vm766_vm7, %v729_v6  ;;  %v1384_v6 = vrot.slane %v1382_v62, 4  ;;  %v4139_v62 = vld [vmem:[%s4738_s28 + $0x48] sm:$0xf] }
  0xd2   : > { %1210 = vrot.lane.b32.xlu1 %v4095_v7, %s4657_s4  ;;  %v1387_v7 = vrot.slane %v1385_v63, 5 }
  0xd3   : > { %1208 = vrot.lane.b32.xlu0 %v4094_v8, %s4657_s4  ;;  %1206 = vrot.lane.b32.xlu2 %v4093_v9, %s4657_s4  ;;  %v4130_v8 = vld [vmem:[%s4738_s28 + $0x24] sm:$0xf] }
  0xd4   : > { %v721_v10 = vpop.permute.xlu1 %720 }
  0xd5   : > { %792 = vst.msk [vmem:[#allocation2 + $0x64] sm:$0xf] %vm766_vm7, %v721_v10  ;;  %v719_v11 = vpop.permute.xlu0 %718  ;;  %v1011_v12 = vpop.permute.xlu2 %1010  ;;  %v4128_v10 = vld [vmem:[%s4738_s28 + $0x1c] sm:$0xf] }
  0xd6   : > { %791 = vst.msk [vmem:[#allocation2 + $0x60] sm:$0xf] %vm766_vm7, %v719_v11  ;;  %v1398_v11 = vor.u32 %v1397_v3, %v5236_v2  ;;  %v4137_v3 = vld [vmem:[%s4738_s28 + $0x40] sm:$0xf] }
  0xd7   : > { %1107 = vst.msk [vmem:[#allocation2] sm:$0xf] %vm1106_vm8, %v1011_v12  ;;  %v1401_v12 = vshll.u32 %v4126_v4, 16 }
  0xda   : > { %1216 = vrot.lane.b32.xlu1 %v4098_v13, %s4657_s4 }
  0xdb   : > { %1214 = vrot.lane.b32.xlu0 %v4097_v14, %s4657_s4  ;;  %1212 = vrot.lane.b32.xlu2 %v4096_v15, %s4657_s4  ;;  %v4127_v14 = vld [vmem:[%s4738_s28 + $0x18] sm:$0xf]  ;;  %v4122_v15 = vld [vmem:[%s4738_s28 + $0xc0] sm:$0xf] }
  0xdc   : > { %v727_v16 = vpop.permute.xlu1 %726 }
  0xdd   : > { %795 = vst.msk [vmem:[#allocation2 + $0x70] sm:$0xf] %vm766_vm7, %v727_v16  ;;  %v725_v17 = vpop.permute.xlu0 %724  ;;  %v1017_v18 = vpop.permute.xlu2 %1016  ;;  %v1430_v16 = vshrl.u32 %v4130_v8, 16 }
  0xde   : > { %794 = vst.msk [vmem:[#allocation2 + $0x6c] sm:$0xf] %vm766_vm7, %v725_v17  ;;  %v1433_v17 = vshll.u32 %v4130_v8, 16 }
  0xdf   : > { %1110 = vst.msk [vmem:[#allocation2 + $0xc] sm:$0xf] %vm1106_vm8, %v1017_v18  ;;  %v4121_v18 = vld [vmem:[%s4738_s28 + $0xb8] sm:$0xf] }
  0xe2   : > { %1222 = vrot.lane.b32.xlu1 %v4101_v19, %s4657_s4  ;;  %v1388_v19 = vor.u32 %v1387_v7, %v1384_v6  ;;  %v4136_v7 = vld [vmem:[%s4738_s28 + $0x3c] sm:$0xf] }
  0xe3   : > { %1220 = vrot.lane.b32.xlu0 %v4100_v20, %s4657_s4  ;;  %1218 = vrot.lane.b32.xlu2 %v4099_v21, %s4657_s4  ;;  %v1415_v20 = vshll.u32 %v4128_v10, 16  ;;  %v1419_v21 = vshrl.u32 %v4128_v10, 16 }
  0xe4   : > { %v733_v22 = vpop.permute.xlu1 %732 }
  0xe5   : > { %798 = vst.msk [vmem:[#allocation2 + $0x7c] sm:$0xf] %vm766_vm7, %v733_v22  ;;  %v731_v23 = vpop.permute.xlu0 %730  ;;  %v1023_v24 = vpop.permute.xlu2 %1022  ;;  %v4120_v22 = vld [vmem:[%s4738_s28 + $0xb4] sm:$0xf] }
  0xe6   : > { %797 = vst.msk [vmem:[#allocation2 + $0x78] sm:$0xf] %vm766_vm7, %v731_v23  ;;  %v1406_v23 = vshrl.u32 %v4127_v14, 16 }
  0xe7   : > { %1113 = vst.msk [vmem:[#allocation2 + $0x18] sm:$0xf] %vm1106_vm8, %v1023_v24  ;;  %v1409_v24 = vshll.u32 %v4127_v14, 16 }
  0xea   : > { %1228 = vrot.lane.b32.xlu1 %v4104_v26, %s4657_s4  ;;  %v1399_v26 = vrot.slane %v1398_v11, 4 }
  0xeb   : > { %1226 = vrot.lane.b32.xlu0 %v4103_v27, %s4657_s4  ;;  %1224 = vrot.lane.b32.xlu2 %v4102_v28, %s4657_s4  ;;  %v1403_v27 = vrot.slane %v1401_v12, 5  ;;  %v1432_v28 = vrot.slane %v1430_v16, 4  ;;  %v1502_v12 = vshrl.u32 %v4139_v62, 16  ;;  %v1487_v16 = vshll.u32 %v4137_v3, 16 }
  0xec   : > { %v1015_v29 = vpop.permute.xlu1 %1014 }
  0xed   : > { %1109 = vst.msk [vmem:[#allocation2 + $0x8] sm:$0xf] %vm1106_vm8, %v1015_v29  ;;  %v1013_v30 = vpop.permute.xlu0 %1012  ;;  %v1029_v31 = vpop.permute.xlu2 %1028  ;;  %v1435_v29 = vrot.slane %v1433_v17, 5  ;;  %v1491_v17 = vshrl.u32 %v4137_v3, 16 }
  0xee   : > { %1108 = vst.msk [vmem:[#allocation2 + $0x4] sm:$0xf] %vm1106_vm8, %v1013_v30  ;;  %v4134_v30 = vld [vmem:[%s4738_s28 + $0x34] sm:$0xf] }
  0xef   : > { %1116 = vst.msk [vmem:[#allocation2 + $0x24] sm:$0xf] %vm1106_vm8, %v1029_v31  ;;  %v4133_v31 = vld [vmem:[%s4738_s28 + $0x30] sm:$0xf] }
  0xf2   : > { %1234 = vrot.lane.b32.xlu1 %v4107_v32, %s4657_s4 }
  0xf3   : > { %1232 = vrot.lane.b32.xlu0 %v4106_v33, %s4657_s4  ;;  %1230 = vrot.lane.b32.xlu2 %v4105_v34, %s4657_s4  ;;  %v1389_v33 = vrot.slane %v1388_v19, 4  ;;  %v4131_v34 = vld [vmem:[%s4738_s28 + $0x28] sm:$0xf]  ;;  %v4143_v19 = vld [vmem:[%s4738_s28 + $0x58] sm:$0xf] }
  0xf4   : > { %v1021_v35 = vpop.permute.xlu1 %1020 }
  0xf5   : > { %1112 = vst.msk [vmem:[#allocation2 + $0x14] sm:$0xf] %vm1106_vm8, %v1021_v35  ;;  %v1019_v36 = vpop.permute.xlu0 %1018  ;;  %v1035_v37 = vpop.permute.xlu2 %1034  ;;  %v5257_v35 = vrot.slane %v1415_v20, 5  ;;  %v1478_v20 = vshrl.u32 %v4136_v7, 16 }
  0xf6   : > { %1111 = vst.msk [vmem:[#allocation2 + $0x10] sm:$0xf] %vm1106_vm8, %v1019_v36  ;;  %v1421_v36 = vrot.slane %v1419_v21, 4  ;;  %v1481_v21 = vshll.u32 %v4136_v7, 16  ;;  %v4146_v7 = vld [vmem:[%s4738_s28 + $0x64] sm:$0xf] }
  0xf7   : > { %1119 = vst.msk [vmem:[#allocation2 + $0x30] sm:$0xf] %vm1106_vm8, %v1035_v37 }
  0xfa   : > { %1240 = vrot.lane.b32.xlu1 %v4110_v38, %s4657_s4  ;;  %v4129_v38 = vld [vmem:[%s4738_s28 + $0x20] sm:$0x1] }
  0xfb   : > { %1238 = vrot.lane.b32.xlu0 %v4109_v39, %s4657_s4  ;;  %1236 = vrot.lane.b32.xlu2 %v4108_v40, %s4657_s4  ;;  %v1408_v39 = vrot.slane %v1406_v23, 4  ;;  %v1411_v40 = vrot.slane %v1409_v24, 5 }
  0xfc   : > { %v1027_v41 = vpop.permute.xlu1 %1026 }
  0xfd   : > { %1115 = vst.msk [vmem:[#allocation2 + $0x20] sm:$0xf] %vm1106_vm8, %v1027_v41  ;;  %v1025_v42 = vpop.permute.xlu0 %1024  ;;  %v1041_v43 = vpop.permute.xlu2 %1040 }
  0xfe   : > { %1114 = vst.msk [vmem:[#allocation2 + $0x1c] sm:$0xf] %vm1106_vm8, %v1025_v42  ;;  %v1463_v42 = vshll.u32 %v4134_v30, 16 }
  0xff   : > { %1122 = vst.msk [vmem:[#allocation2 + $0x3c] sm:$0xf] %vm1106_vm8, %v1041_v43  ;;  %v1467_v43 = vshrl.u32 %v4134_v30, 16  ;;  %v1504_v30 = vrot.slane %v1502_v12, 4 }
 0x101   : > { %v1469_v56 = vrot.slane %v1467_v43, 4 }
 0x102   : > { %1246 = vrot.lane.b32.xlu1 %v4113_v44, %s4657_s4  ;;  %v1454_v44 = vshrl.u32 %v4133_v31, 16 }
 0x103   : > { %1244 = vrot.lane.b32.xlu0 %v4112_v45, %s4657_s4  ;;  %1242 = vrot.lane.b32.xlu2 %v4111_v46, %s4657_s4  ;;  %v1457_v45 = vshll.u32 %v4133_v31, 16  ;;  %v1404_v46 = vsel %vm4749_vm2, %v1399_v26, %v1403_v27 }
 0x104   : > { %v1033_v47 = vpop.permute.xlu1 %1032 }
 0x105   : > { %1118 = vst.msk [vmem:[#allocation2 + $0x2c] sm:$0xf] %vm1106_vm8, %v1033_v47  ;;  %v1031_v48 = vpop.permute.xlu0 %1030  ;;  %v1047_v49 = vpop.permute.xlu2 %1046  ;;  %v1436_v47 = vor.u32 %v1435_v29, %v1432_v28  ;;  %v1459_v58 = vrot.slane %v1457_v45, 5  ;;  %v4140_v29 = vld [vmem:[%s4738_s28 + $0x4c] sm:$0xf] }
 0x106   : > { %1117 = vst.msk [vmem:[#allocation2 + $0x28] sm:$0xf] %vm1106_vm8, %v1031_v48  ;;  %v1439_v48 = vshll.u32 %v4131_v34, 16 }
 0x107   : > { %1125 = vst.msk [vmem:[#allocation2 + $0x48] sm:$0xf] %vm1106_vm8, %v1047_v49  ;;  %v1394_v49 = vsel %vm4749_vm2, %v1389_v33, %v5236_v2  ;;  %v1437_v59 = vrot.slane %v1436_v47, 4  ;;  %v5296_v33 = vrot.slane %v1487_v16, 5 }
 0x10a   : > { %1252 = vrot.lane.b32.xlu1 %v4116_v50, %s4657_s4  ;;  %v1422_v50 = vor.u32 %v1421_v36, %v5257_v35  ;;  %v1535_v36 = vshll.u32 %v4143_v19, 16 }
 0x10b   : > { %1250 = vrot.lane.b32.xlu0 %v4115_v51, %s4657_s4  ;;  %1248 = vrot.lane.b32.xlu2 %v4114_v52, %s4657_s4  ;;  %v1425_v51 = vshll.u32 %v4129_v38, 16  ;;  %v1443_v52 = vshrl.u32 %v4131_v34, 16  ;;  %v1493_v34 = vrot.slane %v1491_v17, 4  ;;  %v4142_v38 = vld [vmem:[%s4738_s28 + $0x54] sm:$0xf]  ;;  %v1559_v17 = vshll.u32 %v4146_v7, 16 }
 0x10c   : > { %v1039_v54 = vpop.permute.xlu1 %1038 }
 0x10d   : > { %1121 = vst.msk [vmem:[#allocation2 + $0x38] sm:$0xf] %vm1106_vm8, %v1039_v54  ;;  %v1037_v55 = vpop.permute.xlu0 %1036  ;;  %v1053_v57 = vpop.permute.xlu2 %1052  ;;  %v1412_v54 = vor.u32 %v1411_v40, %v1408_v39  ;;  %v1427_v2 = vrot.slane %v1425_v51, 5  ;;  %v1445_v6 = vrot.slane %v1443_v52, 4  ;;  %v1480_v39 = vrot.slane %v1478_v20, 4 }
 0x10e   : > { %1120 = vst.msk [vmem:[#allocation2 + $0x34] sm:$0xf] %vm1106_vm8, %v1037_v55  ;;  %v5271_v55 = vrot.slane %v1463_v42, 5  ;;  %v1483_v40 = vrot.slane %v1481_v21, 5  ;;  %v1526_v51 = vshrl.u32 %v4142_v38, 16  ;;  %v5309_v52 = vrot.slane %v1535_v36, 5 }
 0x10f   : > { %1128 = vst.msk [vmem:[#allocation2 + $0x54] sm:$0xf] %vm1106_vm8, %v1053_v57  ;;  %v1456_v57 = vrot.slane %v1454_v44, 4 }
 0x110   : > { %v1470_v8 = vor.u32 %v1469_v56, %v5271_v55  ;;  %v1484_v56 = vor.u32 %v1483_v40, %v1480_v39 }
 0x111   : > { %v1460_v10 = vor.u32 %v1459_v58, %v1456_v57  ;;  %v1515_v57 = vshrl.u32 %v4140_v29, 16 }
 0x112   : > { %1258 = vrot.lane.b32.xlu1 %v4119_v60, %s4657_s4  ;;  %v1441_v60 = vrot.slane %v1439_v48, 5  ;;  %v1471_v26 = vrot.slane %v1470_v8, 4 }
 0x113   : > { %1256 = vrot.lane.b32.xlu0 %v4118_v61, %s4657_s4  ;;  %1254 = vrot.lane.b32.xlu2 %v4117_v0, %s4657_s4  ;;  %v4135_v61 = vld [vmem:[%s4738_s28 + $0x38] sm:$0x1]  ;;  %v1423_v0 = vrot.slane %v1422_v50, 4  ;;  %v1461_v28 = vrot.slane %v1460_v10, 4 }
 0x114   : > { %v1045_v5 = vpop.permute.xlu1 %1044  ;;  %v1442_v14 = vsel %vm4749_vm2, %v1437_v59, %v1441_v60  ;;  %v1446_v23 = vor.u32 %v1445_v6, %v1441_v60  ;;  %v4148_v60 = vld [vmem:[%s4738_s28 + $0x6c] sm:$0xf]  ;;  %v1485_v6 = vrot.slane %v1484_v56, 4 }
 0x115   : > { %1124 = vst.msk [vmem:[#allocation2 + $0x44] sm:$0xf] %vm1106_vm8, %v1045_v5  ;;  %v1043_v9 = vpop.permute.xlu0 %1042  ;;  %v1059_v13 = vpop.permute.xlu2 %1058  ;;  %v1413_v5 = vrot.slane %v1412_v54, 4  ;;  %v1466_v45 = vsel %vm4749_vm2, %v1461_v28, %v5271_v55  ;;  %v1529_v54 = vshll.u32 %v4142_v38, 16  ;;  %v4144_v55 = vld [vmem:[%s4738_s28 + $0x5c] sm:$0x1] }
 0x116   : > { %1123 = vst.msk [vmem:[#allocation2 + $0x40] sm:$0xf] %vm1106_vm8, %v1043_v9  ;;  %v1473_v9 = vshll.u32 %v4135_v61, 16  ;;  %v1447_v42 = vrot.slane %v1446_v23, 4  ;;  %v1577_v10 = vshll.u32 %v4148_v60, 16 }
 0x117   : > { %1131 = vst.msk [vmem:[#allocation2 + $0x60] sm:$0xf] %vm1106_vm8, %v1059_v13  ;;  %v4132_v13 = vld [vmem:[%s4738_s28 + $0x2c] sm:$0x1]  ;;  %v4147_v38 = vld [vmem:[%s4738_s28 + $0x68] sm:$0x1] }
 0x118   : > { %v1449_v24 = vshll.u32 %v4132_v13, 16  ;;  %v1475_v27 = vrot.slane %v1473_v9, 5  ;;  %v1574_v9 = vshrl.u32 %v4148_v60, 16  ;;  %v4141_v13 = vld [vmem:[%s4738_s28 + $0x50] sm:$0x1] }
 0x11a   : > { %1264 = vrot.lane.b32.xlu1 %v4122_v15, %s4657_s4  ;;  %v1505_v15 = vshll.u32 %v4139_v62, 16  ;;  %v1451_v43 = vrot.slane %v1449_v24, 5  ;;  %v1476_v44 = vsel %vm4749_vm2, %v1471_v26, %v1475_v27  ;;  %v1521_v24 = vshll.u32 %v4141_v13, 16 }
 0x11b   : > { %1262 = vrot.lane.b32.xlu0 %v4121_v18, %s4657_s4  ;;  %1260 = vrot.lane.b32.xlu2 %v4120_v22, %s4657_s4  ;;  %v1428_v18 = vsel %vm4749_vm2, %v1423_v0, %v1427_v2  ;;  %v1418_v22 = vsel %vm4749_vm2, %v1413_v5, %v5257_v35  ;;  %v1539_v35 = vshrl.u32 %v4143_v19, 16  ;;  %v1528_v0 = vrot.slane %v1526_v51, 4 }
 0x11c   : > { %v1051_v32 = vpop.permute.xlu1 %1050  ;;  %v1507_v31 = vrot.slane %v1505_v15, 5  ;;  %v1452_v58 = vsel %vm4749_vm2, %v1447_v42, %v1451_v43  ;;  %v1531_v5 = vrot.slane %v1529_v54, 5  ;;  %v1576_v28 = vrot.slane %v1574_v9, 4  ;;  %v4154_v9 = vld [vmem:[%s4738_s28 + $0x84] sm:$0xf] }
 0x11d   : > { %1127 = vst.msk [vmem:[#allocation2 + $0x50] sm:$0xf] %vm1106_vm8, %v1051_v32  ;;  %v1049_v37 = vpop.permute.xlu0 %1048  ;;  %v1065_v41 = vpop.permute.xlu2 %1064  ;;  %v4138_v32 = vld [vmem:[%s4738_s28 + $0x44] sm:$0x1] }
 0x11e   : > { %1126 = vst.msk [vmem:[#allocation2 + $0x4c] sm:$0xf] %vm1106_vm8, %v1049_v37  ;;  %v1508_v48 = vor.u32 %v1507_v31, %v1504_v30  ;;  %v1497_v50 = vshll.u32 %v4138_v32, 16  ;;  %v1532_v21 = vor.u32 %v1531_v5, %v1528_v0  ;;  %v5334_v30 = vrot.slane %v1559_v17, 5  ;;  %v4152_v32 = vld [vmem:[%s4738_s28 + $0x7c] sm:$0xf] }
 0x11f   : > { %1134 = vst.msk [vmem:[#allocation2 + $0x6c] sm:$0xf] %vm1106_vm8, %v1065_v41  ;;  %v4155_v5 = vld [vmem:[%s4738_s28 + $0x88] sm:$0xf] }
 0x120   : > { %v1509_v61 = vrot.slane %v1508_v48, 4 }
 0x122   : > { %1767 = vrot.lane.b32.xlu1 %v1404_v46, %s4658_s5  ;;  %v1511_v46 = vshll.u32 %v4140_v29, 16  ;;  %v1579_v29 = vrot.slane %v1577_v10, 5 }
 0x123   : > { %1765 = vrot.lane.b32.xlu0 %v1394_v49, %s4658_s5  ;;  %1266 = vrot.lane.b32.xlu2 %v4123_v53, %s4657_s4  ;;  %v1494_v49 = vor.u32 %v1493_v34, %v5296_v33  ;;  %v1541_v53 = vrot.slane %v1539_v35, 4  ;;  %v4151_v34 = vld [vmem:[%s4738_s28 + $0x78] sm:$0xf]  ;;  %v4149_v35 = vld [vmem:[%s4738_s28 + $0x70] sm:$0xf]  ;;  %s161_s4 = sand.u32 1, %s4645_s13  }
 0x124   : > { %v1057_v63 = vpop.permute.xlu1 %1056  ;;  %v1513_v59 = vrot.slane %v1511_v46, 5  ;;  %v1611_v46 = vshrl.u32 %v4152_v32, 16  ;;  %v1601_v48 = vshll.u32 %v4151_v34, 16  ;;  %v1587_v56 = vshrl.u32 %v4149_v35, 16  ;;  %s3993_s20 = scalar_lea.sflag [#allocation4], %s161_s4 }
 0x125   : > { %1130 = vst.msk [vmem:[#allocation2 + $0x5c] sm:$0xf] %vm1106_vm8, %v1057_v63  ;;  %v1055_v4 = vpop.permute.xlu0 %1054  ;;  %v1071_v11 = vpop.permute.xlu2 %1070  ;;  %v1495_v62 = vrot.slane %v1494_v49, 4  ;;  %v1499_v63 = vrot.slane %v1497_v50, 5  ;;  %v1542_v3 = vor.u32 %v1541_v53, %v5309_v52  ;;  %v1580_v49 = vor.u32 %v1579_v29, %v1576_v28 }
 0x126   : > { %1129 = vst.msk [vmem:[#allocation2 + $0x58] sm:$0xf] %vm1106_vm8, %v1055_v4  ;;  %v1545_v4 = vshll.u32 %v4144_v55, 16  ;;  %v1514_v15 = vsel %vm4749_vm2, %v1509_v61, %v1513_v59  ;;  %v1583_v50 = vshll.u32 %v4149_v35, 16  ;;  %v1569_v53 = vshll.u32 %v4147_v38, 16 }
 0x127   : > { %1137 = vst.msk [vmem:[#allocation2 + $0x78] sm:$0xf] %vm1106_vm8, %v1071_v11  ;;  %v1517_v11 = vrot.slane %v1515_v57, 4  ;;  %v1500_v16 = vsel %vm4749_vm2, %v1495_v62, %v1499_v63  ;;  %v1543_v19 = vrot.slane %v1542_v3, 4  ;;  %v1603_v61 = vrot.slane %v1601_v48, 5 }
 0x128   : > { %v1547_v20 = vrot.slane %v1545_v4, 5  ;;  %v1581_v62 = vrot.slane %v1580_v49, 4  ;;  %v1585_v63 = vrot.slane %v1583_v50, 5  ;;  %v1571_v0 = vrot.slane %v1569_v53, 5  ;;  %v4157_v4 = vld [vmem:[%s4738_s28 + $0x90] sm:$0xf] }
 0x129   : > { %v1518_v23 = vor.u32 %v1517_v11, %v1513_v59  ;;  %v1613_v59 = vrot.slane %v1611_v46, 4  ;;  %v1646_v17 = vshrl.u32 %v4157_v4, 16 }
 0x12a   : > { %1773 = vrot.lane.b32.xlu1 %v1442_v14, %s4658_s5  ;;  %v4145_v14 = vld [vmem:[%s4738_s28 + $0x60] sm:$0xf] }
 0x12b   : > { %1771 = vrot.lane.b32.xlu0 %v1428_v18, %s4658_s5  ;;  %1769 = vrot.lane.b32.xlu2 %v1418_v22, %s4658_s5  ;;  %v1563_v18 = vshrl.u32 %v4146_v7, 16  ;;  %v1490_v22 = vsel %vm4749_vm2, %v1485_v6, %v5296_v33  ;;  %v1550_v26 = vshrl.u32 %v4145_v14, 16  ;;  %v1553_v27 = vshll.u32 %v4145_v14, 16  ;;  %v4150_v14 = vld [vmem:[%s4738_s28 + $0x74] sm:$0x1] }
 0x12c   : > { %v1063_v37 = vpop.permute.xlu1 %1062  ;;  %v1548_v33 = vsel %vm4749_vm2, %v1543_v19, %v1547_v20  ;;  %v1519_v40 = vrot.slane %v1518_v23, 4  ;;  %v1631_v19 = vshll.u32 %v4155_v5, 16  ;;  %v1635_v20 = vshrl.u32 %v4155_v5, 16 }
 0x12d   : > { %1133 = vst.msk [vmem:[#allocation2 + $0x68] sm:$0xf] %vm1106_vm8, %v1063_v37  ;;  %v1061_v41 = vpop.permute.xlu0 %1060  ;;  %v1207_v47 = vpop.permute.xlu2 %1206  ;;  %v1565_v31 = vrot.slane %v1563_v18, 4  ;;  %v1533_v37 = vrot.slane %v1532_v21, 4  ;;  %v1552_v42 = vrot.slane %v1550_v26, 4  ;;  %v1555_v43 = vrot.slane %v1553_v27, 5 }
 0x12e   : > { %1132 = vst.msk [vmem:[#allocation2 + $0x64] sm:$0xf] %vm1106_vm8, %v1061_v41  ;;  %v1523_v41 = vrot.slane %v1521_v24, 5  ;;  %v1649_v18 = vshll.u32 %v4157_v4, 16  ;;  %v1622_v21 = vshrl.u32 %v4154_v9, 16  ;;  %v1593_v26 = vshll.u32 %v4150_v14, 16 }
 0x12f   : > { %1302 = vst.msk [vmem:[#allocation2 + $0x4] sm:$0xf] %vm1300_vm9, %v1207_v47  ;;  %v1598_v47 = vshrl.u32 %v4151_v34, 16  ;;  %v1566_v51 = vor.u32 %v1565_v31, %v5334_v30  ;;  %v1538_v54 = vsel %vm4749_vm2, %v1533_v37, %v5309_v52  ;;  %v1648_v31 = vrot.slane %v1646_v17, 4  ;;  %v4161_v34 = vld [vmem:[%s4738_s28 + $0xa0] sm:$0xf] }
 0x130   : > { %v1524_v57 = vsel %vm4749_vm2, %v1519_v40, %v1523_v41  ;;  %v4158_v37 = vld [vmem:[%s4738_s28 + $0x94] sm:$0xf]  ;;  %v5379_v35 = vrot.slane %v1631_v19, 5  ;;  %v1624_v38 = vrot.slane %v1622_v21, 4  ;;  %v4156_v41 = vld [vmem:[%s4738_s28 + $0x8c] sm:$0x1] }
 0x131   : > { %v1600_v60 = vrot.slane %v1598_v47, 4  ;;  %v1567_v52 = vrot.slane %v1566_v51, 4  ;;  %v1683_v46 = vshrl.u32 %v4161_v34, 16  ;;  %v1655_v51 = vshll.u32 %v4158_v37, 16  ;;  %v4159_v14 = vld [vmem:[%s4738_s28 + $0x98] sm:$0x1] }
 0x132   : > { %1779 = vrot.lane.b32.xlu1 %v1476_v44, %s4658_s5 }
 0x133   : > { %1777 = vrot.lane.b32.xlu0 %v1466_v45, %s4658_s5  ;;  %1775 = vrot.lane.b32.xlu2 %v1452_v58, %s4658_s5  ;;  %v1607_v45 = vshll.u32 %v4152_v32, 16  ;;  %v1556_v58 = vor.u32 %v1555_v43, %v1552_v42  ;;  %v1651_v32 = vrot.slane %v1649_v18, 5  ;;  %v1595_v43 = vrot.slane %v1593_v26, 5 }
 0x134   : > { %v1069_v2 = vpop.permute.xlu1 %1068 }
 0x135   : > { %1136 = vst.msk [vmem:[#allocation2 + $0x74] sm:$0xf] %vm1106_vm8, %v1069_v2  ;;  %v1067_v8 = vpop.permute.xlu0 %1066  ;;  %v1213_v12 = vpop.permute.xlu2 %1212  ;;  %v5353_v55 = vrot.slane %v1607_v45, 5  ;;  %v4153_v2 = vld [vmem:[%s4738_s28 + $0x80] sm:$0x1]  ;;  %v1557_v7 = vrot.slane %v1556_v58, 4  ;;  %v1652_v50 = vor.u32 %v1651_v32, %v1648_v31 }
 0x136   : > { %1135 = vst.msk [vmem:[#allocation2 + $0x70] sm:$0xf] %vm1106_vm8, %v1067_v8  ;;  %v1589_v8 = vrot.slane %v1587_v56, 4  ;;  %v1617_v11 = vshll.u32 %v4153_v2, 16  ;;  %v1679_v45 = vshll.u32 %v4161_v34, 16  ;;  %v1641_v56 = vshll.u32 %v4156_v41, 16 }
 0x137   : > { %1305 = vst.msk [vmem:[#allocation2 + $0x10] sm:$0xf] %vm1300_vm9, %v1213_v12  ;;  %v1614_v10 = vor.u32 %v1613_v59, %v5353_v55  ;;  %v1604_v12 = vor.u32 %v1603_v61, %v1600_v60  ;;  %v1562_v23 = vsel %vm4749_vm2, %v1557_v7, %v5334_v30  ;;  %v1637_v30 = vrot.slane %v1635_v20, 4  ;;  %v4162_v60 = vld [vmem:[%s4738_s28 + $0xa4] sm:$0x1] }
 0x138   : > { %v1590_v24 = vor.u32 %v1589_v8, %v1585_v63  ;;  %v1619_v28 = vrot.slane %v1617_v11, 5  ;;  %v1659_v58 = vshrl.u32 %v4158_v37, 16  ;;  %v5395_v61 = vrot.slane %v1679_v45, 5  ;;  %v4167_v32 = vld [vmem:[%s4738_s28 + $0xb8] sm:$0xf] }
 0x139   : > { %v1615_v27 = vrot.slane %v1614_v10, 4  ;;  %v1605_v29 = vrot.slane %v1604_v12, 4  ;;  %v1643_v4 = vrot.slane %v1641_v56, 5  ;;  %v1689_v8 = vshll.u32 %v4162_v60, 16 }
 0x13a   : > { %1785 = vrot.lane.b32.xlu1 %v1514_v15, %s4658_s5  ;;  %v1586_v15 = vsel %vm4749_vm2, %v1581_v62, %v1585_v63  ;;  %v1591_v42 = vrot.slane %v1590_v24, 4  ;;  %v1685_v62 = vrot.slane %v1683_v46, 4  ;;  %v1661_v10 = vrot.slane %v1659_v58, 4 }
 0x13b   : > { %1783 = vrot.lane.b32.xlu0 %v1500_v16, %s4658_s5  ;;  %1781 = vrot.lane.b32.xlu2 %v1490_v22, %s4658_s5  ;;  %v1572_v16 = vsel %vm4749_vm2, %v1567_v52, %v1571_v0  ;;  %v1625_v22 = vshll.u32 %v4154_v9, 16  ;;  %v1620_v49 = vsel %vm4749_vm2, %v1615_v27, %v1619_v28  ;;  %v1610_v53 = vsel %vm4749_vm2, %v1605_v29, %v5353_v55  ;;  %v4164_v9 = vld [vmem:[%s4738_s28 + $0xac] sm:$0xf] }
 0x13c   : > { %v1205_v36 = vpop.permute.xlu1 %1204  ;;  %v1596_v59 = vsel %vm4749_vm2, %v1591_v42, %v1595_v43  ;;  %v1653_v55 = vrot.slane %v1652_v50, 4  ;;  %v1657_v0 = vrot.slane %v1655_v51, 5  ;;  %v1686_v11 = vor.u32 %v1685_v62, %v5395_v61 }
 0x13d   : > { %1301 = vst.msk [vmem:[#allocation2] sm:$0xf] %vm1300_vm9, %v1205_v36  ;;  %v1073_v39 = vpop.permute.xlu0 %1072  ;;  %v1219_v44 = vpop.permute.xlu2 %1218  ;;  %v4160_v36 = vld [vmem:[%s4738_s28 + $0x9c] sm:$0xf]  ;;  %v1703_v21 = vshll.u32 %v4164_v9, 16  ;;  %v1665_v24 = vshll.u32 %v4159_v14, 16 }
 0x13e   : > { %1138 = vst.msk [vmem:[#allocation2 + $0x7c] sm:$0xf] %vm1106_vm8, %v1073_v39  ;;  %v1627_v39 = vrot.slane %v1625_v22, 5  ;;  %v1670_v47 = vshrl.u32 %v4160_v36, 16  ;;  %v1673_v48 = vshll.u32 %v4160_v36, 16  ;;  %v1707_v22 = vshrl.u32 %v4164_v9, 16 }
 0x13f   : > { %1308 = vst.msk [vmem:[#allocation2 + $0x1c] sm:$0xf] %vm1300_vm9, %v1219_v44  ;;  %v1687_v28 = vrot.slane %v1686_v11, 4  ;;  %v1691_v29 = vrot.slane %v1689_v8, 5  ;;  %v1667_v42 = vrot.slane %v1665_v24, 5  ;;  %v1731_v58 = vshrl.u32 %v4167_v32, 16 }
 0x140   : > { %v1672_v63 = vrot.slane %v1670_v47, 4  ;;  %v1675_v52 = vrot.slane %v1673_v48, 5  ;;  %v4173_v24 = vld [vmem:[%s4738_s28 + $0x10] sm:$0xf] }
 0x141   : > { %v1692_v45 = vsel %vm4749_vm2, %v1687_v28, %v1691_v29  ;;  %v1733_v8 = vrot.slane %v1731_v58, 4 }
 0x142   : > { %1791 = vrot.lane.b32.xlu1 %v1548_v33, %s4658_s5  ;;  %v1676_v12 = vor.u32 %v1675_v52, %v1672_v63 }
 0x143   : > { %1789 = vrot.lane.b32.xlu0 %v1538_v54, %s4658_s5  ;;  %1787 = vrot.lane.b32.xlu2 %v1524_v57, %s4658_s5  ;;  %v1638_v54 = vor.u32 %v1637_v30, %v5379_v35  ;;  %v1628_v57 = vor.u32 %v1627_v39, %v1624_v38  ;;  %v1709_v30 = vrot.slane %v1707_v22, 4  ;;  %v4170_v38 = vld [vmem:[%s4738_s28 + $0xc4] sm:$0xf]  ;;  %v4169_v39 = vld [vmem:[%s4738_s28 + $0xc0] sm:$0xf] }
 0x144   : > { %v1211_v3 = vpop.permute.xlu1 %1210  ;;  %v1677_v31 = vrot.slane %v1676_v12, 4  ;;  %v1751_v50 = vshll.u32 %v4170_v38, 16  ;;  %v1755_v51 = vshrl.u32 %v4170_v38, 16  ;;  %v1742_v56 = vshrl.u32 %v4169_v39, 16 }
 0x145   : > { %1304 = vst.msk [vmem:[#allocation2 + $0xc] sm:$0xf] %vm1300_vm9, %v1211_v3  ;;  %v1209_v6 = vpop.permute.xlu0 %1208  ;;  %v1225_v13 = vpop.permute.xlu2 %1224  ;;  %v1639_v3 = vrot.slane %v1638_v54, 4  ;;  %v1629_v5 = vrot.slane %v1628_v57, 4  ;;  %v1745_v57 = vshll.u32 %v4169_v39, 16 }
 0x146   : > { %1303 = vst.msk [vmem:[#allocation2 + $0x8] sm:$0xf] %vm1300_vm9, %v1209_v6  ;;  %v4166_v6 = vld [vmem:[%s4738_s28 + $0xb4] sm:$0xf]  ;;  %v1682_v46 = vsel %vm4749_vm2, %v1677_v31, %v5395_v61  ;;  %v1753_v63 = vrot.slane %v1751_v50, 5  ;;  %v1757_v52 = vrot.slane %v1755_v51, 4 }
 0x147   : > { %1311 = vst.msk [vmem:[#allocation2 + $0x28] sm:$0xf] %vm1300_vm9, %v1225_v13  ;;  %v1718_v17 = vshrl.u32 %v4166_v6, 16  ;;  %v1721_v18 = vshll.u32 %v4166_v6, 16  ;;  %v1644_v19 = vsel %vm4749_vm2, %v1639_v3, %v1643_v4  ;;  %v1634_v20 = vsel %vm4749_vm2, %v1629_v5, %v5379_v35  ;;  %v4171_v3 = vld [vmem:[%s4738_s28 + $0xc8] sm:$0x1] }
 0x148   : > { %v1705_v35 = vrot.slane %v1703_v21, 5  ;;  %v1744_v4 = vrot.slane %v1742_v56, 4  ;;  %v1747_v5 = vrot.slane %v1745_v57, 5  ;;  %v1758_v12 = vor.u32 %v1757_v52, %v1753_v63  ;;  %v4178_v50 = vld [vmem:[%s4738_s28 + $0x24] sm:$0xe] }
 0x149   : > { %v1720_v34 = vrot.slane %v1718_v17, 4  ;;  %v1723_v36 = vrot.slane %v1721_v18, 5  ;;  %v4222_v58 = vrot.slane %v4178_v50, 9 }
 0x14a   : > { %1797 = vrot.lane.b32.xlu1 %v1586_v15, %s4658_s5  ;;  %v4163_v15 = vld [vmem:[%s4738_s28 + $0xa8] sm:$0xf] }
 0x14b   : > { %1795 = vrot.lane.b32.xlu0 %v1572_v16, %s4658_s5  ;;  %1793 = vrot.lane.b32.xlu2 %v1562_v23, %s4658_s5  ;;  %v1658_v16 = vsel %vm4749_vm2, %v1653_v55, %v1657_v0  ;;  %v1662_v23 = vor.u32 %v1661_v10, %v1657_v0  ;;  %v1694_v26 = vshrl.u32 %v4163_v15, 16  ;;  %v1697_v27 = vshll.u32 %v4163_v15, 16  ;;  %v4168_v10 = vld [vmem:[%s4738_s28 + $0xbc] sm:$0x1] }
 0x14c   : > { %v1217_v33 = vpop.permute.xlu1 %1216  ;;  %v1724_v48 = vor.u32 %v1723_v36, %v1720_v34  ;;  %v1748_v15 = vor.u32 %v1747_v5, %v1744_v4  ;;  %v1737_v18 = vshll.u32 %v4168_v10, 16  ;;  %v4176_v34 = vld [vmem:[%s4738_s28 + $0x1c] sm:$0xf]  ;;  %v1992_v36 = vrot.slane %v4173_v24, 5  ;;  %v4183_v4 = vld [vmem:[%s4738_s28 + $0x38] sm:$0x1] }
 0x14d   : > { %1307 = vst.msk [vmem:[#allocation2 + $0x18] sm:$0xf] %vm1300_vm9, %v1217_v33  ;;  %v1215_v40 = vpop.permute.xlu0 %1214  ;;  %v1231_v44 = vpop.permute.xlu2 %1230  ;;  %v4165_v33 = vld [vmem:[%s4738_s28 + $0xb0] sm:$0x1]  ;;  %v1663_v41 = vrot.slane %v1662_v23, 4  ;;  %v1696_v43 = vrot.slane %v1694_v26, 4 }
 0x14e   : > { %1306 = vst.msk [vmem:[#allocation2 + $0x14] sm:$0xf] %vm1300_vm9, %v1215_v40  ;;  %v1713_v54 = vshll.u32 %v4165_v33, 16  ;;  %v1725_v61 = vrot.slane %v1724_v48, 4  ;;  %v1749_v22 = vrot.slane %v1748_v15, 4  ;;  %v1999_v38 = vrot.slane %v4176_v34, 5 }
 0x14f   : > { %1314 = vst.msk [vmem:[#allocation2 + $0x34] sm:$0xf] %vm1300_vm9, %v1231_v44  ;;  %v1699_v44 = vrot.slane %v1697_v27, 5  ;;  %v1739_v27 = vrot.slane %v1737_v18, 5  ;;  %v4174_v33 = vld [vmem:[%s4738_s28 + $0x14] sm:$0x1] }
 0x150   : > { %v1754_v31 = vsel %vm4749_vm2, %v1749_v22, %v1753_v63  ;;  %v4186_v22 = vld [vmem:[%s4738_s28 + $0x44] sm:$0x1] }
 0x151   : > { %v1700_v60 = vor.u32 %v1699_v44, %v1696_v43 }
 0x152   : > { %1803 = vrot.lane.b32.xlu1 %v1620_v49, %s4658_s5  ;;  %v1727_v49 = vshll.u32 %v4167_v32, 16  ;;  %v4175_v32 = vld [vmem:[%s4738_s28 + $0x18] sm:$0xe] }
 0x153   : > { %1801 = vrot.lane.b32.xlu0 %v1610_v53, %s4658_s5  ;;  %1799 = vrot.lane.b32.xlu2 %v1596_v59, %s4658_s5  ;;  %v1710_v53 = vor.u32 %v1709_v30, %v1705_v35  ;;  %v1668_v59 = vsel %vm4749_vm2, %v1663_v41, %v1667_v42  ;;  %v4221_v30 = vrot.slane %v4175_v32, 9  ;;  %v1995_v41 = vrot.slane %v4174_v33, 5  ;;  %v4179_v42 = vld [vmem:[%s4738_s28 + $0x28] sm:$0xf] }
 0x154   : > { %v1223_v2 = vpop.permute.xlu1 %1222  ;;  %v1729_v62 = vrot.slane %v1727_v49, 5  ;;  %v4180_v49 = vld [vmem:[%s4738_s28 + $0x2c] sm:$0x1]  ;;  %v2023_v32 = vrot.slane %v4186_v22, 5 }
 0x155   : > { %1310 = vst.msk [vmem:[#allocation2 + $0x24] sm:$0xf] %vm1300_vm9, %v1223_v2  ;;  %v1221_v7 = vpop.permute.xlu0 %1220  ;;  %v1237_v13 = vpop.permute.xlu2 %1236  ;;  %v1711_v0 = vrot.slane %v1710_v53, 4  ;;  %v1715_v2 = vrot.slane %v1713_v54, 5  ;;  %v4177_v53 = vld [vmem:[%s4738_s28 + $0x20] sm:$0x1] }
 0x156   : > { %1309 = vst.msk [vmem:[#allocation2 + $0x20] sm:$0xf] %vm1300_vm9, %v1221_v7  ;;  %v1701_v7 = vrot.slane %v1700_v60, 4  ;;  %v1730_v11 = vsel %vm4749_vm2, %v1725_v61, %v1729_v62  ;;  %v1734_v17 = vor.u32 %v1733_v8, %v1729_v62  ;;  %v2009_v56 = vrot.slane %v4180_v49, 5  ;;  %v4182_v60 = vld [vmem:[%s4738_s28 + $0x34] sm:$0xf] }
 0x157   : > { %1317 = vst.msk [vmem:[#allocation2 + $0x40] sm:$0xf] %vm1300_vm9, %v1237_v13  ;;  %v1761_v13 = vshll.u32 %v4171_v3, 16  ;;  %v1716_v14 = vsel %vm4749_vm2, %v1711_v0, %v1715_v2  ;;  %v2001_v61 = vrot.slane %v1999_v38, 4  ;;  %v2002_v62 = vrot.slane %v4177_v53, 5 }
 0x158   : > { %v1735_v26 = vrot.slane %v1734_v17, 4  ;;  %v4184_v0 = vld [vmem:[%s4738_s28 + $0x3c] sm:$0xe]  ;;  %v4185_v2 = vld [vmem:[%s4738_s28 + $0x40] sm:$0xf]  ;;  %v2013_v3 = vrot.slane %v4182_v60, 5 }
 0x159   : > { %v2003_v5 = vsel %vm4924_vm6, %v2001_v61, %v2002_v62  ;;  %v2020_v8 = vrot.slane %v4185_v2, 5 }
 0x15a   : > { %1809 = vrot.lane.b32.xlu1 %v1658_v16, %s4658_s5  ;;  %v1706_v16 = vsel %vm4749_vm2, %v1701_v7, %v1705_v35  ;;  %v4172_v35 = vld [vmem:[%s4738_s28 + $0xc] sm:$0xe]  ;;  %v4224_v7 = vrot.slane %v4184_v0, 9  ;;  %v2015_v10 = vrot.slane %v2013_v3, 4 }
 0x15b   : > { %1807 = vrot.lane.b32.xlu0 %v1644_v19, %s4658_s5  ;;  %1805 = vrot.lane.b32.xlu2 %v1634_v20, %s4658_s5  ;;  %v1759_v19 = vrot.slane %v1758_v12, 4  ;;  %v1763_v20 = vrot.slane %v1761_v13, 5  ;;  %v4220_v44 = vrot.slane %v4172_v35, 9  ;;  %v4188_v12 = vld [vmem:[%s4738_s28 + $0x4c] sm:$0xf] }
 0x15c   : > { %v1229_v37 = vpop.permute.xlu1 %1228  ;;  %v2027_v17 = vrot.slane %v4188_v12, 5  ;;  %v4194_v35 = vld [vmem:[%s4738_s28 + $0x64] sm:$0xf] }
 0x15d   : > { %1313 = vst.msk [vmem:[#allocation2 + $0x30] sm:$0xf] %vm1300_vm9, %v1229_v37  ;;  %v1227_v40 = vpop.permute.xlu0 %1226  ;;  %v1243_v47 = vpop.permute.xlu2 %1242  ;;  %v1764_v29 = vsel %vm4749_vm2, %v1759_v19, %v1763_v20  ;;  %v1740_v37 = vsel %vm4749_vm2, %v1735_v26, %v1739_v27  ;;  %v1993_v51 = vsel %vm4924_vm6, %v4220_v44, %v1992_v36  ;;  %v4189_v19 = vld [vmem:[%s4738_s28 + $0x50] sm:$0x1]  ;;  %v4187_v20 = vld [vmem:[%s4738_s28 + $0x48] sm:$0xe] }
 0x15e   : > { %1312 = vst.msk [vmem:[#allocation2 + $0x2c] sm:$0xf] %vm1300_vm9, %v1227_v40  ;;  %v1994_v40 = vrot.slane %v1992_v36, 4  ;;  %v2030_v24 = vrot.slane %v4189_v19, 5  ;;  %v4225_v27 = vrot.slane %v4187_v20, 9 }
 0x15f   : > { %1320 = vst.msk [vmem:[#allocation2 + $0x4c] sm:$0xf] %vm1300_vm9, %v1243_v47  ;;  %v2006_v47 = vrot.slane %v4179_v42, 5  ;;  %v2041_v42 = vrot.slane %v4194_v35, 5 }
 0x160   : > { %v1996_v48 = vsel %vm4924_vm6, %v1994_v40, %v1995_v41  ;;  %v2028_v33 = vsel %vm4924_vm6, %v4225_v27, %v2027_v17  ;;  %v4190_v40 = vld [vmem:[%s4738_s28 + $0x54] sm:$0xe]  ;;  %v4204_v27 = vld [vmem:[%s4738_s28 + $0x8c] sm:$0x1] }
 0x161   : > { %v2008_v54 = vrot.slane %v2006_v47, 4 }
 0x162   : > { %1815 = vrot.lane.b32.xlu1 %v1692_v45, %s4658_s5 }
 0x163   : > { %1813 = vrot.lane.b32.xlu0 %v1682_v46, %s4658_s5  ;;  %1811 = vrot.lane.b32.xlu2 %v1668_v59, %s4658_s5  ;;  %v2000_v46 = vsel %vm4924_vm6, %v4221_v30, %v1999_v38  ;;  %v2010_v52 = vsel %vm4924_vm6, %v2008_v54, %v2009_v56  ;;  %v4192_v38 = vld [vmem:[%s4738_s28 + $0x5c] sm:$0x1]  ;;  %v4198_v54 = vld [vmem:[%s4738_s28 + $0x74] sm:$0x1] }
 0x164   : > { %v1235_v55 = vpop.permute.xlu1 %1234  ;;  %v4196_v56 = vld [vmem:[%s4738_s28 + $0x6c] sm:$0xe]  ;;  %v2051_v60 = vrot.slane %v4198_v54, 5 }
 0x165   : > { %1316 = vst.msk [vmem:[#allocation2 + $0x3c] sm:$0xf] %vm1300_vm9, %v1235_v55  ;;  %v1233_v6 = vpop.permute.xlu0 %1232  ;;  %v1249_v9 = vpop.permute.xlu2 %1248  ;;  %v2007_v55 = vsel %vm4924_vm6, %v4222_v58, %v2006_v47  ;;  %v4195_v58 = vld [vmem:[%s4738_s28 + $0x68] sm:$0x1]  ;;  %v4228_v62 = vrot.slane %v4196_v56, 9 }
 0x166   : > { %1315 = vst.msk [vmem:[#allocation2 + $0x38] sm:$0xf] %vm1300_vm9, %v1233_v6  ;;  %v4181_v6 = vld [vmem:[%s4738_s28 + $0x30] sm:$0xe]  ;;  %v2044_v0 = vrot.slane %v4195_v58, 5 }
 0x167   : > { %1323 = vst.msk [vmem:[#allocation2 + $0x58] sm:$0xf] %vm1300_vm9, %v1249_v9 }
 0x16a   : > { %1821 = vrot.lane.b32.xlu1 %v1730_v11, %s4658_s5  ;;  %v2016_v11 = vrot.slane %v4183_v4, 5 }
 0x16b   : > { %1819 = vrot.lane.b32.xlu0 %v1716_v14, %s4658_s5  ;;  %1817 = vrot.lane.b32.xlu2 %v1706_v16, %s4658_s5  ;;  %v4223_v14 = vrot.slane %v4181_v6, 9  ;;  %v2021_v16 = vsel %vm4924_vm6, %v4224_v7, %v2020_v8  ;;  %v4203_v6 = vld [vmem:[%s4738_s28 + $0x88] sm:$0xf] }
 0x16c   : > { %v1241_v21 = vpop.permute.xlu1 %1240  ;;  %v2017_v18 = vsel %vm4924_vm6, %v2015_v10, %v2016_v11  ;;  %v4199_v10 = vld [vmem:[%s4738_s28 + $0x78] sm:$0xe]  ;;  %v2062_v12 = vrot.slane %v4203_v6, 5 }
 0x16d   : > { %1319 = vst.msk [vmem:[#allocation2 + $0x48] sm:$0xf] %vm1300_vm9, %v1241_v21  ;;  %v1239_v23 = vpop.permute.xlu0 %1238  ;;  %v1255_v28 = vpop.permute.xlu2 %1254  ;;  %v2014_v21 = vsel %vm4924_vm6, %v4223_v14, %v2013_v3 }
 0x16e   : > { %1318 = vst.msk [vmem:[#allocation2 + $0x44] sm:$0xf] %vm1300_vm9, %v1239_v23  ;;  %v2029_v23 = vrot.slane %v2027_v17, 4 }
 0x16f   : > { %1326 = vst.msk [vmem:[#allocation2 + $0x64] sm:$0xf] %vm1300_vm9, %v1255_v28 }
 0x170   : > { %v2031_v36 = vsel %vm4924_vm6, %v2029_v23, %v2030_v24  ;;  %v4207_v23 = vld [vmem:[%s4738_s28 + $0x98] sm:$0x1]  ;;  %v4205_v24 = vld [vmem:[%s4738_s28 + $0x90] sm:$0xe] }
 0x172   : > { %1827 = vrot.lane.b32.xlu1 %v1764_v29, %s4658_s5  ;;  %v4191_v29 = vld [vmem:[%s4738_s28 + $0x58] sm:$0xf] }
 0x173   : > { %1825 = vrot.lane.b32.xlu0 %v1754_v31, %s4658_s5  ;;  %1823 = vrot.lane.b32.xlu2 %v1740_v37, %s4658_s5  ;;  %v2022_v31 = vrot.slane %v2020_v8, 4  ;;  %v4193_v37 = vld [vmem:[%s4738_s28 + $0x60] sm:$0xe]  ;;  %v2034_v30 = vrot.slane %v4191_v29, 5  ;;  %v4201_v8 = vld [vmem:[%s4738_s28 + $0x80] sm:$0x1] }
 0x174   : > { %v1247_v39 = vpop.permute.xlu1 %1246  ;;  %v4227_v41 = vrot.slane %v4193_v37, 9  ;;  %v2072_v29 = vrot.slane %v4207_v23, 5  ;;  %v2065_v37 = vrot.slane %v4204_v27, 5  ;;  %v4238_v27 = vld [vmem:[%s4738_s28 + $0x24] sm:$0xf]  ;;  %s4074_s5 = sshll.u32 %s161_s4, 5 }
 0x175   : > { %1322 = vst.msk [vmem:[#allocation2 + $0x54] sm:$0xf] %vm1300_vm9, %v1247_v39  ;;  %v1245_v43 = vpop.permute.xlu0 %1244  ;;  %v1261_v45 = vpop.permute.xlu2 %1260  ;;  %v2024_v39 = vsel %vm4924_vm6, %v2022_v31, %v2023_v32  ;;  %v2036_v44 = vrot.slane %v2034_v30, 4  ;;  %v4231_v32 = vrot.slane %v4205_v24, 9 }
 0x176   : > { %1321 = vst.msk [vmem:[#allocation2 + $0x50] sm:$0xf] %vm1300_vm9, %v1245_v43  ;;  %v2042_v50 = vsel %vm4924_vm6, %v4227_v41, %v2041_v42 }
 0x177   : > { %1329 = vst.msk [vmem:[#allocation2 + $0x70] sm:$0xf] %vm1300_vm9, %v1261_v45  ;;  %v2037_v45 = vrot.slane %v4192_v38, 5 }
 0x179   : > { %v2038_v53 = vsel %vm4924_vm6, %v2036_v44, %v2037_v45  ;;  %v4208_v44 = vld [vmem:[%s4738_s28 + $0x9c] sm:$0xe] }
 0x17a   : > { %2106 = vrot.lane.b32.xlu1 %v2000_v46, %s4659_s6  ;;  %v4197_v46 = vld [vmem:[%s4738_s28 + $0x70] sm:$0xf] }
 0x17b   : > { %2104 = vrot.lane.b32.xlu0 %v1996_v48, %s4659_s6  ;;  %2102 = vrot.lane.b32.xlu2 %v1993_v51, %s4659_s6  ;;  %v4226_v48 = vrot.slane %v4190_v40, 9  ;;  %v2048_v51 = vrot.slane %v4197_v46, 5  ;;  %v4212_v40 = vld [vmem:[%s4738_s28 + $0xac] sm:$0xf] }
 0x17c   : > { %v1253_v57 = vpop.permute.xlu1 %1252  ;;  %v2083_v46 = vrot.slane %v4212_v40, 5 }
 0x17d   : > { %1325 = vst.msk [vmem:[#allocation2 + $0x60] sm:$0xf] %vm1300_vm9, %v1253_v57  ;;  %v1251_v59 = vpop.permute.xlu0 %1250  ;;  %v1267_v63 = vpop.permute.xlu2 %1266  ;;  %v2035_v57 = vsel %vm4924_vm6, %v4226_v48, %v2034_v30  ;;  %v2049_v4 = vsel %vm4924_vm6, %v4228_v62, %v2048_v51  ;;  %v4213_v62 = vld [vmem:[%s4738_s28 + $0xb0] sm:$0x1] }
 0x17e   : > { %1324 = vst.msk [vmem:[#allocation2 + $0x5c] sm:$0xf] %vm1300_vm9, %v1251_v59  ;;  %v2050_v59 = vrot.slane %v2048_v51, 4 }
 0x17f   : > { %1332 = vst.msk [vmem:[#allocation2 + $0x7c] sm:$0xf] %vm1300_vm9, %v1267_v63 }
 0x180   : > { %v2052_v3 = vsel %vm4924_vm6, %v2050_v59, %v2051_v60  ;;  %v4216_v59 = vld [vmem:[%s4738_s28 + $0xbc] sm:$0x1]  ;;  %v4214_v60 = vld [vmem:[%s4738_s28 + $0xb4] sm:$0xe] }
 0x182   : > { %2112 = vrot.lane.b32.xlu1 %v2010_v52, %s4659_s6  ;;  %v4200_v52 = vld [vmem:[%s4738_s28 + $0x7c] sm:$0xf] }
 0x183   : > { %2110 = vrot.lane.b32.xlu0 %v2007_v55, %s4659_s6  ;;  %2108 = vrot.lane.b32.xlu2 %v2003_v5, %s4659_s6  ;;  %v2043_v55 = vrot.slane %v2041_v42, 4  ;;  %v4202_v5 = vld [vmem:[%s4738_s28 + $0x84] sm:$0xe]  ;;  %v2055_v7 = vrot.slane %v4200_v52, 5  ;;  %v4210_v42 = vld [vmem:[%s4738_s28 + $0xa4] sm:$0x1] }
 0x184   : > { %v1259_v9 = vpop.permute.xlu1 %1258  ;;  %v4230_v11 = vrot.slane %v4202_v5, 9  ;;  %v2093_v52 = vrot.slane %v4216_v59, 5  ;;  %v2086_v5 = vrot.slane %v4213_v62, 5 }
 0x185   : > { %1328 = vst.msk [vmem:[#allocation2 + $0x6c] sm:$0xf] %vm1300_vm9, %v1259_v9  ;;  %v1257_v13 = vpop.permute.xlu0 %1256  ;;  %v1770_v15 = vpop.permute.xlu2 %1769  ;;  %v2045_v9 = vsel %vm4924_vm6, %v2043_v55, %v2044_v0  ;;  %v2057_v14 = vrot.slane %v2055_v7, 4  ;;  %v4234_v0 = vrot.slane %v4214_v60, 9  ;;  %v4244_v60 = vld [vmem:[%s4738_s28 + $0x48] sm:$0xf] }
 0x186   : > { %1327 = vst.msk [vmem:[#allocation2 + $0x68] sm:$0xf] %vm1300_vm9, %v1257_v13  ;;  %v2063_v20 = vsel %vm4924_vm6, %v4230_v11, %v2062_v12 }
 0x187   : > { %1864 = vst.msk [vmem:[#allocation2 + $0x8] sm:$0xf] %vm1861_vm10, %v1770_v15  ;;  %v2058_v15 = vrot.slane %v4201_v8, 5 }
 0x189   : > { %v2059_v22 = vsel %vm4924_vm6, %v2057_v14, %v2058_v15 }
 0x18a   : > { %2118 = vrot.lane.b32.xlu1 %v2021_v16, %s4659_s6  ;;  %v4206_v16 = vld [vmem:[%s4738_s28 + $0x94] sm:$0xf] }
 0x18b   : > { %2116 = vrot.lane.b32.xlu0 %v2017_v18, %s4659_s6  ;;  %2114 = vrot.lane.b32.xlu2 %v2014_v21, %s4659_s6  ;;  %v4229_v18 = vrot.slane %v4199_v10, 9  ;;  %v2069_v21 = vrot.slane %v4206_v16, 5  ;;  %v4219_v10 = vld [vmem:[%s4738_s28 + $0xc8] sm:$0x1] }
 0x18c   : > { %v1265_v26 = vpop.permute.xlu1 %1264  ;;  %v2100_v15 = vrot.slane %v4219_v10, 5  ;;  %v4282_v10 = vld [vmem:[%s4738_s28 + $0x50] sm:$0x1] }
 0x18d   : > { %1331 = vst.msk [vmem:[#allocation2 + $0x78] sm:$0xf] %vm1300_vm9, %v1265_v26  ;;  %v1263_v28 = vpop.permute.xlu0 %1262  ;;  %v1776_v34 = vpop.permute.xlu2 %1775  ;;  %v2056_v26 = vsel %vm4924_vm6, %v4229_v18, %v2055_v7  ;;  %v2070_v38 = vsel %vm4924_vm6, %v4231_v32, %v2069_v21 }
 0x18e   : > { %1330 = vst.msk [vmem:[#allocation2 + $0x74] sm:$0xf] %vm1300_vm9, %v1263_v28  ;;  %v2071_v28 = vrot.slane %v2069_v21, 4 }
 0x18f   : > { %1867 = vst.msk [vmem:[#allocation2 + $0x14] sm:$0xf] %vm1861_vm10, %v1776_v34 }
 0x190   : > { %v2073_v30 = vsel %vm4924_vm6, %v2071_v28, %v2072_v29  ;;  %v4237_v28 = vld [vmem:[%s4738_s28 + $0x1c] sm:$0xf] }
 0x192   : > { %2124 = vrot.lane.b32.xlu1 %v2031_v36, %s4659_s6  ;;  %v4209_v36 = vld [vmem:[%s4738_s28 + $0xa0] sm:$0xf] }
 0x193   : > { %2122 = vrot.lane.b32.xlu0 %v2028_v33, %s4659_s6  ;;  %2120 = vrot.lane.b32.xlu2 %v2024_v39, %s4659_s6  ;;  %v2064_v33 = vrot.slane %v2062_v12, 4  ;;  %v4211_v39 = vld [vmem:[%s4738_s28 + $0xa8] sm:$0xe]  ;;  %v2076_v41 = vrot.slane %v4209_v36, 5  ;;  %v4217_v12 = vld [vmem:[%s4738_s28 + $0xc0] sm:$0xe] }
 0x194   : > { %v1768_v43 = vpop.permute.xlu1 %1767  ;;  %v4233_v45 = vrot.slane %v4211_v39, 9 }
 0x195   : > { %1863 = vst.msk [vmem:[#allocation2 + $0x4] sm:$0xf] %vm1861_vm10, %v1768_v43  ;;  %v1766_v47 = vpop.permute.xlu0 %1765  ;;  %v1782_v49 = vpop.permute.xlu2 %1781  ;;  %v2066_v43 = vsel %vm4924_vm6, %v2064_v33, %v2065_v37  ;;  %v2078_v48 = vrot.slane %v2076_v41, 4  ;;  %v4268_v33 = vld [vmem:[%s4738_s28 + $0x18] sm:$0xf] }
 0x196   : > { %1862 = vst.msk [vmem:[#allocation2] sm:$0xf] %vm1861_vm10, %v1766_v47  ;;  %v2084_v56 = vsel %vm4924_vm6, %v4233_v45, %v2083_v46  ;;  %v4242_v37 = vld [vmem:[%s4738_s28 + $0x3c] sm:$0xf] }
 0x197   : > { %1870 = vst.msk [vmem:[#allocation2 + $0x20] sm:$0xf] %vm1861_vm10, %v1782_v49  ;;  %v2079_v49 = vrot.slane %v4210_v42, 5  ;;  %v2474_v42 = vshrl.u32 %v4268_v33, 16 }
 0x199   : > { %v2080_v58 = vsel %vm4924_vm6, %v2078_v48, %v2079_v49 }
 0x19a   : > { %2130 = vrot.lane.b32.xlu1 %v2042_v50, %s4659_s6  ;;  %v4215_v50 = vld [vmem:[%s4738_s28 + $0xb8] sm:$0xf] }
 0x19b   : > { %2128 = vrot.lane.b32.xlu0 %v2038_v53, %s4659_s6  ;;  %2126 = vrot.lane.b32.xlu2 %v2035_v57, %s4659_s6  ;;  %v4232_v53 = vrot.slane %v4208_v44, 9  ;;  %v2090_v57 = vrot.slane %v4215_v50, 5 }
 0x19c   : > { %v1774_v61 = vpop.permute.xlu1 %1773 }
 0x19d   : > { %1866 = vst.msk [vmem:[#allocation2 + $0x10] sm:$0xf] %vm1861_vm10, %v1774_v61  ;;  %v1772_v63 = vpop.permute.xlu0 %1771  ;;  %v1788_v2 = vpop.permute.xlu2 %1787  ;;  %v2077_v61 = vsel %vm4924_vm6, %v4232_v53, %v2076_v41  ;;  %v2091_v8 = vsel %vm4924_vm6, %v4234_v0, %v2090_v57  ;;  %v4240_v41 = vld [vmem:[%s4738_s28 + $0x30] sm:$0xf]  ;;  %v2476_v53 = vrot.slane %v2474_v42, 4 }
 0x19e   : > { %1865 = vst.msk [vmem:[#allocation2 + $0xc] sm:$0xf] %vm1861_vm10, %v1772_v63  ;;  %v2092_v63 = vrot.slane %v2090_v57, 4  ;;  %v4245_v57 = vld [vmem:[%s4738_s28 + $0x4c] sm:$0xf] }
 0x19f   : > { %1873 = vst.msk [vmem:[#allocation2 + $0x2c] sm:$0xf] %vm1861_vm10, %v1788_v2  ;;  %v4328_v42 = vld [vmem:[%s4738_s28 + $0x48] sm:$0xe] }
 0x1a0   : > { %v2094_v7 = vsel %vm4924_vm6, %v2092_v63, %v2093_v52  ;;  %v4243_v52 = vld [vmem:[%s4738_s28 + $0x40] sm:$0xf] }
 0x1a2   : > { %2136 = vrot.lane.b32.xlu1 %v2052_v3, %s4659_s6  ;;  %v4218_v3 = vld [vmem:[%s4738_s28 + $0xc4] sm:$0xf] }
 0x1a3   : > { %2134 = vrot.lane.b32.xlu0 %v2049_v4, %s4659_s6  ;;  %2132 = vrot.lane.b32.xlu2 %v2045_v9, %s4659_s6  ;;  %v2085_v4 = vrot.slane %v2083_v46, 4  ;;  %v2097_v9 = vrot.slane %v4218_v3, 5 }
 0x1a4   : > { %v1780_v13 = vpop.permute.xlu1 %1779 }
 0x1a5   : > { %1869 = vst.msk [vmem:[#allocation2 + $0x1c] sm:$0xf] %vm1861_vm10, %v1780_v13  ;;  %v1778_v17 = vpop.permute.xlu0 %1777  ;;  %v1794_v19 = vpop.permute.xlu2 %1793  ;;  %v2087_v11 = vsel %vm4924_vm6, %v2085_v4, %v2086_v5  ;;  %v2099_v14 = vrot.slane %v2097_v9, 4 }
 0x1a6   : > { %1868 = vst.msk [vmem:[#allocation2 + $0x18] sm:$0xf] %vm1861_vm10, %v1778_v17  ;;  %v4235_v17 = vrot.slane %v4217_v12, 9 }
 0x1a7   : > { %1876 = vst.msk [vmem:[#allocation2 + $0x38] sm:$0xf] %vm1861_vm10, %v1794_v19  ;;  %v4236_v19 = vld [vmem:[%s4738_s28 + $0x18] sm:$0xf] }
 0x1a8   : > { %v2098_v21 = vsel %vm4924_vm6, %v4235_v17, %v2097_v9 }
 0x1aa   : > { %2142 = vrot.lane.b32.xlu1 %v2063_v20, %s4659_s6  ;;  %v2101_v20 = vsel %vm4924_vm6, %v2099_v14, %v2100_v15  ;;  %v2589_v15 = vshll.u32 %v4282_v10, 16 }
 0x1ab   : > { %2140 = vrot.lane.b32.xlu0 %v2059_v22, %s4659_s6  ;;  %2138 = vrot.lane.b32.xlu2 %v2056_v26, %s4659_s6  ;;  %v4239_v26 = vld [vmem:[%s4738_s28 + $0x28] sm:$0xf] }
 0x1ac   : > { %v1786_v31 = vpop.permute.xlu1 %1785 }
 0x1ad   : > { %1872 = vst.msk [vmem:[#allocation2 + $0x28] sm:$0xf] %vm1861_vm10, %v1786_v31  ;;  %v1784_v34 = vpop.permute.xlu0 %1783  ;;  %v1800_v35 = vpop.permute.xlu2 %1799  ;;  %v4280_v31 = vld [vmem:[%s4738_s28 + $0x48] sm:$0xf] }
 0x1ae   : > { %1871 = vst.msk [vmem:[#allocation2 + $0x24] sm:$0xf] %vm1861_vm10, %v1784_v34  ;;  %v4269_v34 = vld [vmem:[%s4738_s28 + $0x1c] sm:$0xf] }
 0x1af   : > { %1879 = vst.msk [vmem:[#allocation2 + $0x44] sm:$0xf] %vm1861_vm10, %v1800_v35  ;;  %v2570_v35 = vshrl.u32 %v4280_v31, 16  ;;  %v2483_v39 = vshll.u32 %v4269_v34, 16  ;;  %v2487_v40 = vshrl.u32 %v4269_v34, 16 }
 0x1b1   : > { %v2572_v44 = vrot.slane %v2570_v35, 4  ;;  %v2485_v48 = vrot.slane %v2483_v39, 5  ;;  %v2489_v49 = vrot.slane %v2487_v40, 4  ;;  %v4292_v35 = vld [vmem:[%s4738_s28 + $0x78] sm:$0xf] }
 0x1b2   : > { %2148 = vrot.lane.b32.xlu1 %v2073_v30, %s4659_s6  ;;  %v2573_v30 = vshll.u32 %v4280_v31, 16  ;;  %v4329_v31 = vld [vmem:[%s4738_s28 + $0x4c] sm:$0xf] }
 0x1b3   : > { %2146 = vrot.lane.b32.xlu0 %v2070_v38, %s4659_s6  ;;  %2144 = vrot.lane.b32.xlu2 %v2066_v43, %s4659_s6  ;;  %v4241_v38 = vld [vmem:[%s4738_s28 + $0x34] sm:$0xf]  ;;  %v2477_v43 = vshll.u32 %v4268_v33, 16  ;;  %v4330_v33 = vld [vmem:[%s4738_s28 + $0x50] sm:$0x1] }
 0x1b4   : > { %v1792_v47 = vpop.permute.xlu1 %1791  ;;  %v2575_v45 = vrot.slane %v2573_v30, 5 }
 0x1b5   : > { %1875 = vst.msk [vmem:[#allocation2 + $0x34] sm:$0xf] %vm1861_vm10, %v1792_v47  ;;  %v1790_v51 = vpop.permute.xlu0 %1789  ;;  %v1806_v54 = vpop.permute.xlu2 %1805  ;;  %v4281_v47 = vld [vmem:[%s4738_s28 + $0x4c] sm:$0xf] }
 0x1b6   : > { %1874 = vst.msk [vmem:[#allocation2 + $0x30] sm:$0xf] %vm1861_vm10, %v1790_v51  ;;  %v4270_v51 = vld [vmem:[%s4738_s28 + $0x20] sm:$0x1]  ;;  %v2579_v59 = vshll.u32 %v4281_v47, 16  ;;  %v2583_v63 = vshrl.u32 %v4281_v47, 16 }
 0x1b7   : > { %1882 = vst.msk [vmem:[#allocation2 + $0x50] sm:$0xf] %vm1861_vm10, %v1806_v54  ;;  %v2479_v54 = vrot.slane %v2477_v43, 5  ;;  %v2493_v62 = vshll.u32 %v4270_v51, 16  ;;  %v2669_v47 = vshll.u32 %v4292_v35, 16  ;;  %v4368_v51 = vrot.slane %v4328_v42, 9 }
 0x1b9   : > { %v2495_v5 = vrot.slane %v2493_v62, 5 }
 0x1ba   : > { %2154 = vrot.lane.b32.xlu1 %v2084_v56, %s4659_s6 }
 0x1bb   : > { %2152 = vrot.lane.b32.xlu0 %v2080_v58, %s4659_s6  ;;  %2150 = vrot.lane.b32.xlu2 %v2077_v61, %s4659_s6  ;;  %v2576_v58 = vor.u32 %v2575_v45, %v2572_v44  ;;  %v2490_v61 = vor.u32 %v2489_v49, %v2485_v48  ;;  %v4260_v45 = vld [vmem:[%s4738_s28 + $0xa8] sm:$0xf]  ;;  %v4318_v49 = vld [vmem:[%s4738_s28 + $0x20] sm:$0x1] }
 0x1bc   : > { %v1798_v55 = vpop.permute.xlu1 %1797 }
 0x1bd   : > { %1878 = vst.msk [vmem:[#allocation2 + $0x40] sm:$0xf] %vm1861_vm10, %v1798_v55  ;;  %v1796_v2 = vpop.permute.xlu0 %1795  ;;  %v1812_v6 = vpop.permute.xlu2 %1811  ;;  %v2480_v55 = vor.u32 %v2479_v54, %v2476_v53  ;;  %v2577_v0 = vrot.slane %v2576_v58, 4  ;;  %v2491_v4 = vrot.slane %v2490_v61, 4  ;;  %v4294_v58 = vld [vmem:[%s4738_s28 + $0x80] sm:$0x1] }
 0x1be   : > { %1877 = vst.msk [vmem:[#allocation2 + $0x3c] sm:$0xf] %vm1861_vm10, %v1796_v2  ;;  %v2581_v2 = vrot.slane %v2579_v59, 5 }
 0x1bf   : > { %1885 = vst.msk [vmem:[#allocation2 + $0x5c] sm:$0xf] %vm1861_vm10, %v1812_v6  ;;  %v2496_v12 = vsel %vm4749_vm2, %v2491_v4, %v2495_v5 }
 0x1c2   : > { %2160 = vrot.lane.b32.xlu1 %v2094_v7, %s4659_s6  ;;  %v2481_v7 = vrot.slane %v2480_v55, 4  ;;  %v2671_v55 = vrot.slane %v2669_v47, 5 }
 0x1c3   : > { %2158 = vrot.lane.b32.xlu0 %v2091_v8, %s4659_s6  ;;  %2156 = vrot.lane.b32.xlu2 %v2087_v11, %s4659_s6  ;;  %v2585_v8 = vrot.slane %v2583_v63, 4  ;;  %v2582_v11 = vsel %vm4749_vm2, %v2577_v0, %v2581_v2  ;;  %v3087_v63 = vrot.slane %v4318_v49, 5  ;;  %v4354_v49 = vld [vmem:[%s4738_s28 + $0xb0] sm:$0x1] }
 0x1c4   : > { %v1804_v13 = vpop.permute.xlu1 %1803 }
 0x1c5   : > { %1881 = vst.msk [vmem:[#allocation2 + $0x4c] sm:$0xf] %vm1861_vm10, %v1804_v13  ;;  %v1802_v16 = vpop.permute.xlu0 %1801  ;;  %v1818_v18 = vpop.permute.xlu2 %1817  ;;  %v2486_v13 = vsel %vm4749_vm2, %v2481_v7, %v2485_v48  ;;  %v2586_v14 = vor.u32 %v2585_v8, %v2581_v2  ;;  %v3115_v48 = vrot.slane %v4330_v33, 5  ;;  %v2685_v7 = vshll.u32 %v4294_v58, 16 }
 0x1c6   : > { %1880 = vst.msk [vmem:[#allocation2 + $0x48] sm:$0xf] %vm1861_vm10, %v1802_v16  ;;  %v3171_v58 = vrot.slane %v4354_v49, 5 }
 0x1c7   : > { %1888 = vst.msk [vmem:[#allocation2 + $0x68] sm:$0xf] %vm1861_vm10, %v1818_v18  ;;  %v2587_v18 = vrot.slane %v2586_v14, 4 }
 0x1ca   : > { %2296 = vrot.lane.b32.xlu1 %v4236_v19, %s4660_s7  ;;  %v2591_v19 = vrot.slane %v2589_v15, 5  ;;  %v2687_v15 = vrot.slane %v2685_v7, 5 }
 0x1cb   : > { %2164 = vrot.lane.b32.xlu0 %v2101_v20, %s4659_s6  ;;  %2162 = vrot.lane.b32.xlu2 %v2098_v21, %s4659_s6  ;;  %v4253_v21 = vld [vmem:[%s4738_s28 + $0x7c] sm:$0xf]  ;;  %s6230_s6 = scalar_lea.vmem [#allocation3], %s4074_s5 }
 0x1cc   : > { %v1810_v22 = vpop.permute.xlu1 %1809  ;;  %s4005_s17 = sshll.u32 %s6230_s6, 4  ;;  %s4006_s17 = int_to_ptr.vmem [resolvable:$true] %s4005_s17 }
 0x1cd   : > { %1884 = vst.msk [vmem:[#allocation2 + $0x58] sm:$0xf] %vm1861_vm10, %v1810_v22  ;;  %v1808_v23 = vpop.permute.xlu0 %1807  ;;  %v1824_v24 = vpop.permute.xlu2 %1823  ;;  %v4252_v22 = vld [vmem:[%s4738_s28 + $0x78] sm:$0xf] }
 0x1ce   : > { %1883 = vst.msk [vmem:[#allocation2 + $0x54] sm:$0xf] %vm1861_vm10, %v1808_v23  ;;  %v4316_v23 = vld [vmem:[%s4738_s28 + $0x18] sm:$0xe] }
 0x1cf   : > { %1891 = vst.msk [vmem:[#allocation2 + $0x74] sm:$0xf] %vm1861_vm10, %v1824_v24  ;;  %v4317_v24 = vld [vmem:[%s4738_s28 + $0x1c] sm:$0xf] }
 0x1d2   : > { %2302 = vrot.lane.b32.xlu1 %v4239_v26, %s4660_s7  ;;  %v2592_v26 = vsel %vm4749_vm2, %v2587_v18, %v2591_v19 }
 0x1d3   : > { %2300 = vrot.lane.b32.xlu0 %v4238_v27, %s4660_s7  ;;  %2298 = vrot.lane.b32.xlu2 %v4237_v28, %s4660_s7  ;;  %v4364_v27 = vrot.slane %v4316_v23, 9  ;;  %v3084_v28 = vrot.slane %v4317_v24, 5 }
 0x1d4   : > { %v1816_v29 = vpop.permute.xlu1 %1815 }
 0x1d5   : > { %1887 = vst.msk [vmem:[#allocation2 + $0x64] sm:$0xf] %vm1861_vm10, %v1816_v29  ;;  %v1814_v32 = vpop.permute.xlu0 %1813  ;;  %v2103_v36 = vpop.permute.xlu2 %2102  ;;  %v3085_v30 = vsel %vm4924_vm6, %v4364_v27, %v3084_v28  ;;  %v3086_v62 = vrot.slane %v3084_v28, 4  ;;  %v4340_v27 = vld [vmem:[%s4738_s28 + $0x78] sm:$0xe] }
 0x1d6   : > { %1886 = vst.msk [vmem:[#allocation2 + $0x60] sm:$0xf] %vm1861_vm10, %v1814_v32  ;;  %v4304_v32 = vld [vmem:[%s4738_s28 + $0xa8] sm:$0xf]  ;;  %v4372_v33 = vrot.slane %v4340_v27, 9 }
 0x1d7   : > { %2199 = vst.msk [vmem:[#allocation2] sm:$0xf] %vm2198_vm11, %v2103_v36  ;;  %v4293_v36 = vld [vmem:[%s4738_s28 + $0x7c] sm:$0xf]  ;;  %v2762_v39 = vshrl.u32 %v4304_v32, 16  ;;  %v2765_v40 = vshll.u32 %v4304_v32, 16 }
 0x1d8   : > { %v2675_v43 = vshll.u32 %v4293_v36, 16  ;;  %v2679_v44 = vshrl.u32 %v4293_v36, 16 }
 0x1d9   : > { %v2764_v53 = vrot.slane %v2762_v39, 4  ;;  %v2767_v54 = vrot.slane %v2765_v40, 5  ;;  %v4271_v40 = vld [vmem:[%s4738_s28 + $0x24] sm:$0xf] }
 0x1da   : > { %2308 = vrot.lane.b32.xlu1 %v4242_v37, %s4660_s7  ;;  %v2677_v59 = vrot.slane %v2675_v43, 5  ;;  %v2498_v47 = vshrl.u32 %v4271_v40, 16 }
 0x1db   : > { %2306 = vrot.lane.b32.xlu0 %v4241_v38, %s4660_s7  ;;  %2304 = vrot.lane.b32.xlu2 %v4240_v41, %s4660_s7  ;;  %v3112_v38 = vrot.slane %v4329_v31, 5  ;;  %v4261_v41 = vld [vmem:[%s4738_s28 + $0xac] sm:$0xf] }
 0x1dc   : > { %v1822_v46 = vpop.permute.xlu1 %1821 }
 0x1dd   : > { %1890 = vst.msk [vmem:[#allocation2 + $0x70] sm:$0xf] %vm1861_vm10, %v1822_v46  ;;  %v1820_v50 = vpop.permute.xlu0 %1819  ;;  %v2109_v56 = vpop.permute.xlu2 %2108  ;;  %v2666_v46 = vshrl.u32 %v4292_v35, 16  ;;  %v3113_v5 = vsel %vm4924_vm6, %v4368_v51, %v3112_v38  ;;  %v4272_v35 = vld [vmem:[%s4738_s28 + $0x28] sm:$0xf] }
 0x1de   : > { %1889 = vst.msk [vmem:[#allocation2 + $0x6c] sm:$0xf] %vm1861_vm10, %v1820_v50  ;;  %v3114_v50 = vrot.slane %v3112_v38, 4  ;;  %v2507_v43 = vshll.u32 %v4272_v35, 16  ;;  %v4352_v51 = vld [vmem:[%s4738_s28 + $0xa8] sm:$0xe] }
 0x1df   : > { %2202 = vst.msk [vmem:[#allocation2 + $0xc] sm:$0xf] %vm2198_vm11, %v2109_v56 }
 0x1e0   : > { %v3116_v2 = vsel %vm4924_vm6, %v3114_v50, %v3115_v48  ;;  %v2501_v48 = vshll.u32 %v4271_v40, 16  ;;  %v4296_v40 = vld [vmem:[%s4738_s28 + $0x88] sm:$0xf] }
 0x1e1   : > { %v2703_v49 = vshrl.u32 %v4296_v40, 16 }
 0x1e2   : > { %2314 = vrot.lane.b32.xlu1 %v4245_v57, %s4660_s7  ;;  %v4305_v57 = vld [vmem:[%s4738_s28 + $0xac] sm:$0xf] }
 0x1e3   : > { %2312 = vrot.lane.b32.xlu0 %v4244_v60, %s4660_s7  ;;  %2310 = vrot.lane.b32.xlu2 %v4243_v52, %s4660_s7  ;;  %v2681_v60 = vrot.slane %v2679_v44, 4  ;;  %v2668_v52 = vrot.slane %v2666_v46, 4  ;;  %v2771_v4 = vshll.u32 %v4305_v57, 16  ;;  %v2775_v8 = vshrl.u32 %v4305_v57, 16 }
 0x1e4   : > { %v1828_v3 = vpop.permute.xlu1 %1827  ;;  %v2511_v44 = vshrl.u32 %v4272_v35, 16  ;;  %v4254_v35 = vld [vmem:[%s4738_s28 + $0x84] sm:$0xf] }
 0x1e5   : > { %1893 = vst.msk [vmem:[#allocation2 + $0x7c] sm:$0xf] %vm1861_vm10, %v1828_v3  ;;  %v1826_v6 = vpop.permute.xlu0 %1825  ;;  %v2115_v9 = vpop.permute.xlu2 %2114  ;;  %v2768_v3 = vor.u32 %v2767_v54, %v2764_v53  ;;  %v2672_v10 = vor.u32 %v2671_v55, %v2668_v52  ;;  %v2777_v19 = vrot.slane %v2775_v8, 4  ;;  %v2509_v53 = vrot.slane %v2507_v43, 5  ;;  %v4284_v52 = vld [vmem:[%s4738_s28 + $0x58] sm:$0xf] }
 0x1e6   : > { %1892 = vst.msk [vmem:[#allocation2 + $0x78] sm:$0xf] %vm1861_vm10, %v1826_v6  ;;  %v2682_v6 = vor.u32 %v2681_v60, %v2677_v59  ;;  %v2513_v54 = vrot.slane %v2511_v44, 4  ;;  %v2500_v60 = vrot.slane %v2498_v47, 4  ;;  %v2603_v7 = vshll.u32 %v4284_v52, 16 }
 0x1e7   : > { %2205 = vst.msk [vmem:[#allocation2 + $0x18] sm:$0xf] %vm2198_vm11, %v2115_v9  ;;  %v3088_v9 = vsel %vm4924_vm6, %v3086_v62, %v3087_v63  ;;  %v2673_v18 = vrot.slane %v2672_v10, 4  ;;  %v4376_v63 = vrot.slane %v4352_v51, 9  ;;  %v2607_v8 = vshrl.u32 %v4284_v52, 16 }
 0x1e8   : > { %v2683_v14 = vrot.slane %v2682_v6, 4  ;;  %v4295_v43 = vld [vmem:[%s4738_s28 + $0x84] sm:$0xf]  ;;  %v4263_v44 = vld [vmem:[%s4738_s28 + $0xb8] sm:$0xf] }
 0x1e9   : > { %v2678_v28 = vsel %vm4749_vm2, %v2673_v18, %v2677_v59  ;;  %v4273_v59 = vld [vmem:[%s4738_s28 + $0x2c] sm:$0x1]  ;;  %v4331_v47 = vld [vmem:[%s4738_s28 + $0x54] sm:$0xe] }
 0x1ea   : > { %2873 = vrot.lane.b32.xlu1 %v2582_v11, %s4661_s8  ;;  %v2769_v11 = vrot.slane %v2768_v3, 4  ;;  %v2688_v24 = vsel %vm4749_vm2, %v2683_v14, %v2687_v15  ;;  %v2514_v3 = vor.u32 %v2513_v54, %v2509_v53  ;;  %v2693_v54 = vshll.u32 %v4295_v43, 16 }
 0x1eb   : > { %2859 = vrot.lane.b32.xlu0 %v2496_v12, %s4661_s8  ;;  %2857 = vrot.lane.b32.xlu2 %v2486_v13, %s4661_s8  ;;  %v2773_v12 = vrot.slane %v2771_v4, 5  ;;  %v2517_v4 = vshll.u32 %v4273_v59, 16  ;;  %v4369_v59 = vrot.slane %v4331_v47, 9  ;;  %v5850_v47 = vld [vmem:[%s4738_s28 + $0xb8] sm:$0xf] }
 0x1ec   : > { %v2107_v16 = vpop.permute.xlu1 %2106 }
 0x1ed   : > { %2201 = vst.msk [vmem:[#allocation2 + $0x8] sm:$0xf] %vm2198_vm11, %v2107_v16  ;;  %v2105_v17 = vpop.permute.xlu0 %2104  ;;  %v2121_v20 = vpop.permute.xlu2 %2120  ;;  %v4341_v16 = vld [vmem:[%s4738_s28 + $0x7c] sm:$0xf] }
 0x1ee   : > { %2200 = vst.msk [vmem:[#allocation2 + $0x4] sm:$0xf] %vm2198_vm11, %v2105_v17  ;;  %v3140_v23 = vrot.slane %v4341_v16, 5  ;;  %v2605_v16 = vrot.slane %v2603_v7, 5 }
 0x1ef   : > { %2208 = vst.msk [vmem:[#allocation2 + $0x24] sm:$0xf] %vm2198_vm11, %v2121_v20 }
 0x1f0   : > { %v3142_v32 = vrot.slane %v3140_v23, 4 }
 0x1f2   : > { %2330 = vrot.lane.b32.xlu1 %v4253_v21, %s4660_s7  ;;  %v4306_v21 = vld [vmem:[%s4738_s28 + $0xb0] sm:$0x1] }
 0x1f3   : > { %2328 = vrot.lane.b32.xlu0 %v4252_v22, %s4660_s7  ;;  %2875 = vrot.lane.b32.xlu2 %v2592_v26, %s4661_s8  ;;  %v2774_v22 = vsel %vm4749_vm2, %v2769_v11, %v2773_v12  ;;  %v4342_v26 = vld [vmem:[%s4738_s28 + $0x80] sm:$0x1]  ;;  %v2781_v31 = vshll.u32 %v4306_v21, 16 }
 0x1f4   : > { %v2113_v29 = vpop.permute.xlu1 %2112 }
 0x1f5   : > { %2204 = vst.msk [vmem:[#allocation2 + $0x14] sm:$0xf] %vm2198_vm11, %v2113_v29  ;;  %v2111_v34 = vpop.permute.xlu0 %2110  ;;  %v2127_v37 = vpop.permute.xlu2 %2126  ;;  %v2778_v29 = vor.u32 %v2777_v19, %v2773_v12  ;;  %v2783_v39 = vrot.slane %v2781_v31, 5  ;;  %v2515_v12 = vrot.slane %v2514_v3, 4  ;;  %v4285_v19 = vld [vmem:[%s4738_s28 + $0x5c] sm:$0x1] }
 0x1f6   : > { %2203 = vst.msk [vmem:[#allocation2 + $0x10] sm:$0xf] %vm2198_vm11, %v2111_v34  ;;  %v3143_v34 = vrot.slane %v4342_v26, 5  ;;  %v2613_v27 = vshll.u32 %v4285_v19, 16  ;;  %v2695_v3 = vrot.slane %v2693_v54, 5 }
 0x1f7   : > { %2211 = vst.msk [vmem:[#allocation2 + $0x30] sm:$0xf] %vm2198_vm11, %v2127_v37  ;;  %v4353_v37 = vld [vmem:[%s4738_s28 + $0xac] sm:$0xf]  ;;  %v2779_v38 = vrot.slane %v2778_v29, 4 }
 0x1f8   : > { %v3144_v42 = vsel %vm4924_vm6, %v3142_v32, %v3143_v34  ;;  %v3168_v46 = vrot.slane %v4353_v37, 5  ;;  %v2615_v34 = vrot.slane %v2613_v27, 5  ;;  %v4333_v19 = vld [vmem:[%s4738_s28 + $0x5c] sm:$0x1] }
 0x1f9   : > { %v2784_v50 = vsel %vm4749_vm2, %v2779_v38, %v2783_v39 }
 0x1fa   : > { %3194 = vrot.lane.b32.xlu1 %v3085_v30, %s4662_s9  ;;  %v3170_v57 = vrot.slane %v3168_v46, 4 }
 0x1fb   : > { %2346 = vrot.lane.b32.xlu0 %v4261_v41, %s4660_s7  ;;  %2344 = vrot.lane.b32.xlu2 %v4260_v45, %s4660_s7  ;;  %v3141_v45 = vsel %vm4924_vm6, %v4372_v33, %v3140_v23 }
 0x1fc   : > { %v2119_v56 = vpop.permute.xlu1 %2118 }
 0x1fd   : > { %2207 = vst.msk [vmem:[#allocation2 + $0x20] sm:$0xf] %vm2198_vm11, %v2119_v56  ;;  %v2117_v61 = vpop.permute.xlu0 %2116  ;;  %v2133_v0 = vpop.permute.xlu2 %2132 }
 0x1fe   : > { %2206 = vst.msk [vmem:[#allocation2 + $0x1c] sm:$0xf] %vm2198_vm11, %v2117_v61  ;;  %v2503_v61 = vrot.slane %v2501_v48, 5  ;;  %v2699_v48 = vshll.u32 %v4296_v40, 16 }
 0x1ff   : > { %2214 = vst.msk [vmem:[#allocation2 + $0x3c] sm:$0xf] %vm2198_vm11, %v2133_v0  ;;  %v4283_v0 = vld [vmem:[%s4738_s28 + $0x54] sm:$0xf] }
 0x200   : > { %v2504_v6 = vor.u32 %v2503_v61, %v2500_v60  ;;  %v2594_v10 = vshrl.u32 %v4283_v0, 16  ;;  %v2597_v11 = vshll.u32 %v4283_v0, 16  ;;  %v2701_v61 = vrot.slane %v2699_v48, 5  ;;  %v4297_v0 = vld [vmem:[%s4738_s28 + $0x8c] sm:$0x1] }
 0x202   : > { %3212 = vrot.lane.b32.xlu1 %v3116_v2, %s4662_s9  ;;  %v4246_v2 = vld [vmem:[%s4738_s28 + $0x54] sm:$0xf]  ;;  %v2505_v15 = vrot.slane %v2504_v6, 4  ;;  %v2599_v21 = vrot.slane %v2597_v11, 5  ;;  %v4308_v6 = vld [vmem:[%s4738_s28 + $0xb8] sm:$0xf] }
 0x203   : > { %3210 = vrot.lane.b32.xlu0 %v3113_v5, %s4662_s9  ;;  %3196 = vrot.lane.b32.xlu2 %v3088_v9, %s4662_s9  ;;  %v3172_v5 = vsel %vm4924_vm6, %v3170_v57, %v3171_v58  ;;  %v3169_v9 = vsel %vm4924_vm6, %v4376_v63, %v3168_v46  ;;  %v4255_v57 = vld [vmem:[%s4738_s28 + $0x88] sm:$0xf]  ;;  %v4319_v58 = vld [vmem:[%s4738_s28 + $0x24] sm:$0xe]  ;;  %v2709_v11 = vshll.u32 %v4297_v0, 16 }
 0x204   : > { %v2125_v13 = vpop.permute.xlu1 %2124 }
 0x205   : > { %2210 = vst.msk [vmem:[#allocation2 + $0x2c] sm:$0xf] %vm2198_vm11, %v2125_v13  ;;  %v2123_v17 = vpop.permute.xlu0 %2122  ;;  %v2139_v20 = vpop.permute.xlu2 %2138  ;;  %v2519_v13 = vrot.slane %v2517_v4, 5 }
 0x206   : > { %2209 = vst.msk [vmem:[#allocation2 + $0x28] sm:$0xf] %vm2198_vm11, %v2123_v17  ;;  %v2609_v17 = vrot.slane %v2607_v8, 4  ;;  %v4307_v8 = vld [vmem:[%s4738_s28 + $0xb4] sm:$0xf] }
 0x207   : > { %2217 = vst.msk [vmem:[#allocation2 + $0x48] sm:$0xf] %vm2198_vm11, %v2139_v20  ;;  %v2596_v20 = vrot.slane %v2594_v10, 4  ;;  %v2520_v23 = vsel %vm4749_vm2, %v2515_v12, %v2519_v13 }
 0x208   : > { %v2610_v26 = vor.u32 %v2609_v17, %v2605_v16  ;;  %v2786_v17 = vshrl.u32 %v4307_v8, 16 }
 0x209   : > { %v2600_v29 = vor.u32 %v2599_v21, %v2596_v20  ;;  %v2711_v21 = vrot.slane %v2709_v11, 5  ;;  %v4287_v11 = vld [vmem:[%s4738_s28 + $0x64] sm:$0xf] }
 0x20a   : > { %2905 = vrot.lane.b32.xlu1 %v2774_v22, %s4661_s8  ;;  %v2611_v32 = vrot.slane %v2610_v26, 4 }
 0x20b   : > { %2891 = vrot.lane.b32.xlu0 %v2688_v24, %s4661_s8  ;;  %2889 = vrot.lane.b32.xlu2 %v2678_v28, %s4661_s8  ;;  %v2510_v24 = vsel %vm4749_vm2, %v2505_v15, %v2509_v53  ;;  %v4247_v28 = vld [vmem:[%s4738_s28 + $0x58] sm:$0xf]  ;;  %v2601_v33 = vrot.slane %v2600_v29, 4  ;;  %v2690_v53 = vshrl.u32 %v4295_v43, 16  ;;  %v2799_v15 = vshrl.u32 %v4308_v6, 16 }
 0x20c   : > { %v2131_v36 = vpop.permute.xlu1 %2130 }
 0x20d   : > { %2213 = vst.msk [vmem:[#allocation2 + $0x38] sm:$0xf] %vm2198_vm11, %v2131_v36  ;;  %v2129_v30 = vpop.permute.xlu0 %2128  ;;  %v2145_v41 = vpop.permute.xlu2 %2144  ;;  %v2606_v38 = vsel %vm4749_vm2, %v2601_v33, %v2605_v16  ;;  %v2801_v27 = vrot.slane %v2799_v15, 4  ;;  %v4286_v15 = vld [vmem:[%s4738_s28 + $0x60] sm:$0xf] }
 0x20e   : > { %2212 = vst.msk [vmem:[#allocation2 + $0x34] sm:$0xf] %vm2198_vm11, %v2129_v30  ;;  %v2616_v30 = vsel %vm4749_vm2, %v2611_v32, %v2615_v34  ;;  %v2788_v32 = vrot.slane %v2786_v17, 4 }
 0x20f   : > { %2220 = vst.msk [vmem:[#allocation2 + $0x54] sm:$0xf] %vm2198_vm11, %v2145_v41 }
 0x212   : > { %3228 = vrot.lane.b32.xlu1 %v3144_v42, %s4662_s9  ;;  %v4320_v42 = vld [vmem:[%s4738_s28 + $0x28] sm:$0xf] }
 0x213   : > { %3226 = vrot.lane.b32.xlu0 %v3141_v45, %s4662_s9  ;;  %2907 = vrot.lane.b32.xlu2 %v2784_v50, %s4661_s8  ;;  %v4262_v45 = vld [vmem:[%s4738_s28 + $0xb4] sm:$0xf]  ;;  %v4332_v50 = vld [vmem:[%s4738_s28 + $0x58] sm:$0xf]  ;;  %v3091_v51 = vrot.slane %v4320_v42, 5 }
 0x214   : > { %v2137_v56 = vpop.permute.xlu1 %2136  ;;  %v3119_v60 = vrot.slane %v4332_v50, 5 }
 0x215   : > { %2216 = vst.msk [vmem:[#allocation2 + $0x44] sm:$0xf] %vm2198_vm11, %v2137_v56  ;;  %v2135_v62 = vpop.permute.xlu0 %2134  ;;  %v2151_v55 = vpop.permute.xlu2 %2150  ;;  %v4321_v56 = vld [vmem:[%s4738_s28 + $0x2c] sm:$0x1]  ;;  %v3093_v52 = vrot.slane %v3091_v51, 4 }
 0x216   : > { %2215 = vst.msk [vmem:[#allocation2 + $0x40] sm:$0xf] %vm2198_vm11, %v2135_v62  ;;  %v2705_v62 = vrot.slane %v2703_v49, 4  ;;  %v3121_v29 = vrot.slane %v3119_v60, 4 }
 0x217   : > { %2223 = vst.msk [vmem:[#allocation2 + $0x60] sm:$0xf] %vm2198_vm11, %v2151_v55  ;;  %v3094_v55 = vrot.slane %v4321_v56, 5 }
 0x218   : > { %v2706_v10 = vor.u32 %v2705_v62, %v2701_v61 }
 0x219   : > { %v3095_v12 = vsel %vm4924_vm6, %v3093_v52, %v3094_v55  ;;  %v4355_v55 = vld [vmem:[%s4738_s28 + $0xb4] sm:$0xe] }
 0x21a   : > { %2316 = vrot.lane.b32.xlu1 %v4246_v2, %s4660_s7  ;;  %v2692_v2 = vrot.slane %v2690_v53, 4  ;;  %v2707_v20 = vrot.slane %v2706_v10, 4  ;;  %v4275_v10 = vld [vmem:[%s4738_s28 + $0x34] sm:$0xf] }
 0x21b   : > { %3244 = vrot.lane.b32.xlu0 %v3172_v5, %s4662_s9  ;;  %3242 = vrot.lane.b32.xlu2 %v3169_v9, %s4662_s9  ;;  %v4365_v5 = vrot.slane %v4319_v58, 9  ;;  %v3120_v9 = vsel %vm4924_vm6, %v4369_v59, %v3119_v60  ;;  %v4500_v59 = vld [vmem:[%s6287_s1 + $0x18] sm:$0xff] }
 0x21c   : > { %v2143_v14 = vpop.permute.xlu1 %2142  ;;  %v2696_v13 = vor.u32 %v2695_v3, %v2692_v2  ;;  %v2712_v33 = vsel %vm4749_vm2, %v2707_v20, %v2711_v21  ;;  %v2531_v20 = vshll.u32 %v4275_v10, 16  ;;  %v2627_v21 = vshll.u32 %v4287_v11, 16 }
 0x21d   : > { %2219 = vst.msk [vmem:[#allocation2 + $0x50] sm:$0xf] %vm2198_vm11, %v2143_v14  ;;  %v2141_v18 = vpop.permute.xlu0 %2140  ;;  %v2157_v22 = vpop.permute.xlu2 %2156  ;;  %v2795_v14 = vshll.u32 %v4308_v6, 16  ;;  %v3092_v16 = vsel %vm4924_vm6, %v4365_v5, %v3091_v51  ;;  %v4274_v51 = vld [vmem:[%s4738_s28 + $0x30] sm:$0xf] }
 0x21e   : > { %2218 = vst.msk [vmem:[#allocation2 + $0x4c] sm:$0xf] %vm2198_vm11, %v2141_v18  ;;  %v2789_v18 = vshll.u32 %v4307_v8, 16  ;;  %v2522_v62 = vshrl.u32 %v4274_v51, 16  ;;  %v4499_v5 = vld [vmem:[%s6287_s1 + $0x10] sm:$0xff] }
 0x21f   : > { %2226 = vst.msk [vmem:[#allocation2 + $0x6c] sm:$0xf] %vm2198_vm11, %v2157_v22  ;;  %v5830_v26 = vrot.slane %v2795_v14, 5 }
 0x220   : > { %v2791_v34 = vrot.slane %v2789_v18, 5  ;;  %v2524_v6 = vrot.slane %v2522_v62, 4  ;;  %v4498_v18 = vld [vmem:[%s6287_s1 + $0x8] sm:$0xff] }
 0x222   : > { %2863 = vrot.lane.b32.xlu1 %v2520_v23, %s4661_s8  ;;  %v2697_v23 = vrot.slane %v2696_v13, 4  ;;  %v2792_v43 = vor.u32 %v2791_v34, %v2788_v32  ;;  %v2533_v32 = vrot.slane %v2531_v20, 5  ;;  %v2629_v34 = vrot.slane %v2627_v21, 5  ;;  %v4335_v20 = vld [vmem:[%s4738_s28 + $0x64] sm:$0xf] }
 0x223   : > { %2861 = vrot.lane.b32.xlu0 %v2510_v24, %s4661_s8  ;;  %2318 = vrot.lane.b32.xlu2 %v4247_v28, %s4660_s7  ;;  %v4309_v24 = vld [vmem:[%s4738_s28 + $0xbc] sm:$0x1]  ;;  %v4310_v21 = vld [vmem:[%s4738_s28 + $0xc0] sm:$0xf] }
 0x224   : > { %v2149_v31 = vpop.permute.xlu1 %2148  ;;  %v2805_v40 = vshll.u32 %v4309_v24, 16  ;;  %v2793_v56 = vrot.slane %v2792_v43, 4  ;;  %v2618_v24 = vshrl.u32 %v4286_v15, 16 }
 0x225   : > { %2222 = vst.msk [vmem:[#allocation2 + $0x5c] sm:$0xf] %vm2198_vm11, %v2149_v31  ;;  %v2147_v36 = vpop.permute.xlu0 %2146  ;;  %v2163_v37 = vpop.permute.xlu2 %2162  ;;  %v3122_v31 = vrot.slane %v4333_v19, 5 }
 0x226   : > { %2221 = vst.msk [vmem:[#allocation2 + $0x58] sm:$0xf] %vm2198_vm11, %v2147_v36  ;;  %v2807_v50 = vrot.slane %v2805_v40, 5  ;;  %v2798_v0 = vsel %vm4749_vm2, %v2793_v56, %v5830_v26 }
 0x227   : > { %2229 = vst.msk [vmem:[#allocation2 + $0x78] sm:$0xf] %vm2198_vm11, %v2163_v37  ;;  %v3363_v37 = vld [vmem:[%s6287_s1 + $0x20] sm:$0xf]  ;;  %v3123_v42 = vsel %vm4924_vm6, %v3121_v29, %v3122_v31 }
 0x228   : > { %v4497_v29 = vld [vmem:[%s6287_s1] sm:$0xff] }
 0x22a   : > { %2332 = vrot.lane.b32.xlu1 %v4254_v35, %s4660_s7  ;;  %v2702_v35 = vsel %vm4749_vm2, %v2697_v23, %v2701_v61  ;;  %v4357_v61 = vld [vmem:[%s4738_s28 + $0xbc] sm:$0x1] }
 0x22b   : > { %2879 = vrot.lane.b32.xlu0 %v2616_v30, %s4661_s8  ;;  %2877 = vrot.lane.b32.xlu2 %v2606_v38, %s4661_s8  ;;  %v4343_v30 = vld [vmem:[%s4738_s28 + $0x84] sm:$0xe]  ;;  %v4344_v38 = vld [vmem:[%s4738_s28 + $0x88] sm:$0xf]  ;;  %v3178_v3 = vrot.slane %v4357_v61, 5 }
 0x22c   : > { %v2155_v39 = vpop.permute.xlu1 %2154 }
 0x22d   : > { %2225 = vst.msk [vmem:[#allocation2 + $0x68] sm:$0xf] %vm2198_vm11, %v2155_v39  ;;  %v2153_v41 = vpop.permute.xlu0 %2152  ;;  %v2299_v46 = vpop.permute.xlu2 %2298  ;;  %v2802_v39 = vor.u32 %v2801_v27, %v5830_v26  ;;  %v2621_v26 = vshll.u32 %v4286_v15, 16  ;;  %v2535_v27 = vshrl.u32 %v4275_v10, 16  ;;  %v4256_v10 = vld [vmem:[%s4738_s28 + $0x90] sm:$0xf] }
 0x22e   : > { %2224 = vst.msk [vmem:[#allocation2 + $0x64] sm:$0xf] %vm2198_vm11, %v2153_v41  ;;  %v3465_v41 = vunpack.c.l.b16 %v3363_v37  ;;  %v4288_v37 = vld [vmem:[%s4738_s28 + $0x68] sm:$0x1] }
 0x22f   : > { %2394 = vst.msk [vmem:[#allocation2 + $0x4] sm:$0xf] %vm2392_vm12, %v2299_v46  ;;  %v3147_v46 = vrot.slane %v4344_v38, 5  ;;  %v2803_v49 = vrot.slane %v2802_v39, 4  ;;  %v2537_v39 = vrot.slane %v2535_v27, 4 }
 0x231   : > { %v2808_v52 = vsel %vm4749_vm2, %v2803_v49, %v2807_v50  ;;  %v3149_v13 = vrot.slane %v3147_v46, 4 }
 0x232   : > { %2350 = vrot.lane.b32.xlu1 %v4263_v44, %s4660_s7  ;;  %v3470_v44 = vpack.c.b16 %v3465_v41, %v3465_v41  ;;  %v4276_v41 = vld [vmem:[%s4738_s28 + $0x38] sm:$0x1] }
 0x233   : > { %2348 = vrot.lane.b32.xlu0 %v4262_v45, %s4660_s7  ;;  %2334 = vrot.lane.b32.xlu2 %v4255_v57, %s4660_s7  ;;  %v4373_v45 = vrot.slane %v4343_v30, 9  ;;  %v3175_v57 = vrot.slane %v5850_v47, 5  ;;  %v2623_v30 = vrot.slane %v2621_v26, 5  ;;  %v4248_v47 = vld [vmem:[%s4738_s28 + $0x60] sm:$0xf]  ;;  %v2541_v49 = vshll.u32 %v4276_v41, 16 }
 0x234   : > { %v2161_v63 = vpop.permute.xlu1 %2160  ;;  %v3526_v53 = vsel %vm3524_vm13, %v3470_v44, 0  ;;  %v2637_v44 = vshll.u32 %v4288_v37, 16  ;;  %v4265_v37 = vld [vmem:[%s4738_s28 + $0xc4] sm:$0xf] }
 0x235   : > { %2228 = vst.msk [vmem:[#allocation2 + $0x74] sm:$0xf] %vm2198_vm11, %v2161_v63  ;;  %v2159_v4 = vpop.permute.xlu0 %2158  ;;  %v2305_v7 = vpop.permute.xlu2 %2304  ;;  %3531 = vmatpush.bf16.msra.mxu0 %v3526_v53  ;;  %4525 = vmatpush.bf16.msra.mxu1 %v3526_v53  ;;  %v3148_v60 = vsel %vm4924_vm6, %v4373_v45, %v3147_v46  ;;  %v2525_v63 = vshll.u32 %v4274_v51, 16  ;;  %v3177_v2 = vrot.slane %v3175_v57, 4  ;;  %v4249_v45 = vld [vmem:[%s4738_s28 + $0x64] sm:$0xf] }
 0x236   : > { %2227 = vst.msk [vmem:[#allocation2 + $0x70] sm:$0xf] %vm2198_vm11, %v2159_v4  ;;  %4526 = vmatpush.bf16.msra.mxu2 %v3526_v53  ;;  %4527 = vmatpush.bf16.msra.mxu3 %v3526_v53  ;;  %v4345_v4 = vld [vmem:[%s4738_s28 + $0x8c] sm:$0x1]  ;;  %v2639_v51 = vrot.slane %v2637_v44, 5 }
 0x237   : > { %2397 = vst.msk [vmem:[#allocation2 + $0x10] sm:$0xf] %vm2392_vm12, %v2305_v7  ;;  %v2527_v7 = vrot.slane %v2525_v63, 5  ;;  %v3150_v14 = vrot.slane %v4345_v4, 5  ;;  %v4298_v63 = vld [vmem:[%s4738_s28 + $0x90] sm:$0xf] }
 0x238   : > { %v2717_v4 = vshll.u32 %v4298_v63, 16 }
 0x239   : > { %3532 = vmatpush.bf16.msra.mxu0 %v4500_v59  ;;  %4528 = vmatpush.bf16.msra.mxu1 %v4500_v59  ;;  %v2528_v19 = vor.u32 %v2527_v7, %v2524_v6  ;;  %v4257_v7 = vld [vmem:[%s4738_s28 + $0x94] sm:$0xf] }
 0x23a   : > { %3214 = vrot.lane.b32.xlu1 %v3120_v9, %s4662_s9  ;;  %4529 = vmatpush.bf16.msra.mxu2 %v4500_v59  ;;  %v4377_v9 = vrot.slane %v4355_v55, 9  ;;  %v4323_v55 = vld [vmem:[%s4738_s28 + $0x34] sm:$0xf] }
 0x23b   : > { %3200 = vrot.lane.b32.xlu0 %v3095_v12, %s4662_s9  ;;  %3198 = vrot.lane.b32.xlu2 %v3092_v16, %s4662_s9  ;;  %v3179_v16 = vsel %vm4924_vm6, %v3177_v2, %v3178_v3  ;;  %v2529_v31 = vrot.slane %v2528_v19, 4  ;;  %v2714_v3 = vshrl.u32 %v4298_v63, 16  ;;  %v3098_v6 = vrot.slane %v4323_v55, 5 }
 0x23c   : > { %v2297_v22 = vpop.permute.xlu1 %2296  ;;  %4530 = vmatpush.bf16.msra.mxu3 %v4500_v59  ;;  %v3176_v23 = vsel %vm4924_vm6, %v4377_v9, %v3175_v57  ;;  %v4322_v9 = vld [vmem:[%s4738_s28 + $0x30] sm:$0xe] }
 0x23d   : > { %2393 = vst.msk [vmem:[#allocation2] sm:$0xf] %vm2392_vm12, %v2297_v22  ;;  %v2165_v28 = vpop.permute.xlu0 %2164  ;;  %v2311_v36 = vpop.permute.xlu2 %2310  ;;  %3533 = vmatpush.bf16.msra.mxu0 %v4499_v5  ;;  %4531 = vmatpush.bf16.msra.mxu1 %v4499_v5  ;;  %v2631_v22 = vshrl.u32 %v4287_v11, 16  ;;  %v2716_v11 = vrot.slane %v2714_v3, 4 }
 0x23e   : > { %2230 = vst.msk [vmem:[#allocation2 + $0x7c] sm:$0xf] %vm2198_vm11, %v2165_v28  ;;  %4532 = vmatpush.bf16.msra.mxu2 %v4499_v5  ;;  %v3151_v28 = vsel %vm4924_vm6, %v3149_v13, %v3150_v14  ;;  %v3100_v13 = vrot.slane %v3098_v6, 4 }
 0x23f   : > { %2400 = vst.msk [vmem:[#allocation2 + $0x1c] sm:$0xf] %vm2392_vm12, %v2311_v36  ;;  %v2633_v36 = vrot.slane %v2631_v22, 4 }
 0x240   : > { %4533 = vmatpush.bf16.msra.mxu3 %v4499_v5  ;;  %v4264_v5 = vld [vmem:[%s4738_s28 + $0xc0] sm:$0xf] }
 0x241   : > { %3534 = vmatpush.bf16.msra.mxu0 %v4498_v18  ;;  %4534 = vmatpush.bf16.msra.mxu1 %v4498_v18  ;;  %v2634_v43 = vor.u32 %v2633_v36, %v2629_v34  ;;  %v2813_v36 = vshll.u32 %v4310_v21, 16 }
 0x242   : > { %2895 = vrot.lane.b32.xlu1 %v2712_v33, %s4661_s8  ;;  %4535 = vmatpush.bf16.msra.mxu2 %v4498_v18 }
 0x243   : > { %2893 = vrot.lane.b32.xlu0 %v2702_v35, %s4661_s8  ;;  %3216 = vrot.lane.b32.xlu2 %v3123_v42, %s4662_s9  ;;  %v2620_v35 = vrot.slane %v2618_v24, 4  ;;  %v2534_v42 = vsel %vm4749_vm2, %v2529_v31, %v2533_v32  ;;  %v2635_v50 = vrot.slane %v2634_v43, 4  ;;  %v4336_v31 = vld [vmem:[%s4738_s28 + $0x68] sm:$0x1] }
 0x244   : > { %v2303_v48 = vpop.permute.xlu1 %2302  ;;  %4536 = vmatpush.bf16.msra.mxu3 %v4498_v18  ;;  %v4311_v18 = vld [vmem:[%s4738_s28 + $0xc4] sm:$0xf] }
 0x245   : > { %2396 = vst.msk [vmem:[#allocation2 + $0xc] sm:$0xf] %vm2392_vm12, %v2303_v48  ;;  %v2301_v54 = vpop.permute.xlu0 %2300  ;;  %v2858_v58 = vpop.permute.xlu2 %2857  ;;  %3535 = vmatpush.bf16.msra.mxu0 %v4497_v29  ;;  %4537 = vmatpush.bf16.msra.mxu1 %v4497_v29  ;;  %v2624_v46 = vor.u32 %v2623_v30, %v2620_v35  ;;  %v2538_v48 = vor.u32 %v2537_v39, %v2533_v32  ;;  %v2819_v27 = vshll.u32 %v4311_v18, 16  ;;  %v3126_v32 = vrot.slane %v4335_v20, 5  ;;  %v4334_v30 = vld [vmem:[%s4738_s28 + $0x60] sm:$0xe] }
 0x246   : > { %2395 = vst.msk [vmem:[#allocation2 + $0x8] sm:$0xf] %vm2392_vm12, %v2301_v54  ;;  %4538 = vmatpush.bf16.msra.mxu2 %v4497_v29  ;;  %v3129_v39 = vrot.slane %v4336_v31, 5 }
 0x247   : > { %2954 = vst.msk [vmem:[#allocation2] sm:$0xf] %vm2953_vm14, %v2858_v58  ;;  %v2625_v54 = vrot.slane %v2624_v46, 4  ;;  %v2539_v57 = vrot.slane %v2538_v48, 4  ;;  %v2543_v58 = vrot.slane %v2541_v49, 5  ;;  %v3128_v44 = vrot.slane %v3126_v32, 4 }
 0x248   : > { %4539 = vmatpush.bf16.msra.mxu3 %v4497_v29  ;;  %v4370_v49 = vrot.slane %v4334_v30, 9  ;;  %v4360_v30 = vld [vmem:[%s4738_s28 + $0xc8] sm:$0x1] }
 0x249   : > { %v2630_v61 = vsel %vm4749_vm2, %v2625_v54, %v2629_v34  ;;  %v2544_v62 = vsel %vm4749_vm2, %v2539_v57, %v2543_v58  ;;  %v2810_v34 = vshrl.u32 %v4310_v21, 16  ;;  %v3130_v58 = vsel %vm4924_vm6, %v3128_v44, %v3129_v39  ;;  %v4289_v21 = vld [vmem:[%s4738_s28 + $0x6c] sm:$0xf] }
 0x24a   : > { %3230 = vrot.lane.b32.xlu1 %v3148_v60, %s4662_s9  ;;  %v2640_v60 = vsel %vm4749_vm2, %v2635_v50, %v2639_v51  ;;  %v2645_v31 = vshll.u32 %v4289_v21, 16 }
 0x24b   : > { %2911 = vrot.lane.b32.xlu0 %v2808_v52, %s4661_s8  ;;  %2909 = vrot.lane.b32.xlu2 %v2798_v0, %s4661_s8  ;;  %v2812_v46 = vrot.slane %v2810_v34, 4 }
 0x24c   : > { %v2309_v8 = vpop.permute.xlu1 %2308  ;;  %v2647_v39 = vrot.slane %v2645_v31, 5 }
 0x24d   : > { %2399 = vst.msk [vmem:[#allocation2 + $0x18] sm:$0xf] %vm2392_vm12, %v2309_v8  ;;  %v2307_v12 = vpop.permute.xlu0 %2306  ;;  %v2876_v17 = vpop.permute.xlu2 %2875  ;;  %v4324_v8 = vld [vmem:[%s4738_s28 + $0x38] sm:$0x1] }
 0x24e   : > { %2398 = vst.msk [vmem:[#allocation2 + $0x14] sm:$0xf] %vm2392_vm12, %v2307_v12  ;;  %v2719_v12 = vrot.slane %v2717_v4, 5  ;;  %v3101_v14 = vrot.slane %v4324_v8, 5 }
 0x250   : > { %v2720_v22 = vor.u32 %v2719_v12, %v2716_v11  ;;  %v3102_v24 = vsel %vm4924_vm6, %v3100_v13, %v3101_v14  ;;  %v4359_v11 = vld [vmem:[%s4738_s28 + $0xc4] sm:$0xf]  ;;  %v4348_v13 = vld [vmem:[%s4738_s28 + $0x98] sm:$0x1] }
 0x251   : > { %v3157_v20 = vrot.slane %v4348_v13, 5 }
 0x252   : > { %3248 = vrot.lane.b32.xlu1 %v3179_v16, %s4662_s9  ;;  %v4366_v16 = vrot.slane %v4322_v9, 9  ;;  %v2721_v35 = vrot.slane %v2720_v22, 4  ;;  %v4358_v9 = vld [vmem:[%s4738_s28 + $0xc0] sm:$0xe] }
 0x253   : > { %3246 = vrot.lane.b32.xlu0 %v3176_v23, %s4662_s9  ;;  %3232 = vrot.lane.b32.xlu2 %v3151_v28, %s4662_s9  ;;  %v2823_v28 = vshrl.u32 %v4311_v18, 16  ;;  %v4278_v22 = vld [vmem:[%s4738_s28 + $0x40] sm:$0xf] }
 0x254   : > { %v2315_v33 = vpop.permute.xlu1 %2314  ;;  %v3099_v29 = vsel %vm4924_vm6, %v4366_v16, %v3098_v6  ;;  %v4378_v16 = vrot.slane %v4358_v9, 9 }
 0x255   : > { %2402 = vst.msk [vmem:[#allocation2 + $0x24] sm:$0xf] %vm2392_vm12, %v2315_v33  ;;  %v2313_v38 = vpop.permute.xlu0 %2312  ;;  %v2345_v40 = vpop.permute.xlu2 %2344  ;;  %v2825_v41 = vrot.slane %v2823_v28, 4 }
 0x256   : > { %2401 = vst.msk [vmem:[#allocation2 + $0x20] sm:$0xf] %vm2392_vm12, %v2313_v38 }
 0x257   : > { %2963 = vst.msk [vmem:[#allocation2 + $0x24] sm:$0xf] %vm2953_vm14, %v2876_v17  ;;  %v4299_v17 = vld [vmem:[%s4738_s28 + $0x94] sm:$0xf] }
 0x258   : > { %2417 = vst.msk [vmem:[#allocation2 + $0x60] sm:$0xf] %vm2392_vm12, %v2345_v40  ;;  %v2723_v26 = vshll.u32 %v4299_v17, 16  ;;  %v2727_v33 = vshrl.u32 %v4299_v17, 16  ;;  %v2821_v40 = vrot.slane %v2819_v27, 5  ;;  %v3182_v17 = vrot.slane %v4359_v11, 5 }
 0x259   : > { %v4277_v27 = vld [vmem:[%s4738_s28 + $0x3c] sm:$0xf] }
 0x25a   : > { %2865 = vrot.lane.b32.xlu1 %v2534_v42, %s4661_s8  ;;  %v2725_v38 = vrot.slane %v2723_v26, 5  ;;  %v2729_v50 = vrot.slane %v2727_v33, 4  ;;  %v3183_v28 = vsel %vm4924_vm6, %v4378_v16, %v3182_v17 }
 0x25b   : > { %2322 = vrot.lane.b32.xlu0 %v4249_v45, %s4660_s7  ;;  %2320 = vrot.lane.b32.xlu2 %v4248_v47, %s4660_s7  ;;  %v4312_v45 = vld [vmem:[%s4738_s28 + $0xc8] sm:$0x1]  ;;  %v2815_v47 = vrot.slane %v2813_v36, 5  ;;  %v2559_v36 = vshrl.u32 %v4278_v22, 16 }
 0x25c   : > { %v2874_v53 = vpop.permute.xlu1 %2873  ;;  %v2726_v54 = vsel %vm4749_vm2, %v2721_v35, %v2725_v38  ;;  %v2829_v57 = vshll.u32 %v4312_v45, 16  ;;  %v2549_v35 = vshll.u32 %v4277_v27, 16  ;;  %v3184_v45 = vrot.slane %v3182_v17, 4 }
 0x25d   : > { %2962 = vst.msk [vmem:[#allocation2 + $0x20] sm:$0xf] %vm2953_vm14, %v2874_v53  ;;  %v2860_v56 = vpop.permute.xlu0 %2859  ;;  %v3197_v59 = vpop.permute.xlu2 %3196  ;;  %v4300_v53 = vld [vmem:[%s4738_s28 + $0x98] sm:$0x1]  ;;  %v2561_v44 = vrot.slane %v2559_v36, 4 }
 0x25e   : > { %2955 = vst.msk [vmem:[#allocation2 + $0x4] sm:$0xf] %vm2953_vm14, %v2860_v56  ;;  %v2826_v56 = vor.u32 %v2825_v41, %v2821_v40 }
 0x25f   : > { %3292 = vst.msk [vmem:[#allocation2 + $0x4] sm:$0xf] %vm3290_vm15, %v3197_v59  ;;  %v2816_v59 = vor.u32 %v2815_v47, %v2812_v46 }
 0x260   : > { %v2827_v63 = vrot.slane %v2826_v56, 4 }
 0x262   : > { %2883 = vrot.lane.b32.xlu1 %v2640_v60, %s4661_s8  ;;  %v3127_v60 = vsel %vm4924_vm6, %v4370_v49, %v3126_v32  ;;  %v2555_v32 = vshll.u32 %v4278_v22, 16  ;;  %v4326_v22 = vld [vmem:[%s4738_s28 + $0x40] sm:$0xf] }
 0x263   : > { %2881 = vrot.lane.b32.xlu0 %v2630_v61, %s4661_s8  ;;  %2867 = vrot.lane.b32.xlu2 %v2544_v62, %s4661_s8  ;;  %v2730_v61 = vor.u32 %v2729_v50, %v2725_v38  ;;  %v2733_v62 = vshll.u32 %v4300_v53, 16  ;;  %v2551_v50 = vrot.slane %v2549_v35, 5  ;;  %v4251_v53 = vld [vmem:[%s4738_s28 + $0x70] sm:$0xf] }
 0x264   : > { %v2331_v52 = vpop.permute.xlu1 %2330 }
 0x265   : > { %2410 = vst.msk [vmem:[#allocation2 + $0x44] sm:$0xf] %vm2392_vm12, %v2331_v52  ;;  %v2329_v0 = vpop.permute.xlu0 %2328  ;;  %v2890_v2 = vpop.permute.xlu2 %2889  ;;  %v2831_v52 = vrot.slane %v2829_v57, 5  ;;  %v2735_v6 = vrot.slane %v2733_v62, 5  ;;  %v4250_v57 = vld [vmem:[%s4738_s28 + $0x6c] sm:$0xf] }
 0x266   : > { %2409 = vst.msk [vmem:[#allocation2 + $0x40] sm:$0xf] %vm2392_vm12, %v2329_v0  ;;  %v2817_v0 = vrot.slane %v2816_v59, 4 }
 0x267   : > { %2970 = vst.msk [vmem:[#allocation2 + $0x40] sm:$0xf] %vm2953_vm14, %v2890_v2  ;;  %v4347_v2 = vld [vmem:[%s4738_s28 + $0x94] sm:$0xf]  ;;  %v2832_v8 = vsel %vm4749_vm2, %v2827_v63, %v2831_v52 }
 0x268   : > { %v3154_v12 = vrot.slane %v4347_v2, 5 }
 0x26a   : > { %2352 = vrot.lane.b32.xlu1 %v4264_v5, %s4660_s7  ;;  %v2731_v5 = vrot.slane %v2730_v61, 4 }
 0x26b   : > { %2338 = vrot.lane.b32.xlu0 %v4257_v7, %s4660_s7  ;;  %2336 = vrot.lane.b32.xlu2 %v4256_v10, %s4660_s7  ;;  %v2822_v10 = vsel %vm4749_vm2, %v2817_v0, %v2821_v40  ;;  %v2557_v40 = vrot.slane %v2555_v32, 5  ;;  %v4302_v32 = vld [vmem:[%s4738_s28 + $0xa0] sm:$0xf] }
 0x26c   : > { %v3195_v15 = vpop.permute.xlu1 %3194  ;;  %v2736_v14 = vsel %vm4749_vm2, %v2731_v5, %v2735_v6 }
 0x26d   : > { %3291 = vst.msk [vmem:[#allocation2] sm:$0xf] %vm3290_vm15, %v3195_v15  ;;  %v2347_v19 = vpop.permute.xlu0 %2346  ;;  %v2908_v23 = vpop.permute.xlu2 %2907  ;;  %v4346_v15 = vld [vmem:[%s4738_s28 + $0x90] sm:$0xe] }
 0x26e   : > { %2418 = vst.msk [vmem:[#allocation2 + $0x64] sm:$0xf] %vm2392_vm12, %v2347_v19  ;;  %v3156_v19 = vrot.slane %v3154_v12, 4 }
 0x26f   : > { %2979 = vst.msk [vmem:[#allocation2 + $0x64] sm:$0xf] %vm2953_vm14, %v2908_v23 }
 0x270   : > { %v3158_v34 = vsel %vm4924_vm6, %v3156_v19, %v3157_v20  ;;  %v4259_v19 = vld [vmem:[%s4738_s28 + $0xa0] sm:$0xf]  ;;  %v4258_v20 = vld [vmem:[%s4738_s28 + $0x9c] sm:$0xf] }
 0x272   : > { %3204 = vrot.lane.b32.xlu1 %v3102_v24, %s4662_s9  ;;  %v4374_v24 = vrot.slane %v4346_v15, 9 }
 0x273   : > { %3202 = vrot.lane.b32.xlu0 %v3099_v29, %s4662_s9  ;;  %2354 = vrot.lane.b32.xlu2 %v4265_v37, %s4660_s7  ;;  %v2642_v29 = vshrl.u32 %v4289_v21, 16  ;;  %v2546_v37 = vshrl.u32 %v4277_v27, 16  ;;  %v4325_v21 = vld [vmem:[%s4738_s28 + $0x3c] sm:$0xe] }
 0x274   : > { %v3213_v42 = vpop.permute.xlu1 %3212  ;;  %v4481_v43 = vld [vmem:[#allocation2] sm:$0xff]  ;;  %v3155_v33 = vsel %vm4924_vm6, %v4374_v24, %v3154_v12  ;;  %v4367_v24 = vrot.slane %v4325_v21, 9  ;;  %v4315_v21 = vld [vmem:[%s4738_s28 + $0xd4] sm:$0x1] }
 0x275   : > { %3300 = vst.msk [vmem:[#allocation2 + $0x24] sm:$0xf] %vm3290_vm15, %v3213_v42  ;;  %v3211_v48 = vpop.permute.xlu0 %3210  ;;  %4460 = vmatmul.msk.bf16.vlgmr.msra.gmra.mxu0 %vm3475_vm0, %v4481_v43  ;;  %v3243_v51 = vpop.permute.xlu2 %3242  ;;  %v2644_v38 = vrot.slane %v2642_v29, 4  ;;  %v4290_v42 = vld [vmem:[%s4738_s28 + $0x70] sm:$0xf]  ;;  %v2548_v49 = vrot.slane %v2546_v37, 4 }
 0x276   : > { %3299 = vst.msk [vmem:[#allocation2 + $0x20] sm:$0xf] %vm3290_vm15, %v3211_v48  ;;  %v4279_v43 = vld [vmem:[%s4738_s28 + $0x44] sm:$0x1]  ;;  %v3185_v48 = vrot.slane %v4360_v30, 5  ;;  %v2651_v56 = vshll.u32 %v4290_v42, 16 }
 0x277   : > { %v2565_v59 = vshll.u32 %v4279_v43, 16  ;;  %v2552_v62 = vor.u32 %v2551_v50, %v2548_v49  ;;  %v4313_v29 = vld [vmem:[%s4738_s28 + $0xcc] sm:$0xf]  ;;  %v4301_v43 = vld [vmem:[%s4738_s28 + $0x9c] sm:$0xf] }
 0x278   : > { %v3186_v61 = vsel %vm4924_vm6, %v3184_v45, %v3185_v48  ;;  %v2653_v52 = vrot.slane %v2651_v56, 5  ;;  %v2834_v35 = vshrl.u32 %v4313_v29, 16  ;;  %v2837_v30 = vshll.u32 %v4313_v29, 16  ;;  %v4327_v45 = vld [vmem:[%s4738_s28 + $0x44] sm:$0x1] }
 0x279   : > { %v2567_v2 = vrot.slane %v2565_v59, 5  ;;  %v2553_v5 = vrot.slane %v2552_v62, 4  ;;  %v4303_v56 = vld [vmem:[%s4738_s28 + $0xa4] sm:$0x1] }
 0x27a   : > { %2897 = vrot.lane.b32.xlu1 %v2726_v54, %s4661_s8  ;;  %v2648_v54 = vor.u32 %v2647_v39, %v2644_v38  ;;  %v4267_v38 = vld [vmem:[%s4738_s28 + $0xd0] sm:$0xf]  ;;  %v4337_v39 = vld [vmem:[%s4738_s28 + $0x6c] sm:$0xe]  ;;  %v2836_v50 = vrot.slane %v2834_v35, 4 }
 0x27b   : > { %3220 = vrot.lane.b32.xlu0 %v3130_v58, %s4662_s9  ;;  %3218 = vrot.lane.b32.xlu2 %v3127_v60, %s4662_s9  ;;  %v2562_v58 = vor.u32 %v2561_v44, %v2557_v40  ;;  %v2655_v60 = vshrl.u32 %v4290_v42, 16  ;;  %v2558_v11 = vsel %vm4749_vm2, %v2553_v5, %v2557_v40  ;;  %v2747_v40 = vshll.u32 %v4302_v32, 16  ;;  %v4266_v42 = vld [vmem:[%s4738_s28 + $0xcc] sm:$0xf]  ;;  %v4362_v35 = vld [vmem:[%s4738_s28 + $0xd0] sm:$0xf] }
 0x27c   : > { %v2906_v55 = vpop.permute.xlu1 %2905  ;;  %v2649_v63 = vrot.slane %v2648_v54, 4  ;;  %v4371_v49 = vrot.slane %v4337_v39, 9  ;;  %v4314_v54 = vld [vmem:[%s4738_s28 + $0xd0] sm:$0xf]  ;;  %v2757_v5 = vshll.u32 %v4303_v56, 16 }
 0x27d   : > { %2978 = vst.msk [vmem:[#allocation2 + $0x60] sm:$0xf] %vm2953_vm14, %v2906_v55  ;;  %v2892_v3 = vpop.permute.xlu0 %2891  ;;  %v4485_v4 = vld [vmem:[#allocation2 + $0x20] sm:$0xff]  ;;  %v2319_v7 = vpop.permute.xlu2 %2318  ;;  %v2563_v0 = vrot.slane %v2562_v58, 4  ;;  %v2657_v6 = vrot.slane %v2655_v60, 4 }
 0x27e   : > { %2971 = vst.msk [vmem:[#allocation2 + $0x44] sm:$0xf] %vm2953_vm14, %v2892_v3  ;;  %4464 = vmatmul.msk.bf16.vlgmr.msra.gmra.mxu1 %vm3475_vm0, %v4485_v4  ;;  %v2654_v9 = vsel %vm4749_vm2, %v2649_v63, %v2653_v52 }
 0x27f   : > { %3315 = vst.msk [vmem:[#allocation2 + $0x60] sm:$0xf] %vm3290_vm15, %v3243_v51  ;;  %v2658_v12 = vor.u32 %v2657_v6, %v2653_v52  ;;  %v2847_v6 = vshrl.u32 %v4314_v54, 16 }
 0x280   : > { %2404 = vst.msk [vmem:[#allocation2 + $0x2c] sm:$0xf] %vm2392_vm12, %v2319_v7 }
 0x281   : > { %v2659_v16 = vrot.slane %v2658_v12, 4 }
 0x282   : > { %2915 = vrot.lane.b32.xlu1 %v2832_v8, %s4661_s8  ;;  %v4291_v8 = vld [vmem:[%s4738_s28 + $0x74] sm:$0x1] }
 0x283   : > { %2913 = vrot.lane.b32.xlu0 %v2822_v10, %s4661_s8  ;;  %2899 = vrot.lane.b32.xlu2 %v2736_v14, %s4661_s8  ;;  %v2568_v10 = vsel %vm4749_vm2, %v2563_v0, %v2567_v2  ;;  %v2661_v13 = vshll.u32 %v4291_v8, 16  ;;  %v2843_v2 = vshll.u32 %v4314_v54, 16 }
 0x284   : > { %v3229_v18 = vpop.permute.xlu1 %3228 }
 0x285   : > { %3308 = vst.msk [vmem:[#allocation2 + $0x44] sm:$0xf] %vm3290_vm15, %v3229_v18  ;;  %v3227_v23 = vpop.permute.xlu0 %3226  ;;  %v2878_v26 = vpop.permute.xlu2 %2877  ;;  %v2663_v17 = vrot.slane %v2661_v13, 5 }
 0x286   : > { %3307 = vst.msk [vmem:[#allocation2 + $0x40] sm:$0xf] %vm3290_vm15, %v3227_v23 }
 0x287   : > { %v2664_v23 = vsel %vm4749_vm2, %v2659_v16, %v2663_v17 }
 0x28a   : > { %3250 = vrot.lane.b32.xlu1 %v3183_v28, %s4662_s9  ;;  %v4338_v28 = vld [vmem:[%s4738_s28 + $0x70] sm:$0xf] }
 0x28b   : > { %3236 = vrot.lane.b32.xlu0 %v3158_v34, %s4662_s9  ;;  %3234 = vrot.lane.b32.xlu2 %v3155_v33, %s4662_s9  ;;  %v4339_v34 = vld [vmem:[%s4738_s28 + $0x74] sm:$0x1]  ;;  %v3133_v37 = vrot.slane %v4338_v28, 5 }
 0x28c   : > { %v2317_v41 = vpop.permute.xlu1 %2316  ;;  %v3136_v44 = vrot.slane %v4339_v34, 5 }
 0x28d   : > { %2403 = vst.msk [vmem:[#allocation2 + $0x28] sm:$0xf] %vm2392_vm12, %v2317_v41  ;;  %v3245_v46 = vpop.permute.xlu0 %3244  ;;  %v4489_v47 = vld [vmem:[#allocation2 + $0x40] sm:$0xff]  ;;  %v2335_v51 = vpop.permute.xlu2 %2334  ;;  %v2751_v41 = vshrl.u32 %v4302_v32, 16  ;;  %v3135_v48 = vrot.slane %v3133_v37, 4 }
 0x28e   : > { %3316 = vst.msk [vmem:[#allocation2 + $0x64] sm:$0xf] %vm3290_vm15, %v3245_v46  ;;  %4468 = vmatmul.msk.bf16.vlgmr.msra.gmra.mxu2 %vm3475_vm0, %v4489_v47  ;;  %v2738_v46 = vshrl.u32 %v4301_v43, 16  ;;  %v2741_v47 = vshll.u32 %v4301_v43, 16  ;;  %v4363_v43 = vld [vmem:[%s4738_s28 + $0xd4] sm:$0x1] }
 0x28f   : > { %2964 = vst.msk [vmem:[#allocation2 + $0x28] sm:$0xf] %vm2953_vm14, %v2878_v26  ;;  %v3105_v26 = vrot.slane %v4326_v22, 5  ;;  %v2753_v58 = vrot.slane %v2751_v41, 4 }
 0x290   : > { %2412 = vst.msk [vmem:[#allocation2 + $0x4c] sm:$0xf] %vm2392_vm12, %v2335_v51  ;;  %v2839_v51 = vrot.slane %v2837_v30, 5  ;;  %v2740_v62 = vrot.slane %v2738_v46, 4  ;;  %v2743_v63 = vrot.slane %v2741_v47, 5 }
 0x291   : > { %v3106_v33 = vsel %vm4924_vm6, %v4367_v24, %v3105_v26  ;;  %v3107_v60 = vrot.slane %v3105_v26, 4  ;;  %v4351_v26 = vld [vmem:[%s4738_s28 + $0xa4] sm:$0x1] }
 0x292   : > { %2326 = vrot.lane.b32.xlu1 %v4251_v53, %s4660_s7  ;;  %v2840_v0 = vor.u32 %v2839_v51, %v2836_v50  ;;  %v2744_v8 = vor.u32 %v2743_v63, %v2740_v62  ;;  %v3164_v34 = vrot.slane %v4351_v26, 5 }
 0x293   : > { %2324 = vrot.lane.b32.xlu0 %v4250_v57, %s4660_s7  ;;  %3252 = vrot.lane.b32.xlu2 %v3186_v61, %s4662_s9  ;;  %v2749_v57 = vrot.slane %v2747_v40, 5  ;;  %v3108_v61 = vrot.slane %v4327_v45, 5  ;;  %v4361_v45 = vld [vmem:[%s4738_s28 + $0xcc] sm:$0xe] }
 0x294   : > { %v2864_v55 = vpop.permute.xlu1 %2863  ;;  %v4379_v51 = vrot.slane %v4361_v45, 9 }
 0x295   : > { %2957 = vst.msk [vmem:[#allocation2 + $0xc] sm:$0xf] %vm2953_vm14, %v2864_v55  ;;  %v2862_v3 = vpop.permute.xlu0 %2861  ;;  %v4493_v4 = vld [vmem:[#allocation2 + $0x60] sm:$0xff]  ;;  %v3199_v7 = vpop.permute.xlu2 %3198  ;;  %v3137_v55 = vsel %vm4924_vm6, %v3135_v48, %v3136_v44 }
 0x296   : > { %2956 = vst.msk [vmem:[#allocation2 + $0x8] sm:$0xf] %vm2953_vm14, %v2862_v3  ;;  %4472 = vmatmul.msk.bf16.vlgmr.msra.gmra.mxu3 %vm3475_vm0, %v4493_v4  ;;  %v3134_v3 = vsel %vm4924_vm6, %v4371_v49, %v3133_v37  ;;  %v2754_v4 = vor.u32 %v2753_v58, %v2749_v57  ;;  %v3192_v49 = vrot.slane %v4363_v43, 5 }
 0x297   : > { %3293 = vst.msk [vmem:[#allocation2 + $0x8] sm:$0xf] %vm3290_vm15, %v3199_v7  ;;  %v3109_v7 = vsel %vm4924_vm6, %v3107_v60, %v3108_v61 }
 0x298   : > { %v2755_v13 = vrot.slane %v2754_v4, 4 }
 0x29a   : > { %2885 = vrot.lane.b32.xlu1 %v2654_v9, %s4661_s8  ;;  %v2841_v9 = vrot.slane %v2840_v0, 4 }
 0x29b   : > { %2871 = vrot.lane.b32.xlu0 %v2568_v10, %s4661_s8  ;;  %2869 = vrot.lane.b32.xlu2 %v2558_v11, %s4661_s8  ;;  %v2845_v10 = vrot.slane %v2843_v2, 5 }
 0x29c   : > { %v2333_v14 = vpop.permute.xlu1 %2332 }
 0x29d   : > { %2411 = vst.msk [vmem:[#allocation2 + $0x48] sm:$0xf] %vm2392_vm12, %v2333_v14  ;;  %v2880_v15 = vpop.permute.xlu0 %2879  ;;  %v3217_v18 = vpop.permute.xlu2 %3216  ;;  %v2759_v14 = vrot.slane %v2757_v5, 5  ;;  %v2846_v22 = vsel %vm4749_vm2, %v2841_v9, %v2845_v10 }
 0x29e   : > { %2965 = vst.msk [vmem:[#allocation2 + $0x2c] sm:$0xf] %vm2953_vm14, %v2880_v15  ;;  %v4350_v15 = vld [vmem:[%s4738_s28 + $0xa0] sm:$0xf] }
 0x29f   : > { %3302 = vst.msk [vmem:[#allocation2 + $0x2c] sm:$0xf] %vm3290_vm15, %v3217_v18  ;;  %v2745_v18 = vrot.slane %v2744_v8, 4  ;;  %v2760_v24 = vsel %vm4749_vm2, %v2755_v13, %v2759_v14 }
 0x2a1   : > { %v2750_v28 = vsel %vm4749_vm2, %v2745_v18, %v2749_v57 }
 0x2a2   : > { %2342 = vrot.lane.b32.xlu1 %v4259_v19, %s4660_s7  ;;  %v2849_v19 = vrot.slane %v2847_v6, 4 }
 0x2a3   : > { %2340 = vrot.lane.b32.xlu0 %v4258_v20, %s4660_s7  ;;  %2887 = vrot.lane.b32.xlu2 %v2664_v23, %s4661_s8  ;;  %v3161_v23 = vrot.slane %v4350_v15, 5 }
 0x2a4   : > { %v2351_v27 = vpop.permute.xlu1 %2350  ;;  %v2850_v29 = vor.u32 %v2849_v19, %v2845_v10 }
 0x2a5   : > { %2420 = vst.msk [vmem:[#allocation2 + $0x6c] sm:$0xf] %vm2392_vm12, %v2351_v27  ;;  %v2349_v31 = vpop.permute.xlu0 %2348  ;;  %v2910_v36 = vpop.permute.xlu2 %2909  ;;  %v4349_v27 = vld [vmem:[%s4738_s28 + $0x9c] sm:$0xe]  ;;  %v3163_v32 = vrot.slane %v3161_v23, 4 }
 0x2a6   : > { %2419 = vst.msk [vmem:[#allocation2 + $0x68] sm:$0xf] %vm2392_vm12, %v2349_v31  ;;  %v2853_v31 = vshll.u32 %v4315_v21, 16  ;;  %v2851_v30 = vrot.slane %v2850_v29, 4 }
 0x2a7   : > { %2980 = vst.msk [vmem:[#allocation2 + $0x68] sm:$0xf] %vm2953_vm14, %v2910_v36  ;;  %v3165_v40 = vsel %vm4924_vm6, %v3163_v32, %v3164_v34 }
 0x2aa   : > { %3206 = vrot.lane.b32.xlu1 %v3106_v33, %s4662_s9  ;;  %v4375_v33 = vrot.slane %v4349_v27, 9 }
 0x2ab   : > { %2358 = vrot.lane.b32.xlu0 %v4267_v38, %s4660_s7  ;;  %2356 = vrot.lane.b32.xlu2 %v4266_v42, %s4660_s7  ;;  %v2855_v38 = vrot.slane %v2853_v31, 5  ;;  %v3189_v42 = vrot.slane %v4362_v35, 5  ;;  %s4501_s7 = sshll.u32 %s4706_s16, 5 }
 0x2ac   : > { %v3215_v53 = vpop.permute.xlu1 %3214  ;;  %v3162_v41 = vsel %vm4924_vm6, %v4375_v33, %v3161_v23  ;;  %v6158_v33 = vld [vmem:[%s6288_s2] ss:$0 sm:$0xff]  ;;  %s4004_s11 = scalar_lea.hbm %s6289_s3, %s4501_s7 }
 0x2ad   : > { %3301 = vst.msk [vmem:[#allocation2 + $0x28] sm:$0xf] %vm3290_vm15, %v3215_v53  ;;  %v3201_v59 = vpop.permute.xlu0 %3200  ;;  %v3233_v52 = vpop.permute.xlu2 %3232  ;;  %v2856_v44 = vsel %vm4749_vm2, %v2851_v30, %v2855_v38  ;;  %v3191_v48 = vrot.slane %v3189_v42, 4  ;;  %v3190_v54 = vsel %vm4924_vm6, %v4379_v51, %v3189_v42  ;;  %s4007_s19 = sshll.u32 %s4004_s11, 4  ;;  %s4008_s19 = int_to_ptr.hbm [resolvable:$true] %s4007_s19 }
 0x2ae   : > { %3294 = vst.msk [vmem:[#allocation2 + $0xc] sm:$0xf] %vm3290_vm15, %v3201_v59  ;;  %s4605_s24 = sshra.s32 %s4008_s19, 4  ;;  %s4606_s24 = int_to_ptr.hbm [resolvable:$true] %s4605_s24 }
 0x2af   : > { %v3193_v53 = vsel %vm4924_vm6, %v3191_v48, %v3192_v49  ;;  %s4607_s16 = scalar_lea.hbm %s4606_s24, 32  ;;  %p4612_p0 = scmp.lt.s32.totalorder %s4606_s24, %s6289_s3 }
 0x2b0   : > { %p4608_p11 = scmp.ne.s32.totalorder %s4606_s24, %s4607_s16  ;;  %p4613_p1 = scmp.lt.s32.totalorder %s4611_s27, %s4607_s16 }
 0x2b2   : > { %3224 = vrot.lane.b32.xlu1 %v3137_v55, %s4662_s9  ;;  %p4609_p12 = pnand %p4608_p11, %p4723_p5  ;;  %p4614_p2 = por %p4613_p1, %p4612_p0 }
 0x2b3   : > { %3222 = vrot.lane.b32.xlu0 %v3134_v3, %s4662_s9  ;;  %3208 = vrot.lane.b32.xlu2 %v3109_v7, %s4662_s9 }
 0x2b4   : > { %v2896_v11 = vpop.permute.xlu1 %2895  ;;  %v4486_v12 = vld [vmem:[#allocation2 + $0x28] sm:$0xff]  ;;  %p4610_p13 = pneg %p4609_p12 }
 0x2b5   : > { %2973 = vst.msk [vmem:[#allocation2 + $0x4c] sm:$0xf] %vm2953_vm14, %v2896_v11  ;;  %v2894_v16 = vpop.permute.xlu0 %2893  ;;  %v4482_v17 = vld [vmem:[#allocation2 + $0x8] sm:$0xff]  ;;  %4465 = vmatmul.msk.bf16.gmra.mxu1 %vm3475_vm0, %v4486_v12  ;;  %v2321_v20 = vpop.permute.xlu2 %2320 }
 0x2b6   : > { %2972 = vst.msk [vmem:[#allocation2 + $0x48] sm:$0xf] %vm2953_vm14, %v2894_v16  ;;  %4461 = vmatmul.msk.bf16.gmra.mxu0 %vm3475_vm0, %v4482_v17  ;;  %p4615_p3 = pnand %p4614_p2, %p4610_p13 }
 0x2b7   : > { %3310 = vst.msk [vmem:[#allocation2 + $0x4c] sm:$0xf] %vm3290_vm15, %v3233_v52 }
 0x2b8   : > { %2405 = vst.msk [vmem:[#allocation2 + $0x30] sm:$0xf] %vm2392_vm12, %v2321_v20 }
 0x2ba   : > { %2917 = vrot.lane.b32.xlu1 %v2846_v22, %s4661_s8 }
 0x2bb   : > { %2903 = vrot.lane.b32.xlu0 %v2760_v24, %s4661_s8  ;;  %2901 = vrot.lane.b32.xlu2 %v2750_v28, %s4661_s8 }
 0x2bc   : > { %v3231_v36 = vpop.permute.xlu1 %3230 }
 0x2bd   : > { %3309 = vst.msk [vmem:[#allocation2 + $0x48] sm:$0xf] %vm3290_vm15, %v3231_v36  ;;  %v2912_v37 = vpop.permute.xlu0 %2911  ;;  %v2868_v39 = vpop.permute.xlu2 %2867 }
 0x2be   : > { %2981 = vst.msk [vmem:[#allocation2 + $0x6c] sm:$0xf] %vm2953_vm14, %v2912_v37 }
 0x2bf   : > { %2959 = vst.msk [vmem:[#allocation2 + $0x14] sm:$0xf] %vm2953_vm14, %v2868_v39 }
 0x2c2   : > { %3240 = vrot.lane.b32.xlu1 %v3165_v40, %s4662_s9 }
 0x2c3   : > { %3238 = vrot.lane.b32.xlu0 %v3162_v41, %s4662_s9  ;;  %2919 = vrot.lane.b32.xlu2 %v2856_v44, %s4661_s8  ;;  %v4663_v41 = vmov 1966171168  }
 0x2c4   : > { %v3249_v46 = vpop.permute.xlu1 %3248  ;;  %v4490_v47 = vld [vmem:[#allocation2 + $0x48] sm:$0xff]  ;;  %v3650_v42 = vunpack.c.l.s4 %v4663_v41 }
 0x2c5   : > { %3318 = vst.msk [vmem:[#allocation2 + $0x6c] sm:$0xf] %vm3290_vm15, %v3249_v46  ;;  %v3247_v50 = vpop.permute.xlu0 %3246  ;;  %4469 = vmatmul.msk.bf16.gmra.mxu2 %vm3475_vm0, %v4490_v47  ;;  %v2337_v25 = vpop.permute.xlu2 %2336 }
 0x2c6   : > { %3317 = vst.msk [vmem:[#allocation2 + $0x68] sm:$0xf] %vm3290_vm15, %v3247_v50  ;;  %v6166_v47 = vunpack.c.0.s8 %v3650_v42 }
 0x2c7   : > { %2413 = vst.msk [vmem:[#allocation2 + $0x50] sm:$0xf] %vm2392_vm12, %v2337_v25 }
 0x2cb   : > { %3256 = vrot.lane.b32.xlu0 %v3193_v53, %s4662_s9  ;;  %3254 = vrot.lane.b32.xlu2 %v3190_v54, %s4662_s9 }
 0x2cc   : > { %v2866_v56 = vpop.permute.xlu1 %2865 }
 0x2cd   : > { %2958 = vst.msk [vmem:[#allocation2 + $0x10] sm:$0xf] %vm2953_vm14, %v2866_v56  ;;  %v2323_v57 = vpop.permute.xlu0 %2322  ;;  %v4494_v58 = vld [vmem:[#allocation2 + $0x68] sm:$0xff]  ;;  %v2355_v59 = vpop.permute.xlu2 %2354 }
 0x2ce   : > { %2406 = vst.msk [vmem:[#allocation2 + $0x34] sm:$0xf] %vm2392_vm12, %v2323_v57  ;;  %4473 = vmatmul.msk.bf16.gmra.mxu3 %vm3475_vm0, %v4494_v58 }
 0x2cf   : > { %2422 = vst.msk [vmem:[#allocation2 + $0x74] sm:$0xf] %vm2392_vm12, %v2355_v59 }
 0x2d4   : > { %v2884_v60 = vpop.permute.xlu1 %2883 }
 0x2d5   : > { %2967 = vst.msk [vmem:[#allocation2 + $0x34] sm:$0xf] %vm2953_vm14, %v2884_v60  ;;  %v2882_v1 = vpop.permute.xlu0 %2881  ;;  %v3219_v61 = vpop.permute.xlu2 %3218 }
 0x2d6   : > { %2966 = vst.msk [vmem:[#allocation2 + $0x30] sm:$0xf] %vm2953_vm14, %v2882_v1 }
 0x2d7   : > { %3303 = vst.msk [vmem:[#allocation2 + $0x30] sm:$0xf] %vm3290_vm15, %v3219_v61 }
 0x2dc   : > { %v2353_v62 = vpop.permute.xlu1 %2352 }
 0x2dd   : > { %2421 = vst.msk [vmem:[#allocation2 + $0x70] sm:$0xf] %vm2392_vm12, %v2353_v62  ;;  %v2339_v63 = vpop.permute.xlu0 %2338  ;;  %v2900_v52 = vpop.permute.xlu2 %2899 }
 0x2de   : > { %2414 = vst.msk [vmem:[#allocation2 + $0x54] sm:$0xf] %vm2392_vm12, %v2339_v63 }
 0x2df   : > { %2975 = vst.msk [vmem:[#allocation2 + $0x54] sm:$0xf] %vm2953_vm14, %v2900_v52 }
 0x2e4   : > { %v3205_v55 = vpop.permute.xlu1 %3204 }
 0x2e5   : > { %3296 = vst.msk [vmem:[#allocation2 + $0x14] sm:$0xf] %vm3290_vm15, %v3205_v55  ;;  %v3203_v0 = vpop.permute.xlu0 %3202  ;;  %v3235_v2 = vpop.permute.xlu2 %3234 }
 0x2e6   : > { %3295 = vst.msk [vmem:[#allocation2 + $0x10] sm:$0xf] %vm3290_vm15, %v3203_v0 }
 0x2ec   : > { %v2898_v3 = vpop.permute.xlu1 %2897 }
 0x2ed   : > { %2974 = vst.msk [vmem:[#allocation2 + $0x50] sm:$0xf] %vm2953_vm14, %v2898_v3  ;;  %v3221_v4 = vpop.permute.xlu0 %3220  ;;  %v4483_v5 = vld [vmem:[#allocation2 + $0x10] sm:$0xff]  ;;  %v3253_v6 = vpop.permute.xlu2 %3252 }
 0x2ee   : > { %3304 = vst.msk [vmem:[#allocation2 + $0x34] sm:$0xf] %vm3290_vm15, %v3221_v4  ;;  %4462 = vmatmul.msk.bf16.gmra.mxu0 %vm3475_vm0, %v4483_v5 }
 0x2ef   : > { %3311 = vst.msk [vmem:[#allocation2 + $0x50] sm:$0xf] %vm3290_vm15, %v3235_v2 }
 0x2f2   : > { %v3537_v29 = vpop.f32.mrf.mxu0 }
 0x2f3   : > { %v3538_v40 = vadd.f32 %v6158_v33, %v3537_v29 }
 0x2f4   : > { %v2916_v7 = vpop.permute.xlu1 %2915 }
 0x2f5   : > { %2983 = vst.msk [vmem:[#allocation2 + $0x74] sm:$0xf] %vm2953_vm14, %v2916_v7  ;;  %v2914_v8 = vpop.permute.xlu0 %2913  ;;  %v4487_v9 = vld [vmem:[#allocation2 + $0x30] sm:$0xff]  ;;  %v2870_v10 = vpop.permute.xlu2 %2869  ;;  %v3617_v46 = vmax.f32 %v3538_v40, 0.0 }
 0x2f6   : > { %2982 = vst.msk [vmem:[#allocation2 + $0x70] sm:$0xf] %vm2953_vm14, %v2914_v8  ;;  %4466 = vmatmul.msk.bf16.gmra.mxu1 %vm3475_vm0, %v4487_v9 }
 0x2f7   : > { %3320 = vst.msk [vmem:[#allocation2 + $0x74] sm:$0xf] %vm3290_vm15, %v3253_v6  ;;  %v3652_v54 = vperm.slane %v3617_v46, %v6166_v47 }
 0x2f8   : > { %2960 = vst.msk [vmem:[#allocation2 + $0x18] sm:$0xf] %vm2953_vm14, %v2870_v10 }
 0x2f9   : > { %v3809_v52 = vrot.slane %v3652_v54, 4 }
 0x2fa   : > { %v3539_v37 = vpop.f32.mrf.mxu0 }
 0x2fb   : > { %v3557_v31 = vpop.f32.mrf.mxu1  ;;  %v3540_v56 = vadd.f32 %v6158_v33, %v3539_v37  ;;  %v3873_v10 = vmax.f32 %v3652_v54, %v3809_v52 }
 0x2fc   : > { %v3251_v11 = vpop.permute.xlu1 %3250  ;;  %v3558_v30 = vadd.f32 %v6158_v33, %v3557_v31 }
 0x2fd   : > { %3319 = vst.msk [vmem:[#allocation2 + $0x70] sm:$0xf] %vm3290_vm15, %v3251_v11  ;;  %v3237_v12 = vpop.permute.xlu0 %3236  ;;  %v2888_v13 = vpop.permute.xlu2 %2887  ;;  %v3618_v55 = vmax.f32 %v3540_v56, 0.0 }
 0x2fe   : > { %3312 = vst.msk [vmem:[#allocation2 + $0x54] sm:$0xf] %vm3290_vm15, %v3237_v12  ;;  %v3625_v45 = vmax.f32 %v3558_v30, 0.0 }
 0x2ff   : > { %v3656_v11 = vperm.slane %v3618_v55, %v6166_v47 }
 0x300   : > { %v3684_v49 = vperm.slane %v3625_v45, %v6166_v47 }
 0x302   : > { %v3817_v61 = vrot.slane %v3684_v49, 4 }
 0x303   : > { %v3559_v35 = vpop.f32.mrf.mxu1 }
 0x304   : > { %v2327_v14 = vpop.permute.xlu1 %2326  ;;  %v4495_v15 = vld [vmem:[#allocation2 + $0x70] sm:$0xff]  ;;  %v3560_v50 = vadd.f32 %v6158_v33, %v3559_v35  ;;  %v3881_v5 = vmax.f32 %v3684_v49, %v3817_v61 }
 0x305   : > { %2408 = vst.msk [vmem:[#allocation2 + $0x3c] sm:$0xf] %vm2392_vm12, %v2327_v14  ;;  %v2325_v16 = vpop.permute.xlu0 %2324  ;;  %v4491_v17 = vld [vmem:[#allocation2 + $0x50] sm:$0xff]  ;;  %4474 = vmatmul.msk.bf16.gmra.mxu3 %vm3475_vm0, %v4495_v15  ;;  %v2357_v18 = vpop.permute.xlu2 %2356 }
 0x306   : > { %2407 = vst.msk [vmem:[#allocation2 + $0x38] sm:$0xf] %vm2392_vm12, %v2325_v16  ;;  %4470 = vmatmul.msk.bf16.gmra.mxu2 %vm3475_vm0, %v4491_v17  ;;  %v3626_v62 = vmax.f32 %v3560_v50, 0.0 }
 0x307   : > { %2969 = vst.msk [vmem:[#allocation2 + $0x3c] sm:$0xf] %vm2953_vm14, %v2888_v13 }
 0x308   : > { %2423 = vst.msk [vmem:[#allocation2 + $0x78] sm:$0xf] %vm2392_vm12, %v2357_v18  ;;  %v3688_v6 = vperm.slane %v3626_v62, %v6166_v47 }
 0x30c   : > { %v2886_v19 = vpop.permute.xlu1 %2885 }
 0x30d   : > { %2968 = vst.msk [vmem:[#allocation2 + $0x38] sm:$0xf] %vm2953_vm14, %v2886_v19  ;;  %v2872_v20 = vpop.permute.xlu0 %2871  ;;  %v3209_v21 = vpop.permute.xlu2 %3208 }
 0x30e   : > { %2961 = vst.msk [vmem:[#allocation2 + $0x1c] sm:$0xf] %vm2953_vm14, %v2872_v20  ;;  %v3818_v20 = vrot.slane %v3688_v6, 4 }
 0x30f   : > { %3298 = vst.msk [vmem:[#allocation2 + $0x1c] sm:$0xf] %vm3290_vm15, %v3209_v21 }
 0x310   : > { %v3882_v31 = vmax.f32 %v3688_v6, %v3818_v20 }
 0x311   : > { %v3577_v60 = vpop.f32.mrf.mxu2 }
 0x314   : > { %v2343_v22 = vpop.permute.xlu1 %2342 }
 0x315   : > { %2416 = vst.msk [vmem:[#allocation2 + $0x5c] sm:$0xf] %vm2392_vm12, %v2343_v22  ;;  %v2341_v23 = vpop.permute.xlu0 %2340  ;;  %v2902_v24 = vpop.permute.xlu2 %2901 }
 0x316   : > { %2415 = vst.msk [vmem:[#allocation2 + $0x58] sm:$0xf] %vm2392_vm12, %v2341_v23  ;;  %v3810_v23 = vrot.slane %v3656_v11, 4 }
 0x317   : > { %2976 = vst.msk [vmem:[#allocation2 + $0x58] sm:$0xf] %vm2953_vm14, %v2902_v24 }
 0x319   : > { %v3597_v21 = vpop.f32.mrf.mxu3  ;;  %v3579_v24 = vpop.f32.mrf.mxu2 }
 0x31a   : > { %v3580_v41 = vadd.f32 %v6158_v33, %v3579_v24 }
 0x31c   : > { %v3207_v26 = vpop.permute.xlu1 %3206 }
 0x31d   : > { %3297 = vst.msk [vmem:[#allocation2 + $0x18] sm:$0xf] %vm3290_vm15, %v3207_v26  ;;  %v2359_v27 = vpop.permute.xlu0 %2358  ;;  %v2920_v28 = vpop.permute.xlu2 %2919 }
 0x31e   : > { %2424 = vst.msk [vmem:[#allocation2 + $0x7c] sm:$0xf] %vm2392_vm12, %v2359_v27  ;;  %v3578_v27 = vadd.f32 %v6158_v33, %v3577_v60 }
 0x31f   : > { %2985 = vst.msk [vmem:[#allocation2 + $0x7c] sm:$0xf] %vm2953_vm14, %v2920_v28 }
 0x320   : > { %v3633_v35 = vmax.f32 %v3578_v27, 0.0 }
 0x321   : > { %v3599_v42 = vpop.f32.mrf.mxu3 }
 0x322   : > { %v3716_v40 = vperm.slane %v3633_v35, %v6166_v47  ;;  %v3600_v60 = vadd.f32 %v6158_v33, %v3599_v42 }
 0x324   : > { %v3225_v32 = vpop.permute.xlu1 %3224  ;;  %v4484_v34 = vld [vmem:[#allocation2 + $0x18] sm:$0xff]  ;;  %v3825_v46 = vrot.slane %v3716_v40, 4 }
 0x325   : > { %3306 = vst.msk [vmem:[#allocation2 + $0x3c] sm:$0xf] %vm3290_vm15, %v3225_v32  ;;  %v3223_v36 = vpop.permute.xlu0 %3222  ;;  %4463 = vmatmul.msk.bf16.gmra.mxu0 %vm3475_vm0, %v4484_v34  ;;  %v3255_v39 = vpop.permute.xlu2 %3254  ;;  %v3874_v34 = vmax.f32 %v3656_v11, %v3810_v23 }
 0x326   : > { %3305 = vst.msk [vmem:[#allocation2 + $0x38] sm:$0xf] %vm3290_vm15, %v3223_v36 }
 0x32c   : > { %v2918_v38 = vpop.permute.xlu1 %2917 }
 0x32d   : > { %2984 = vst.msk [vmem:[#allocation2 + $0x78] sm:$0xf] %vm2953_vm14, %v2918_v38  ;;  %v2904_v43 = vpop.permute.xlu0 %2903  ;;  %v4488_v44 = vld [vmem:[#allocation2 + $0x38] sm:$0xff] }
 0x32e   : > { %2977 = vst.msk [vmem:[#allocation2 + $0x5c] sm:$0xf] %vm2953_vm14, %v2904_v43  ;;  %4467 = vmatmul.msk.bf16.gmra.mxu1 %vm3475_vm0, %v4488_v44  ;;  %v3598_v44 = vadd.f32 %v6158_v33, %v3597_v21 }
 0x32f   : > { %3321 = vst.msk [vmem:[#allocation2 + $0x78] sm:$0xf] %vm3290_vm15, %v3255_v39 }
 0x330   : > { %v3641_v50 = vmax.f32 %v3598_v44, 0.0 }
 0x332   : > { %v3562_v48 = vpop.f32.mrf.mxu1 }
 0x333   : > { %v3542_v25 = vpop.f32.mrf.mxu0  ;;  %v3563_v53 = vadd.f32 %v6158_v33, %v3562_v48  ;;  %v3634_v48 = vmax.f32 %v3580_v41, 0.0 }
 0x334   : > { %v3241_v51 = vpop.permute.xlu1 %3240  ;;  %v3543_v58 = vadd.f32 %v6158_v33, %v3542_v25 }
 0x335   : > { %3314 = vst.msk [vmem:[#allocation2 + $0x5c] sm:$0xf] %vm3290_vm15, %v3241_v51  ;;  %v3239_v57 = vpop.permute.xlu0 %3238  ;;  %v3627_v59 = vmax.f32 %v3563_v53, 0.0  ;;  %v3889_v53 = vmax.f32 %v3716_v40, %v3825_v46  ;;  %v3720_v54 = vperm.slane %v3634_v48, %v6166_v47 }
 0x336   : > { %3313 = vst.msk [vmem:[#allocation2 + $0x58] sm:$0xf] %vm3290_vm15, %v3239_v57  ;;  %v3619_v1 = vmax.f32 %v3543_v58, 0.0 }
 0x337   : > { %v3692_v63 = vperm.slane %v3627_v59, %v6166_v47  ;;  %v3748_v59 = vperm.slane %v3641_v50, %v6166_v47  ;;  %v3826_v55 = vrot.slane %v3720_v54, 4 }
 0x338   : > { %v3660_v0 = vperm.slane %v3619_v1, %v6166_v47 }
 0x339   : > { %v3819_v2 = vrot.slane %v3692_v63, 4 }
 0x33a   : > { %v3811_v3 = vrot.slane %v3660_v0, 4  ;;  %v3564_v4 = vpop.f32.mrf.mxu1 }
 0x33b   : > { %v3883_v7 = vmax.f32 %v3692_v63, %v3819_v2  ;;  %v3544_v8 = vpop.f32.mrf.mxu0  ;;  %v3565_v9 = vadd.f32 %v6158_v33, %v3564_v4  ;;  %v3833_v2 = vrot.slane %v3748_v59, 4 }
 0x33c   : > { %v3875_v12 = vmax.f32 %v3660_v0, %v3811_v3  ;;  %v3545_v14 = vadd.f32 %v6158_v33, %v3544_v8  ;;  %v3642_v3 = vmax.f32 %v3600_v60, 0.0 }
 0x33d   : > { %v3257_v13 = vpop.permute.xlu0 %3256  ;;  %v4492_v15 = vld [vmem:[#allocation2 + $0x58] sm:$0xff]  ;;  %v3909_v16 = vmax.f32 %v3881_v5, %v3883_v7  ;;  %v3628_v17 = vmax.f32 %v3565_v9, 0.0  ;;  %v3890_v7 = vmax.f32 %v3720_v54, %v3826_v55 }
 0x33e   : > { %3322 = vst.msk [vmem:[#allocation2 + $0x7c] sm:$0xf] %vm3290_vm15, %v3257_v13  ;;  %v3905_v18 = vmax.f32 %v3873_v10, %v3875_v12  ;;  %v3620_v19 = vmax.f32 %v3545_v14, 0.0  ;;  %4471 = vmatmul.msk.bf16.gmra.mxu2 %vm3475_vm0, %v4492_v15  ;;  %v3897_v10 = vmax.f32 %v3748_v59, %v3833_v2  ;;  %v3752_v11 = vperm.slane %v3642_v3, %v6166_v47 }
 0x33f   : > { %3947 = vst [vmem:[#allocation1 + $0x20] ss:$2 sm:$0xff] %v3909_v16  ;;  %v3696_v22 = vperm.slane %v3628_v17, %v6166_v47 }
 0x340   : > { %3937 = vst [vmem:[#allocation1] ss:$2 sm:$0xff] %v3905_v18  ;;  %v3664_v26 = vperm.slane %v3620_v19, %v6166_v47  ;;  %v3834_v18 = vrot.slane %v3752_v11, 4 }
 0x341   : > { %v3820_v28 = vrot.slane %v3696_v22, 4 }
 0x342   : > { %v3812_v29 = vrot.slane %v3664_v26, 4  ;;  %v3898_v21 = vmax.f32 %v3752_v11, %v3834_v18 }
 0x343   : > { %v3884_v32 = vmax.f32 %v3696_v22, %v3820_v28 }
 0x344   : > { %v3876_v36 = vmax.f32 %v3664_v26, %v3812_v29 }
 0x345   : > { %v4496_v37 = vld [vmem:[#allocation2 + $0x78] sm:$0xff]  ;;  %v3910_v30 = vmax.f32 %v3882_v31, %v3884_v32 }
 0x346   : > { %v3906_v38 = vmax.f32 %v3874_v34, %v3876_v36  ;;  %4475 = vmatmul.msk.bf16.gmra.mxu3 %vm3475_vm0, %v4496_v37 }
 0x347   : > { %3949 = vst [vmem:[#allocation1 + $0x21] ss:$2 sm:$0xff] %v3910_v30 }
 0x348   : > { %3939 = vst [vmem:[#allocation1 + $0x1] ss:$2 sm:$0xff] %v3906_v38  ;;  %v3582_v39 = vpop.f32.mrf.mxu2 }
 0x349   : > { %v3583_v43 = vadd.f32 %v6158_v33, %v3582_v39 }
 0x34b   : > { %v3635_v45 = vmax.f32 %v3583_v43, 0.0 }
 0x34d   : > { %v3724_v49 = vperm.slane %v3635_v45, %v6166_v47 }
 0x34e   : > { %v6204_v17 = vld.sshfl [vmem:[#allocation1 + $0x20] sm:$0xff pattern:$0x75316420] }
 0x34f   : > { %v3827_v51 = vrot.slane %v3724_v49, 4  ;;  %v6198_v63 = vld.sshfl [vmem:[#allocation1] sm:$0xff pattern:$0x75316420] }
 0x350   : > { %v3584_v25 = vpop.f32.mrf.mxu2 }
 0x351   : > { %v3891_v56 = vmax.f32 %v3724_v49, %v3827_v51  ;;  %v3585_v57 = vadd.f32 %v6158_v33, %v3584_v25  ;;  %v3602_v58 = vpop.f32.mrf.mxu3 }
 0x352   : > { %v3603_v1 = vadd.f32 %v6158_v33, %v3602_v58 }
 0x353   : > { %v3913_v61 = vmax.f32 %v3889_v53, %v3891_v56  ;;  %v3636_v62 = vmax.f32 %v3585_v57, 0.0 }
 0x354   : > { %v3643_v52 = vmax.f32 %v3603_v1, 0.0 }
 0x355   : > { %3956 = vst [vmem:[#allocation1] ss:$2 sm:$0xff] %v3913_v61  ;;  %v3728_v0 = vperm.slane %v3636_v62, %v6166_v47 }
 0x356   : > { %v3756_v4 = vperm.slane %v3643_v52, %v6166_v47 }
 0x357   : > { %v3828_v5 = vrot.slane %v3728_v0, 4 }
 0x358   : > { %v3835_v6 = vrot.slane %v3756_v4, 4 }
 0x359   : > { %v3892_v8 = vmax.f32 %v3728_v0, %v3828_v5  ;;  %v3604_v9 = vpop.f32.mrf.mxu3 }
 0x35a   : > { %v3899_v12 = vmax.f32 %v3756_v4, %v3835_v6  ;;  %v3605_v13 = vadd.f32 %v6158_v33, %v3604_v9 }
 0x35b   : > { %v3914_v14 = vmax.f32 %v3890_v7, %v3892_v8 }
 0x35c   : > { %v3917_v15 = vmax.f32 %v3897_v10, %v3899_v12  ;;  %v3644_v16 = vmax.f32 %v3605_v13, 0.0 }
 0x35d   : > { %3957 = vst [vmem:[#allocation1 + $0x1] ss:$2 sm:$0xff] %v3914_v14 }
 0x35e   : > { %3962 = vst [vmem:[#allocation1 + $0x20] ss:$2 sm:$0xff] %v3917_v15  ;;  %v3760_v19 = vperm.slane %v3644_v16, %v6166_v47 }
 0x360   : > { %v3836_v20 = vrot.slane %v3760_v19, 4 }
 0x362   : > { %v3900_v22 = vmax.f32 %v3760_v19, %v3836_v20 }
 0x364   : > { %v3918_v23 = vmax.f32 %v3898_v21, %v3900_v22 }
 0x366   : > { %3963 = vst [vmem:[#allocation1 + $0x21] ss:$2 sm:$0xff] %v3918_v23 }
 0x36b   : > { %v3547_v24 = vpop.f32.mrf.mxu0 }
 0x36c   : > { %v3548_v28 = vadd.f32 %v6158_v33, %v3547_v24 }
 0x36e   : > { %v3621_v29 = vmax.f32 %v3548_v28, 0.0 }
 0x370   : > { %v3668_v32 = vperm.slane %v3621_v29, %v6166_v47 }
 0x372   : > { %v3813_v38 = vrot.slane %v3668_v32, 4 }
 0x373   : > { %v3567_v26 = vpop.f32.mrf.mxu1  ;;  %v3549_v27 = vpop.f32.mrf.mxu0 }
 0x374   : > { %v3550_v34 = vadd.f32 %v6158_v33, %v3549_v27  ;;  %v3568_v35 = vadd.f32 %v6158_v33, %v3567_v26  ;;  %v3877_v44 = vmax.f32 %v3668_v32, %v3813_v38 }
 0x376   : > { %v3622_v39 = vmax.f32 %v3550_v34, 0.0  ;;  %v3629_v41 = vmax.f32 %v3568_v35, 0.0 }
 0x378   : > { %v3672_v45 = vperm.slane %v3622_v39, %v6166_v47  ;;  %v3700_v50 = vperm.slane %v3629_v41, %v6166_v47 }
 0x37a   : > { %v3814_v57 = vrot.slane %v3672_v45, 4  ;;  %v3821_v60 = vrot.slane %v3700_v50, 4 }
 0x37b   : > { %v3569_v36 = vpop.f32.mrf.mxu1 }
 0x37c   : > { %v3570_v51 = vadd.f32 %v6158_v33, %v3569_v36  ;;  %v3878_v55 = vmax.f32 %v3672_v45, %v3814_v57  ;;  %v3885_v3 = vmax.f32 %v3700_v50, %v3821_v60 }
 0x37e   : > { %v3630_v1 = vmax.f32 %v3570_v51, 0.0 }
 0x380   : > { %v3704_v4 = vperm.slane %v3630_v1, %v6166_v47 }
 0x382   : > { %v3822_v11 = vrot.slane %v3704_v4, 4 }
 0x384   : > { %v3886_v16 = vmax.f32 %v3704_v4, %v3822_v11 }
 0x388   : > { %v3607_v10 = vpop.f32.mrf.mxu3 }
 0x389   : > { %v3587_v58 = vpop.f32.mrf.mxu2  ;;  %v3608_v24 = vadd.f32 %v6158_v33, %v3607_v10 }
 0x38a   : > { %v3588_v13 = vadd.f32 %v6158_v33, %v3587_v58 }
 0x38b   : > { %v3645_v34 = vmax.f32 %v3608_v24, 0.0 }
 0x38c   : > { %v3637_v19 = vmax.f32 %v3588_v13, 0.0 }
 0x38d   : > { %v3764_v39 = vperm.slane %v3645_v34, %v6166_v47 }
 0x38e   : > { %v3732_v23 = vperm.slane %v3637_v19, %v6166_v47 }
 0x38f   : > { %v3837_v51 = vrot.slane %v3764_v39, 4 }
 0x390   : > { %v3609_v26 = vpop.f32.mrf.mxu3  ;;  %v3829_v32 = vrot.slane %v3732_v23, 4 }
 0x391   : > { %v3589_v14 = vpop.f32.mrf.mxu2  ;;  %v3901_v58 = vmax.f32 %v3764_v39, %v3837_v51 }
 0x392   : > { %v3590_v28 = vadd.f32 %v6158_v33, %v3589_v14  ;;  %v3893_v38 = vmax.f32 %v3732_v23, %v3829_v32 }
 0x3a2   : > { %v3552_v31 = vpop.f32.mrf.mxu0 }
 0x3a3   : > { %v3553_v37 = vadd.f32 %v6158_v33, %v3552_v31 }
 0x3a5   : > { %v3623_v30 = vmax.f32 %v3553_v37, 0.0 }
 0x3a7   : > { %v3676_v40 = vperm.slane %v3623_v30, %v6166_v47 }
 0x3a9   : > { %v3815_v42 = vrot.slane %v3676_v40, 4 }
 0x3aa   : > { %v3554_v43 = vpop.f32.mrf.mxu0 }
 0x3ab   : > { %v3879_v46 = vmax.f32 %v3676_v40, %v3815_v42  ;;  %v3555_v48 = vadd.f32 %v6158_v33, %v3554_v43  ;;  %v3572_v49 = vpop.f32.mrf.mxu1  ;;  %v3610_v40 = vadd.f32 %v6158_v33, %v3609_v26 }
 0x3ac   : > { %v3573_v25 = vadd.f32 %v6158_v33, %v3572_v49 }
 0x3ad   : > { %v3907_v53 = vmax.f32 %v3877_v44, %v3879_v46  ;;  %v3624_v54 = vmax.f32 %v3555_v48, 0.0 }
 0x3ae   : > { %v3631_v56 = vmax.f32 %v3573_v25, 0.0 }
 0x3af   : > { %3942 = vst [vmem:[#allocation1 + $0x10] ss:$2 sm:$0xff] %v3907_v53  ;;  %v3680_v59 = vperm.slane %v3624_v54, %v6166_v47 }
 0x3b0   : > { %v3708_v61 = vperm.slane %v3631_v56, %v6166_v47 }
 0x3b1   : > { %v3816_v62 = vrot.slane %v3680_v59, 4 }
 0x3b2   : > { %v3823_v52 = vrot.slane %v3708_v61, 4 }
 0x3b3   : > { %v3880_v0 = vmax.f32 %v3680_v59, %v3816_v62  ;;  %v3574_v2 = vpop.f32.mrf.mxu1 }
 0x3b4   : > { %v3887_v5 = vmax.f32 %v3708_v61, %v3823_v52  ;;  %v3575_v6 = vadd.f32 %v6158_v33, %v3574_v2 }
 0x3b5   : > { %v3908_v7 = vmax.f32 %v3878_v55, %v3880_v0 }
 0x3b6   : > { %v3911_v8 = vmax.f32 %v3885_v3, %v3887_v5  ;;  %v3632_v9 = vmax.f32 %v3575_v6, 0.0 }
 0x3b7   : > { %3944 = vst [vmem:[#allocation1 + $0x11] ss:$2 sm:$0xff] %v3908_v7 }
 0x3b8   : > { %3952 = vst [vmem:[#allocation1 + $0x30] ss:$2 sm:$0xff] %v3911_v8  ;;  %v3712_v12 = vperm.slane %v3632_v9, %v6166_v47  ;;  %v3958_v9 = vld.sshfl [vmem:[#allocation1] sm:$0xff pattern:$0x75316420] }
 0x3ba   : > { %v3824_v15 = vrot.slane %v3712_v12, 4 }
 0x3bc   : > { %v3888_v18 = vmax.f32 %v3712_v12, %v3824_v15 }
 0x3be   : > { %v3912_v20 = vmax.f32 %v3886_v16, %v3888_v18  ;;  %v3945_v21 = vld.sshfl [vmem:[#allocation1 + $0x10] sm:$0xff pattern:$0x75316420] }
 0x3bf   : > { %v4505_v22 = vpack.c.bf16 %v3945_v21, %v6198_v63  ;;  %v3638_v63 = vmax.f32 %v3590_v28, 0.0 }
 0x3c0   : > { %3954 = vst [vmem:[#allocation1 + $0x31] ss:$2 sm:$0xff] %v3912_v20 }
 0x3c1   : > { %v3592_v27 = vpop.f32.mrf.mxu2  ;;  %4506 = vst [vmem:[%s6230_s6] sm:$0xff] %v4505_v22   ;;  %v3736_v43 = vperm.slane %v3638_v63, %v6166_v47 }
 0x3c2   : > { %v3593_v29 = vadd.f32 %v6158_v33, %v3592_v27 }
 0x3c3   : > { %v3830_v25 = vrot.slane %v3736_v43, 4 }
 0x3c4   : > { %v3639_v31 = vmax.f32 %v3593_v29, 0.0 }
 0x3c5   : > { %v3894_v1 = vmax.f32 %v3736_v43, %v3830_v25 }
 0x3c6   : > { %v3740_v36 = vperm.slane %v3639_v31, %v6166_v47 }
 0x3c7   : > { %v3955_v37 = vld.sshfl [vmem:[#allocation1 + $0x30] sm:$0xff pattern:$0x75316420] }
 0x3c8   : > { %v3831_v35 = vrot.slane %v3740_v36, 4  ;;  %v4510_v30 = vpack.c.bf16 %v3955_v37, %v6204_v17  ;;  %v3646_v17 = vmax.f32 %v3610_v40, 0.0 }
 0x3c9   : > { %v3594_v41 = vpop.f32.mrf.mxu2  ;;  %v3612_v42 = vpop.f32.mrf.mxu3 }
 0x3ca   : > { %v3895_v44 = vmax.f32 %v3740_v36, %v3831_v35  ;;  %v3595_v45 = vadd.f32 %v6158_v33, %v3594_v41  ;;  %v3613_v46 = vadd.f32 %v6158_v33, %v3612_v42  ;;  %4522 = vst [vmem:[%s6230_s6 + $0x8] sm:$0xff] %v4510_v30   ;;  %v3768_v59 = vperm.slane %v3646_v17, %v6166_v47 }
 0x3cc   : > { %v3915_v48 = vmax.f32 %v3893_v38, %v3895_v44  ;;  %v3640_v49 = vmax.f32 %v3595_v45, 0.0  ;;  %v3647_v50 = vmax.f32 %v3613_v46, 0.0  ;;  %v3838_v3 = vrot.slane %v3768_v59, 4 }
 0x3ce   : > { %3959 = vst [vmem:[#allocation1 + $0x10] ss:$2 sm:$0xff] %v3915_v48  ;;  %v3744_v53 = vperm.slane %v3640_v49, %v6166_v47  ;;  %v3772_v54 = vperm.slane %v3647_v50, %v6166_v47  ;;  %v3902_v6 = vmax.f32 %v3768_v59, %v3838_v3 }
 0x3d0   : > { %v3832_v56 = vrot.slane %v3744_v53, 4  ;;  %v3839_v57 = vrot.slane %v3772_v54, 4 }
 0x3d1   : > { %v3614_v60 = vpop.f32.mrf.mxu3 }
 0x3d2   : > { %v3896_v61 = vmax.f32 %v3744_v53, %v3832_v56  ;;  %v3903_v62 = vmax.f32 %v3772_v54, %v3839_v57  ;;  %v3615_v52 = vadd.f32 %v6158_v33, %v3614_v60 }
 0x3d4   : > { %v3916_v55 = vmax.f32 %v3894_v1, %v3896_v61  ;;  %v3919_v0 = vmax.f32 %v3901_v58, %v3903_v62  ;;  %v3648_v2 = vmax.f32 %v3615_v52, 0.0 }
 0x3d6   : > { %3960 = vst [vmem:[#allocation1 + $0x11] ss:$2 sm:$0xff] %v3916_v55  ;;  %v3776_v4 = vperm.slane %v3648_v2, %v6166_v47  ;;  %v3964_v47 = vld.sshfl [vmem:[#allocation1 + $0x20] sm:$0xff pattern:$0x75316420] }
 0x3d7   : > { %3965 = vst [vmem:[#allocation1 + $0x30] ss:$2 sm:$0xff] %v3919_v0 }
 0x3d8   : > { %v3840_v5 = vrot.slane %v3776_v4, 4 }
 0x3da   : > { %v3904_v7 = vmax.f32 %v3776_v4, %v3840_v5 }
 0x3dc   : > { %v3920_v8 = vmax.f32 %v3902_v6, %v3904_v7 }
 0x3dd   : > { %v3961_v10 = vld.sshfl [vmem:[#allocation1 + $0x10] sm:$0xff pattern:$0x75316420] }
 0x3de   : > { %3966 = vst [vmem:[#allocation1 + $0x31] ss:$2 sm:$0xff] %v3920_v8  ;;  %v4515_v33 = vpack.c.bf16 %v3961_v10, %v3958_v9 }
 0x3e0   : > { %4523 = vst [vmem:[%s6230_s6 + $0x10] sm:$0xff] %v4515_v33  }
 0x3e5   : > { %v3967_v11 = vld.sshfl [vmem:[#allocation1 + $0x30] sm:$0xff pattern:$0x75316420] }
 0x3e6   : > { %v4520_v12 = vpack.c.bf16 %v3967_v11, %v3964_v47 }
 0x3e8   : > { %4524 = vst [vmem:[%s6230_s6 + $0x18] sm:$0xff] %v4520_v12  }
 0x3e9   : > { %4618 = shalt.err (!%p4615_p3)
}
 0x3ea   : > { %s4664_s30 = smov 4  }
 0x3eb   : > { %4541 = dma.vmem_to_hbm [thread:$0]  (%p4723_p5), %s4006_s17, 512, %s4008_s19, %s3993_s20, %s4662_s9, %s4662_s9, %s4664_s30  }
 0x3ec PF: > { %p4547_p4 = scmp.ge.s32.totalorder %s4653_s15, 2  ;;  %s4022_s4 = sand.u32 1, %s4641_s12  }
 0x3ed   : > { %s4023_s5 = scalar_lea.sflag [#allocation4], %s4022_s4 }
 0x3ee   : > { %p4544_p7 = pnand %p4547_p4, %p4727_p6 }
 0x3f0   : > { %p4545_p8 = pneg %p4544_p7 }
 0x3f2   : > { %4636 = dma.done.wait (%p4545_p8), %s4023_s5, 512  }
 0x3f3   : > { %4638 = vsyncadd (%p4545_p8), %s4023_s5, 4294966784  ;;  %p13_p9 = scmp.ge.s32.totalorder %s4710_s18, 4   ;;  %s6296_s12 = smov %s4645_s13 }
 0x3f4   : > { %s6297_s13 = smov %s4649_s14  ;;  %s6298_s14 = smov %s4721_s21 }
 0x3f5   : > { %s6299_s15 = smov %s4710_s18  ;;  %15 = sbr.rel (!%p13_p9) target bundleno = 3 (0x3), region = 76 }
 0x3fa   :  { %4029 = vsyncpa [#allocation4], 1 }
 0x3fb   :  { %4031 = vsyncpa [#allocation4 + $0x1], 1 }

</bundles_post_ra>
